<compile_context>
chip_gen: v7x
topology: tpu7x:2x2x1
jax: 0.10.0
libtpu: 0.0.40
codegen_flags: <defaults>
</compile_context>

<pallas_src>
import math
from functools import partial

import jax
import jax.numpy as jnp
from jax.experimental import pallas as pl
from jax.experimental.pallas import tpu as pltpu


CH_PAD = 128                      # lane-dense channel padding for conv outputs
_VMEM_LIMIT = 32 * 1024 * 1024    # explicit scoped-VMEM budget (safe on v5e/v6e/v7x)


def _round_up(x, m):
    return (x + m - 1) // m * m


def _conv_out(s, k, stride):
    return (s - k) // stride + 1


# ----------------------------------------------------------------------------
# Pallas kernels
# ----------------------------------------------------------------------------
def _conv_dense_kernel(x_ref, w_ref, b_ref, o_ref):
    # x: (TM, K) f32   w: (K, N) bf16   b: (1, N) f32   ->   o: (TM, N) f32
    y = jnp.dot(x_ref[...].astype(jnp.bfloat16), w_ref[...],
                preferred_element_type=jnp.float32)
    o_ref[...] = jnp.maximum(y + b_ref[...], 0.0)


def _noisy_head_kernel(x_ref,
                       w1mu_ref, w1sig_ref, ein1_ref, eout1_ref,
                       b1mu_ref, b1sig_ref, b1eps_ref,
                       w2mu_ref, w2sig_ref, ein2_ref, eout2_ref,
                       b2mu_ref, b2sig_ref, b2eps_ref,
                       o_ref):
    # Fused NoisyLinear(feat,512)+ReLU and NoisyLinear(512,A) (training mode).
    # Weights are in (K, N) layout: W[i, o] = mu + sigma * eps_in[i]*eps_out[o].
    # mu+sigma*eps combine in f32 (v5e has no bf16 VPU); matmul operands bf16.
    w1 = w1mu_ref[...] + w1sig_ref[...] * (ein1_ref[...] * eout1_ref[...])
    b1 = b1mu_ref[...] + b1sig_ref[...] * b1eps_ref[...]
    h = jnp.dot(x_ref[...].astype(jnp.bfloat16), w1.astype(jnp.bfloat16),
                preferred_element_type=jnp.float32) + b1
    h = jnp.maximum(h, 0.0)

    w2 = w2mu_ref[...] + w2sig_ref[...] * (ein2_ref[...] * eout2_ref[...])
    b2 = b2mu_ref[...] + b2sig_ref[...] * b2eps_ref[...]
    o_ref[...] = jnp.dot(h.astype(jnp.bfloat16), w2.astype(jnp.bfloat16),
                         preferred_element_type=jnp.float32) + b2


# ----------------------------------------------------------------------------
# Pallas wrappers
# ----------------------------------------------------------------------------
def conv_dense(x, w, b, *, tile_m=512):
    """relu(x @ w + b) tiled over rows M; w: (K, N) bf16, b: (1, N) f32."""
    M, K = x.shape
    N = w.shape[1]
    tile_m = min(tile_m, _round_up(M, 8))
    m_pad = _round_up(M, tile_m)
    if m_pad != M:
        x = jnp.pad(x, ((0, m_pad - M), (0, 0)))
    grid = (m_pad // tile_m,)

    out = pl.pallas_call(
        _conv_dense_kernel,
        out_shape=jax.ShapeDtypeStruct((m_pad, N), jnp.float32),
        grid_spec=pltpu.PrefetchScalarGridSpec(
            num_scalar_prefetch=0,
            grid=grid,
            in_specs=[pl.BlockSpec((tile_m, K), lambda i: (i, 0)),
                      pl.BlockSpec((K, N), lambda i: (0, 0)),
                      pl.BlockSpec((1, N), lambda i: (0, 0))],
            out_specs=pl.BlockSpec((tile_m, N), lambda i: (i, 0))),
        compiler_params=pltpu.CompilerParams(
            dimension_semantics=("parallel",),
            vmem_limit_bytes=_VMEM_LIMIT),
        cost_estimate=pl.CostEstimate(
            flops=2 * m_pad * K * N,
            transcendentals=0,
            bytes_accessed=m_pad * K * 4 + K * N * 2 + N * 4 + m_pad * N * 4),
    )(x, w, b)
    return out[:M]


def noisy_head(x, p1, p2, num_actions, *, tile_m=256):
    """Fused noisy1+ReLU+noisy2. Returns (M, num_actions) f32."""
    # TODO(synk): for very large feature sizes (e.g. 84x84 inputs) tile K1 as
    # well so the noisy1 mu/sigma blocks stay within the VMEM budget.
    M, K1 = x.shape
    N1 = p1["w_mu"].shape[1]
    N2 = p2["w_mu"].shape[1]
    tile_m = min(tile_m, _round_up(M, 8))
    m_pad = _round_up(M, tile_m)
    if m_pad != M:
        x = jnp.pad(x, ((0, m_pad - M), (0, 0)))
    grid = (m_pad // tile_m,)

    def full(shape):
        return pl.BlockSpec(shape, lambda i: (0, 0))

    out = pl.pallas_call(
        _noisy_head_kernel,
        out_shape=jax.ShapeDtypeStruct((m_pad, N2), jnp.float32),
        grid_spec=pltpu.PrefetchScalarGridSpec(
            num_scalar_prefetch=0,
            grid=grid,
            in_specs=[pl.BlockSpec((tile_m, K1), lambda i: (i, 0)),
                      full((K1, N1)), full((K1, N1)), full((K1, 1)), full((1, N1)),
                      full((1, N1)), full((1, N1)), full((1, N1)),
                      full((N1, N2)), full((N1, N2)), full((N1, 1)), full((1, N2)),
                      full((1, N2)), full((1, N2)), full((1, N2))],
            out_specs=pl.BlockSpec((tile_m, N2), lambda i: (i, 0))),
        compiler_params=pltpu.CompilerParams(
            dimension_semantics=("parallel",),
            vmem_limit_bytes=_VMEM_LIMIT),
        cost_estimate=pl.CostEstimate(
            flops=2 * m_pad * K1 * N1 + 2 * m_pad * N1 * N2,
            transcendentals=0,
            bytes_accessed=(m_pad * K1 * 4 + 2 * K1 * N1 * 4 + 2 * N1 * N2 * 4
                            + m_pad * N2 * 4)),
    )(x,
      p1["w_mu"], p1["w_sigma"], p1["eps_in"], p1["eps_out"],
      p1["b_mu"], p1["b_sigma"], p1["b_eps"],
      p2["w_mu"], p2["w_sigma"], p2["eps_in"], p2["eps_out"],
      p2["b_mu"], p2["b_sigma"], p2["b_eps"])
    return out[:M, :num_actions]


# ----------------------------------------------------------------------------
# Glue: channels-last im2col (slicing/stack only; the matmuls are in Pallas)
# ----------------------------------------------------------------------------
# TODO(synk): patch extraction stays XLA glue; it could be fused into the conv
# kernel with manual strided DMA (memory_space=pl.ANY + make_async_copy).
def im2col_nhwc(x, kh, kw, stride):
    # x: (N, H, W, C) -> (N*Ho*Wo, kh*kw*C), patch feature order (kh, kw, C)
    n, h, w, c = x.shape
    ho = _conv_out(h, kh, stride)
    wo = _conv_out(w, kw, stride)
    rows = []
    for i in range(kh):
        cols = []
        for j in range(kw):
            cols.append(x[:, i:i + stride * ho:stride, j:j + stride * wo:stride, :])
        rows.append(jnp.stack(cols, axis=3))           # (N, Ho, Wo, kw, C)
    patches = jnp.stack(rows, axis=3)                  # (N, Ho, Wo, kh, kw, C)
    return patches.reshape(n * ho * wo, kh * kw * c), ho, wo


# ----------------------------------------------------------------------------
# Parameter init (PyTorch-equivalent layouts) + one-time kernel-layout prep
# ----------------------------------------------------------------------------
def _scale_noise(key, size):
    x = jax.random.normal(key, (size,), dtype=jnp.float32)
    return jnp.sign(x) * jnp.sqrt(jnp.abs(x))


def init_conv(key, out_ch, in_ch, k):
    k1, k2 = jax.random.split(key)
    fan_in = in_ch * k * k
    bound = 1.0 / math.sqrt(fan_in)
    w = jax.random.uniform(k1, (out_ch, in_ch, k, k),
                           minval=-bound, maxval=bound, dtype=jnp.float32)
    b = jax.random.uniform(k2, (out_ch,), minval=-bound, maxval=bound,
                           dtype=jnp.float32)
    return {"w": w, "b": b}


def init_noisy_linear(key, in_f, out_f, std_init=0.4):
    # Noise is stored as its rank-1 factors (no materialized outer product).
    k1, k2, k3, k4, k5 = jax.random.split(key, 5)
    mu_range = 1.0 / math.sqrt(in_f)
    return {
        "weight_mu": jax.random.uniform(k1, (out_f, in_f), minval=-mu_range,
                                        maxval=mu_range, dtype=jnp.float32),
        "weight_sigma": jnp.full((out_f, in_f), std_init / math.sqrt(in_f),
                                 dtype=jnp.float32),
        "eps_in": _scale_noise(k3, in_f),
        "eps_out": _scale_noise(k4, out_f),
        "bias_mu": jax.random.uniform(k2, (out_f,), minval=-mu_range,
                                      maxval=mu_range, dtype=jnp.float32),
        "bias_sigma": jnp.full((out_f,), std_init / math.sqrt(out_f),
                               dtype=jnp.float32),
        "bias_epsilon": _scale_noise(k5, out_f),
    }


def init_params(key, input_shape, num_actions):
    c, h, w = input_shape
    kc1, kc2, kc3, kn1, kn2 = jax.random.split(key, 5)
    h1, w1 = _conv_out(h, 8, 4), _conv_out(w, 8, 4)
    h2, w2 = _conv_out(h1, 4, 2), _conv_out(w1, 4, 2)
    h3, w3 = _conv_out(h2, 3, 1), _conv_out(w2, 3, 1)
    feat = 64 * h3 * w3
    return {
        "conv1": init_conv(kc1, 32, c, 8),
        "conv2": init_conv(kc2, 64, 32, 4),
        "conv3": init_conv(kc3, 64, 64, 3),
        "noisy1": init_noisy_linear(kn1, feat, 512),
        "noisy2": init_noisy_linear(kn2, 512, num_actions),
    }


def prepare_params(raw, input_shape, num_actions):
    """One-time relayout to kernel-friendly (K, N) / lane-dense-padded tensors."""
    c, h, w = input_shape
    h1, w1 = _conv_out(h, 8, 4), _conv_out(w, 8, 4)
    h2, w2 = _conv_out(h1, 4, 2), _conv_out(w1, 4, 2)
    h3, w3 = _conv_out(h2, 3, 1), _conv_out(w2, 3, 1)

    def prep_conv(p, cin_real, cin_pad, cout_real, scale=1.0):
        # torch (O, Cin, kh, kw) -> (kh, kw, Cin_pad, 128) -> (K, 128) bf16
        wt = jnp.transpose(p["w"], (2, 3, 1, 0)) * scale
        kh, kw = wt.shape[0], wt.shape[1]
        wf = jnp.zeros((kh, kw, cin_pad, CH_PAD), jnp.float32)
        wf = wf.at[:, :, :cin_real, :cout_real].set(wt)
        bf = jnp.zeros((1, CH_PAD), jnp.float32).at[0, :cout_real].set(p["b"])
        return {"w": wf.reshape(kh * kw * cin_pad, CH_PAD).astype(jnp.bfloat16),
                "b": bf}

    conv1 = prep_conv(raw["conv1"], c, c, 32, scale=1.0 / 255.0)   # fold x/255
    conv2 = prep_conv(raw["conv2"], 32, CH_PAD, 64)
    conv3 = prep_conv(raw["conv3"], 64, CH_PAD, 64)

    # noisy1: remap columns from torch (C,H,W)-flatten order to our
    # channels-last (H, W, C_pad) flatten order; padded columns are zero.
    n1 = raw["noisy1"]
    c3 = 64
    out1 = n1["weight_mu"].shape[0]

    def remap_cols(m):
        m = m.reshape(out1, c3, h3, w3).transpose(0, 2, 3, 1)      # (out,h,w,c)
        m = jnp.pad(m, ((0, 0), (0, 0), (0, 0), (0, CH_PAD - c3)))
        return m.reshape(out1, h3 * w3 * CH_PAD).T                 # (K1, out)

    ein1 = n1["eps_in"].reshape(c3, h3, w3).transpose(1, 2, 0)
    ein1 = jnp.pad(ein1, ((0, 0), (0, 0), (0, CH_PAD - c3))).reshape(-1, 1)

    noisy1 = {
        "w_mu": remap_cols(n1["weight_mu"]),
        "w_sigma": remap_cols(n1["weight_sigma"]),
        "eps_in": ein1,
        "eps_out": n1["eps_out"].reshape(1, out1),
        "b_mu": n1["bias_mu"].reshape(1, out1),
        "b_sigma": n1["bias_sigma"].reshape(1, out1),
        "b_eps": n1["bias_epsilon"].reshape(1, out1),
    }

    # noisy2: (A, 512) -> (512, A_pad) with A padded to a lane-dense multiple
    # of 128 (padded output columns are exactly zero and sliced off).
    n2 = raw["noisy2"]
    a = num_actions
    in2 = n2["weight_mu"].shape[1]
    a_pad = _round_up(a, 128)

    def pad_out_mat(m):      # (a, in2) -> (in2, a_pad)
        return jnp.pad(m, ((0, a_pad - a), (0, 0))).T

    def pad_out_vec(v):      # (a,) -> (1, a_pad)
        return jnp.pad(v, (0, a_pad - a)).reshape(1, a_pad)

    noisy2 = {
        "w_mu": pad_out_mat(n2["weight_mu"]),
        "w_sigma": pad_out_mat(n2["weight_sigma"]),
        "eps_in": n2["eps_in"].reshape(in2, 1),
        "eps_out": pad_out_vec(n2["eps_out"]),
        "b_mu": pad_out_vec(n2["bias_mu"]),
        "b_sigma": pad_out_vec(n2["bias_sigma"]),
        "b_eps": pad_out_vec(n2["bias_epsilon"]),
    }

    return {"conv1": conv1, "conv2": conv2, "conv3": conv3,
            "noisy1": noisy1, "noisy2": noisy2}


# ----------------------------------------------------------------------------
# Forward pass (NoisyCnnDQN.forward, training-mode NoisyLinear)
# ----------------------------------------------------------------------------
def noisy_cnn_dqn_forward(params, x, *, num_actions):
    b = x.shape[0]
    x = jnp.transpose(x, (0, 2, 3, 1))            # NCHW -> NHWC, once
    for name, (k, s) in (("conv1", (8, 4)), ("conv2", (4, 2)), ("conv3", (3, 1))):
        patches, ho, wo = im2col_nhwc(x, k, k, s)
        y = conv_dense(patches, params[name]["w"], params[name]["b"])
        x = y.reshape(b, ho, wo, CH_PAD)          # channels-last, lane-dense
    feat = x.reshape(b, -1)
    return noisy_head(feat, params["noisy1"], params["noisy2"], num_actions)


# ----------------------------------------------------------------------------
if __name__ == "__main__":
    # Small, conv-stack-consistent shapes: 36x36 -> 8x8 -> 3x3 -> 1x1
    input_shape = (4, 36, 36)
    num_actions = 6
    batch = 2

    key = jax.random.PRNGKey(0)
    kp, kx = jax.random.split(key)

    raw_params = init_params(kp, input_shape, num_actions)
    params = prepare_params(raw_params, input_shape, num_actions)

    x = jax.random.uniform(kx, (batch,) + input_shape, minval=0.0,
                           maxval=255.0, dtype=jnp.float32)

    fwd = jax.jit(partial(noisy_cnn_dqn_forward, num_actions=num_actions))
    q = jax.block_until_ready(fwd(params, x))

    assert q.shape == (batch, num_actions), q.shape
    assert bool(jnp.all(jnp.isfinite(q)))
    print("KERNEL_OK")
</pallas_src>

<mosaic_0001>
module attributes {stable_mosaic.version = 11 : i64} {
  func.func @_conv_dense_kernel(%arg0: i32, %arg1: memref<128x256xf32, #tpu.memory_space<vmem>>, %arg2: memref<256x128xbf16, #tpu.memory_space<vmem>>, %arg3: memref<1x128xf32, #tpu.memory_space<vmem>>, %arg4: memref<128x128xf32, #tpu.memory_space<vmem>>) attributes {dimension_semantics = [#tpu.dimension_semantics<parallel>], iteration_bounds = array<i64: 1>, scalar_prefetch = 0 : i64, scratch_operands = 0 : i64, tpu.core_type = #tpu.core_type<tc>, window_params = [{transform_indices = @transform_0, window_bounds = array<i64: 128, 256>}, {pipeline_mode = #tpu.pipeline_mode<synchronous>, transform_indices = @transform_1, window_bounds = array<i64: 256, 128>}, {pipeline_mode = #tpu.pipeline_mode<synchronous>, transform_indices = @transform_2, window_bounds = array<i64: 1, 128>}, {transform_indices = @transform_3, window_bounds = array<i64: 128, 128>}]} {
    %c0 = arith.constant 0 : index
    %c0_0 = arith.constant 0 : index
    %0 = vector.load %arg1[%c0, %c0_0] : memref<128x256xf32, #tpu.memory_space<vmem>>, vector<128x256xf32>
    %1 = arith.truncf %0 : vector<128x256xf32> to vector<128x256xbf16>
    %c0_1 = arith.constant 0 : index
    %c0_2 = arith.constant 0 : index
    %2 = vector.load %arg2[%c0_1, %c0_2] : memref<256x128xbf16, #tpu.memory_space<vmem>>, vector<256x128xbf16>
    %cst = arith.constant dense<0.000000e+00> : vector<128x128xf32>
    %3 = tpu.matmul %1, %2, %cst {dimension_numbers = #tpu.dot_dimension_numbers<[1], [0], [0], [1], [0, 0, 1, 1], [], []>} : vector<128x256xbf16>, vector<256x128xbf16>, vector<128x128xf32> -> vector<128x128xf32>
    %c0_3 = arith.constant 0 : index
    %c0_4 = arith.constant 0 : index
    %4 = vector.load %arg3[%c0_3, %c0_4] : memref<1x128xf32, #tpu.memory_space<vmem>>, vector<1x128xf32>
    %5 = vector.broadcast %4 : vector<1x128xf32> to vector<128x128xf32>
    %6 = arith.addf %3, %5 : vector<128x128xf32>
    %cst_5 = arith.constant 0.000000e+00 : f32
    %7 = vector.broadcast %cst_5 : f32 to vector<128x128xf32>
    %8 = arith.maximumf %6, %7 : vector<128x128xf32>
    %c0_6 = arith.constant 0 : index
    %c0_7 = arith.constant 0 : index
    %9 = vector.load %arg4[%c0_6, %c0_7] : memref<128x128xf32, #tpu.memory_space<vmem>>, vector<128x128xf32>
    tpu.vector_store %arg4[%c0_6, %c0_7], %8 {strides = array<i32>} : memref<128x128xf32, #tpu.memory_space<vmem>>, vector<128x128xf32>,
    return
  }
  func.func @transform_0(%arg0: i32) -> (i32, i32) {
    %c0_i32 = arith.constant 0 : i32
    %c0_i32_0 = arith.constant 0 : i32
    return %arg0, %c0_i32 : i32, i32
  }
  func.func @transform_1(%arg0: i32) -> (i32, i32) {
    %c0_i32 = arith.constant 0 : i32
    %c0_i32_0 = arith.constant 0 : i32
    %c0_i32_1 = arith.constant 0 : i32
    return %c0_i32, %c0_i32_0 : i32, i32
  }
  func.func @transform_2(%arg0: i32) -> (i32, i32) {
    %c0_i32 = arith.constant 0 : i32
    %c0_i32_0 = arith.constant 0 : i32
    %c0_i32_1 = arith.constant 0 : i32
    return %c0_i32, %c0_i32_0 : i32, i32
  }
  func.func @transform_3(%arg0: i32) -> (i32, i32) {
    %c0_i32 = arith.constant 0 : i32
    %c0_i32_0 = arith.constant 0 : i32
    return %arg0, %c0_i32 : i32, i32
  }
}

module attributes {stable_mosaic.version = 11 : i64} {
  func.func @_conv_dense_kernel(%arg0: i32, %arg1: memref<24x2048xf32, #tpu.memory_space<vmem>>, %arg2: memref<2048x128xbf16, #tpu.memory_space<vmem>>, %arg3: memref<1x128xf32, #tpu.memory_space<vmem>>, %arg4: memref<24x128xf32, #tpu.memory_space<vmem>>) attributes {dimension_semantics = [#tpu.dimension_semantics<parallel>], iteration_bounds = array<i64: 1>, scalar_prefetch = 0 : i64, scratch_operands = 0 : i64, tpu.core_type = #tpu.core_type<tc>, window_params = [{transform_indices = @transform_0, window_bounds = array<i64: 24, 2048>}, {pipeline_mode = #tpu.pipeline_mode<synchronous>, transform_indices = @transform_1, window_bounds = array<i64: 2048, 128>}, {pipeline_mode = #tpu.pipeline_mode<synchronous>, transform_indices = @transform_2, window_bounds = array<i64: 1, 128>}, {transform_indices = @transform_3, window_bounds = array<i64: 24, 128>}]} {
    %c0 = arith.constant 0 : index
    %c0_0 = arith.constant 0 : index
    %0 = vector.load %arg1[%c0, %c0_0] : memref<24x2048xf32, #tpu.memory_space<vmem>>, vector<24x2048xf32>
    %1 = arith.truncf %0 : vector<24x2048xf32> to vector<24x2048xbf16>
    %c0_1 = arith.constant 0 : index
    %c0_2 = arith.constant 0 : index
    %2 = vector.load %arg2[%c0_1, %c0_2] : memref<2048x128xbf16, #tpu.memory_space<vmem>>, vector<2048x128xbf16>
    %cst = arith.constant dense<0.000000e+00> : vector<24x128xf32>
    %3 = tpu.matmul %1, %2, %cst {dimension_numbers = #tpu.dot_dimension_numbers<[1], [0], [0], [1], [0, 0, 1, 1], [], []>} : vector<24x2048xbf16>, vector<2048x128xbf16>, vector<24x128xf32> -> vector<24x128xf32>
    %c0_3 = arith.constant 0 : index
    %c0_4 = arith.constant 0 : index
    %4 = vector.load %arg3[%c0_3, %c0_4] : memref<1x128xf32, #tpu.memory_space<vmem>>, vector<1x128xf32>
    %5 = vector.broadcast %4 : vector<1x128xf32> to vector<24x128xf32>
    %6 = arith.addf %3, %5 : vector<24x128xf32>
    %cst_5 = arith.constant 0.000000e+00 : f32
    %7 = vector.broadcast %cst_5 : f32 to vector<24x128xf32>
    %8 = arith.maximumf %6, %7 : vector<24x128xf32>
    %c0_6 = arith.constant 0 : index
    %c0_7 = arith.constant 0 : index
    %9 = vector.load %arg4[%c0_6, %c0_7] : memref<24x128xf32, #tpu.memory_space<vmem>>, vector<24x128xf32>
    tpu.vector_store %arg4[%c0_6, %c0_7], %8 {strides = array<i32>} : memref<24x128xf32, #tpu.memory_space<vmem>>, vector<24x128xf32>,
    return
  }
  func.func @transform_0(%arg0: i32) -> (i32, i32) {
    %c0_i32 = arith.constant 0 : i32
    %c0_i32_0 = arith.constant 0 : i32
    return %arg0, %c0_i32 : i32, i32
  }
  func.func @transform_1(%arg0: i32) -> (i32, i32) {
    %c0_i32 = arith.constant 0 : i32
    %c0_i32_0 = arith.constant 0 : i32
    %c0_i32_1 = arith.constant 0 : i32
    return %c0_i32, %c0_i32_0 : i32, i32
  }
  func.func @transform_2(%arg0: i32) -> (i32, i32) {
    %c0_i32 = arith.constant 0 : i32
    %c0_i32_0 = arith.constant 0 : i32
    %c0_i32_1 = arith.constant 0 : i32
    return %c0_i32, %c0_i32_0 : i32, i32
  }
  func.func @transform_3(%arg0: i32) -> (i32, i32) {
    %c0_i32 = arith.constant 0 : i32
    %c0_i32_0 = arith.constant 0 : i32
    return %arg0, %c0_i32 : i32, i32
  }
}

module attributes {stable_mosaic.version = 11 : i64} {
  func.func @_conv_dense_kernel(%arg0: i32, %arg1: memref<8x1152xf32, #tpu.memory_space<vmem>>, %arg2: memref<1152x128xbf16, #tpu.memory_space<vmem>>, %arg3: memref<1x128xf32, #tpu.memory_space<vmem>>, %arg4: memref<8x128xf32, #tpu.memory_space<vmem>>) attributes {dimension_semantics = [#tpu.dimension_semantics<parallel>], iteration_bounds = array<i64: 1>, scalar_prefetch = 0 : i64, scratch_operands = 0 : i64, tpu.core_type = #tpu.core_type<tc>, window_params = [{transform_indices = @transform_0, window_bounds = array<i64: 8, 1152>}, {pipeline_mode = #tpu.pipeline_mode<synchronous>, transform_indices = @transform_1, window_bounds = array<i64: 1152, 128>}, {pipeline_mode = #tpu.pipeline_mode<synchronous>, transform_indices = @transform_2, window_bounds = array<i64: 1, 128>}, {transform_indices = @transform_3, window_bounds = array<i64: 8, 128>}]} {
    %c0 = arith.constant 0 : index
    %c0_0 = arith.constant 0 : index
    %0 = vector.load %arg1[%c0, %c0_0] : memref<8x1152xf32, #tpu.memory_space<vmem>>, vector<8x1152xf32>
    %1 = arith.truncf %0 : vector<8x1152xf32> to vector<8x1152xbf16>
    %c0_1 = arith.constant 0 : index
    %c0_2 = arith.constant 0 : index
    %2 = vector.load %arg2[%c0_1, %c0_2] : memref<1152x128xbf16, #tpu.memory_space<vmem>>, vector<1152x128xbf16>
    %cst = arith.constant dense<0.000000e+00> : vector<8x128xf32>
    %3 = tpu.matmul %1, %2, %cst {dimension_numbers = #tpu.dot_dimension_numbers<[1], [0], [0], [1], [0, 0, 1, 1], [], []>} : vector<8x1152xbf16>, vector<1152x128xbf16>, vector<8x128xf32> -> vector<8x128xf32>
    %c0_3 = arith.constant 0 : index
    %c0_4 = arith.constant 0 : index
    %4 = vector.load %arg3[%c0_3, %c0_4] : memref<1x128xf32, #tpu.memory_space<vmem>>, vector<1x128xf32>
    %5 = vector.broadcast %4 : vector<1x128xf32> to vector<8x128xf32>
    %6 = arith.addf %3, %5 : vector<8x128xf32>
    %cst_5 = arith.constant 0.000000e+00 : f32
    %7 = vector.broadcast %cst_5 : f32 to vector<8x128xf32>
    %8 = arith.maximumf %6, %7 : vector<8x128xf32>
    %c0_6 = arith.constant 0 : index
    %c0_7 = arith.constant 0 : index
    %9 = vector.load %arg4[%c0_6, %c0_7] : memref<8x128xf32, #tpu.memory_space<vmem>>, vector<8x128xf32>
    tpu.vector_store %arg4[%c0_6, %c0_7], %8 {strides = array<i32>} : memref<8x128xf32, #tpu.memory_space<vmem>>, vector<8x128xf32>,
    return
  }
  func.func @transform_0(%arg0: i32) -> (i32, i32) {
    %c0_i32 = arith.constant 0 : i32
    %c0_i32_0 = arith.constant 0 : i32
    return %arg0, %c0_i32 : i32, i32
  }
  func.func @transform_1(%arg0: i32) -> (i32, i32) {
    %c0_i32 = arith.constant 0 : i32
    %c0_i32_0 = arith.constant 0 : i32
    %c0_i32_1 = arith.constant 0 : i32
    return %c0_i32, %c0_i32_0 : i32, i32
  }
  func.func @transform_2(%arg0: i32) -> (i32, i32) {
    %c0_i32 = arith.constant 0 : i32
    %c0_i32_0 = arith.constant 0 : i32
    %c0_i32_1 = arith.constant 0 : i32
    return %c0_i32, %c0_i32_0 : i32, i32
  }
  func.func @transform_3(%arg0: i32) -> (i32, i32) {
    %c0_i32 = arith.constant 0 : i32
    %c0_i32_0 = arith.constant 0 : i32
    return %arg0, %c0_i32 : i32, i32
  }
}

module attributes {stable_mosaic.version = 11 : i64} {
  func.func @_noisy_head_kernel(%arg0: i32, %arg1: memref<8x128xf32, #tpu.memory_space<vmem>>, %arg2: memref<128x512xf32, #tpu.memory_space<vmem>>, %arg3: memref<128x512xf32, #tpu.memory_space<vmem>>, %arg4: memref<128x1xf32, #tpu.memory_space<vmem>>, %arg5: memref<1x512xf32, #tpu.memory_space<vmem>>, %arg6: memref<1x512xf32, #tpu.memory_space<vmem>>, %arg7: memref<1x512xf32, #tpu.memory_space<vmem>>, %arg8: memref<1x512xf32, #tpu.memory_space<vmem>>, %arg9: memref<512x128xf32, #tpu.memory_space<vmem>>, %arg10: memref<512x128xf32, #tpu.memory_space<vmem>>, %arg11: memref<512x1xf32, #tpu.memory_space<vmem>>, %arg12: memref<1x128xf32, #tpu.memory_space<vmem>>, %arg13: memref<1x128xf32, #tpu.memory_space<vmem>>, %arg14: memref<1x128xf32, #tpu.memory_space<vmem>>, %arg15: memref<1x128xf32, #tpu.memory_space<vmem>>, %arg16: memref<8x128xf32, #tpu.memory_space<vmem>>) attributes {dimension_semantics = [#tpu.dimension_semantics<parallel>], iteration_bounds = array<i64: 1>, scalar_prefetch = 0 : i64, scratch_operands = 0 : i64, tpu.core_type = #tpu.core_type<tc>, window_params = [{transform_indices = @transform_0, window_bounds = array<i64: 8, 128>}, {pipeline_mode = #tpu.pipeline_mode<synchronous>, transform_indices = @transform_1, window_bounds = array<i64: 128, 512>}, {pipeline_mode = #tpu.pipeline_mode<synchronous>, transform_indices = @transform_2, window_bounds = array<i64: 128, 512>}, {pipeline_mode = #tpu.pipeline_mode<synchronous>, transform_indices = @transform_3, window_bounds = array<i64: 128, 1>}, {pipeline_mode = #tpu.pipeline_mode<synchronous>, transform_indices = @transform_4, window_bounds = array<i64: 1, 512>}, {pipeline_mode = #tpu.pipeline_mode<synchronous>, transform_indices = @transform_5, window_bounds = array<i64: 1, 512>}, {pipeline_mode = #tpu.pipeline_mode<synchronous>, transform_indices = @transform_6, window_bounds = array<i64: 1, 512>}, {pipeline_mode = #tpu.pipeline_mode<synchronous>, transform_indices = @transform_7, window_bounds = array<i64: 1, 512>}, {pipeline_mode = #tpu.pipeline_mode<synchronous>, transform_indices = @transform_8, window_bounds = array<i64: 512, 128>}, {pipeline_mode = #tpu.pipeline_mode<synchronous>, transform_indices = @transform_9, window_bounds = array<i64: 512, 128>}, {pipeline_mode = #tpu.pipeline_mode<synchronous>, transform_indices = @transform_10, window_bounds = array<i64: 512, 1>}, {pipeline_mode = #tpu.pipeline_mode<synchronous>, transform_indices = @transform_11, window_bounds = array<i64: 1, 128>}, {pipeline_mode = #tpu.pipeline_mode<synchronous>, transform_indices = @transform_12, window_bounds = array<i64: 1, 128>}, {pipeline_mode = #tpu.pipeline_mode<synchronous>, transform_indices = @transform_13, window_bounds = array<i64: 1, 128>}, {pipeline_mode = #tpu.pipeline_mode<synchronous>, transform_indices = @transform_14, window_bounds = array<i64: 1, 128>}, {transform_indices = @transform_15, window_bounds = array<i64: 8, 128>}]} {
    %c0 = arith.constant 0 : index
    %c0_0 = arith.constant 0 : index
    %0 = vector.load %arg2[%c0, %c0_0] : memref<128x512xf32, #tpu.memory_space<vmem>>, vector<128x512xf32>
    %c0_1 = arith.constant 0 : index
    %c0_2 = arith.constant 0 : index
    %1 = vector.load %arg3[%c0_1, %c0_2] : memref<128x512xf32, #tpu.memory_space<vmem>>, vector<128x512xf32>
    %c0_3 = arith.constant 0 : index
    %c0_4 = arith.constant 0 : index
    %2 = vector.load %arg4[%c0_3, %c0_4] : memref<128x1xf32, #tpu.memory_space<vmem>>, vector<128x1xf32>
    %c0_5 = arith.constant 0 : index
    %c0_6 = arith.constant 0 : index
    %3 = vector.load %arg5[%c0_5, %c0_6] : memref<1x512xf32, #tpu.memory_space<vmem>>, vector<1x512xf32>
    %4 = vector.broadcast %2 : vector<128x1xf32> to vector<128x512xf32>
    %5 = vector.broadcast %3 : vector<1x512xf32> to vector<128x512xf32>
    %6 = arith.mulf %4, %5 : vector<128x512xf32>
    %7 = arith.mulf %1, %6 : vector<128x512xf32>
    %8 = arith.addf %0, %7 : vector<128x512xf32>
    %c0_7 = arith.constant 0 : index
    %c0_8 = arith.constant 0 : index
    %9 = vector.load %arg6[%c0_7, %c0_8] : memref<1x512xf32, #tpu.memory_space<vmem>>, vector<1x512xf32>
    %c0_9 = arith.constant 0 : index
    %c0_10 = arith.constant 0 : index
    %10 = vector.load %arg7[%c0_9, %c0_10] : memref<1x512xf32, #tpu.memory_space<vmem>>, vector<1x512xf32>
    %c0_11 = arith.constant 0 : index
    %c0_12 = arith.constant 0 : index
    %11 = vector.load %arg8[%c0_11, %c0_12] : memref<1x512xf32, #tpu.memory_space<vmem>>, vector<1x512xf32>
    %12 = arith.mulf %10, %11 : vector<1x512xf32>
    %13 = arith.addf %9, %12 : vector<1x512xf32>
    %c0_13 = arith.constant 0 : index
    %c0_14 = arith.constant 0 : index
    %14 = vector.load %arg1[%c0_13, %c0_14] : memref<8x128xf32, #tpu.memory_space<vmem>>, vector<8x128xf32>
    %15 = arith.truncf %14 : vector<8x128xf32> to vector<8x128xbf16>
    %16 = arith.truncf %8 : vector<128x512xf32> to vector<128x512xbf16>
    %cst = arith.constant dense<0.000000e+00> : vector<8x512xf32>
    %17 = tpu.matmul %15, %16, %cst {dimension_numbers = #tpu.dot_dimension_numbers<[1], [0], [0], [1], [0, 0, 1, 1], [], []>} : vector<8x128xbf16>, vector<128x512xbf16>, vector<8x512xf32> -> vector<8x512xf32>
    %18 = vector.broadcast %13 : vector<1x512xf32> to vector<8x512xf32>
    %19 = arith.addf %17, %18 : vector<8x512xf32>
    %cst_15 = arith.constant 0.000000e+00 : f32
    %20 = vector.broadcast %cst_15 : f32 to vector<8x512xf32>
    %21 = arith.maximumf %19, %20 : vector<8x512xf32>
    %c0_16 = arith.constant 0 : index
    %c0_17 = arith.constant 0 : index
    %22 = vector.load %arg9[%c0_16, %c0_17] : memref<512x128xf32, #tpu.memory_space<vmem>>, vector<512x128xf32>
    %c0_18 = arith.constant 0 : index
    %c0_19 = arith.constant 0 : index
    %23 = vector.load %arg10[%c0_18, %c0_19] : memref<512x128xf32, #tpu.memory_space<vmem>>, vector<512x128xf32>
    %c0_20 = arith.constant 0 : index
    %c0_21 = arith.constant 0 : index
    %24 = vector.load %arg11[%c0_20, %c0_21] : memref<512x1xf32, #tpu.memory_space<vmem>>, vector<512x1xf32>
    %c0_22 = arith.constant 0 : index
    %c0_23 = arith.constant 0 : index
    %25 = vector.load %arg12[%c0_22, %c0_23] : memref<1x128xf32, #tpu.memory_space<vmem>>, vector<1x128xf32>
    %26 = vector.broadcast %24 : vector<512x1xf32> to vector<512x128xf32>
    %27 = vector.broadcast %25 : vector<1x128xf32> to vector<512x128xf32>
    %28 = arith.mulf %26, %27 : vector<512x128xf32>
    %29 = arith.mulf %23, %28 : vector<512x128xf32>
    %30 = arith.addf %22, %29 : vector<512x128xf32>
    %c0_24 = arith.constant 0 : index
    %c0_25 = arith.constant 0 : index
    %31 = vector.load %arg13[%c0_24, %c0_25] : memref<1x128xf32, #tpu.memory_space<vmem>>, vector<1x128xf32>
    %c0_26 = arith.constant 0 : index
    %c0_27 = arith.constant 0 : index
    %32 = vector.load %arg14[%c0_26, %c0_27] : memref<1x128xf32, #tpu.memory_space<vmem>>, vector<1x128xf32>
    %c0_28 = arith.constant 0 : index
    %c0_29 = arith.constant 0 : index
    %33 = vector.load %arg15[%c0_28, %c0_29] : memref<1x128xf32, #tpu.memory_space<vmem>>, vector<1x128xf32>
    %34 = arith.mulf %32, %33 : vector<1x128xf32>
    %35 = arith.addf %31, %34 : vector<1x128xf32>
    %36 = arith.truncf %21 : vector<8x512xf32> to vector<8x512xbf16>
    %37 = arith.truncf %30 : vector<512x128xf32> to vector<512x128xbf16>
    %cst_30 = arith.constant dense<0.000000e+00> : vector<8x128xf32>
    %38 = tpu.matmul %36, %37, %cst_30 {dimension_numbers = #tpu.dot_dimension_numbers<[1], [0], [0], [1], [0, 0, 1, 1], [], []>} : vector<8x512xbf16>, vector<512x128xbf16>, vector<8x128xf32> -> vector<8x128xf32>
    %39 = vector.broadcast %35 : vector<1x128xf32> to vector<8x128xf32>
    %40 = arith.addf %38, %39 : vector<8x128xf32>
    %c0_31 = arith.constant 0 : index
    %c0_32 = arith.constant 0 : index
    %41 = vector.load %arg16[%c0_31, %c0_32] : memref<8x128xf32, #tpu.memory_space<vmem>>, vector<8x128xf32>
    tpu.vector_store %arg16[%c0_31, %c0_32], %40 {strides = array<i32>} : memref<8x128xf32, #tpu.memory_space<vmem>>, vector<8x128xf32>,
    return
  }
  func.func @transform_0(%arg0: i32) -> (i32, i32) {
    %c0_i32 = arith.constant 0 : i32
    %c0_i32_0 = arith.constant 0 : i32
    return %arg0, %c0_i32 : i32, i32
  }
  func.func @transform_1(%arg0: i32) -> (i32, i32) {
    %c0_i32 = arith.constant 0 : i32
    %c0_i32_0 = arith.constant 0 : i32
    %c0_i32_1 = arith.constant 0 : i32
    return %c0_i32, %c0_i32_0 : i32, i32
  }
  func.func @transform_2(%arg0: i32) -> (i32, i32) {
    %c0_i32 = arith.constant 0 : i32
    %c0_i32_0 = arith.constant 0 : i32
    %c0_i32_1 = arith.constant 0 : i32
    return %c0_i32, %c0_i32_0 : i32, i32
  }
  func.func @transform_3(%arg0: i32) -> (i32, i32) {
    %c0_i32 = arith.constant 0 : i32
    %c0_i32_0 = arith.constant 0 : i32
    %c0_i32_1 = arith.constant 0 : i32
    return %c0_i32, %c0_i32_0 : i32, i32
  }
  func.func @transform_4(%arg0: i32) -> (i32, i32) {
    %c0_i32 = arith.constant 0 : i32
    %c0_i32_0 = arith.constant 0 : i32
    %c0_i32_1 = arith.constant 0 : i32
    return %c0_i32, %c0_i32_0 : i32, i32
  }
  func.func @transform_5(%arg0: i32) -> (i32, i32) {
    %c0_i32 = arith.constant 0 : i32
    %c0_i32_0 = arith.constant 0 : i32
    %c0_i32_1 = arith.constant 0 : i32
    return %c0_i32, %c0_i32_0 : i32, i32
  }
  func.func @transform_6(%arg0: i32) -> (i32, i32) {
    %c0_i32 = arith.constant 0 : i32
    %c0_i32_0 = arith.constant 0 : i32
    %c0_i32_1 = arith.constant 0 : i32
    return %c0_i32, %c0_i32_0 : i32, i32
  }
  func.func @transform_7(%arg0: i32) -> (i32, i32) {
    %c0_i32 = arith.constant 0 : i32
    %c0_i32_0 = arith.constant 0 : i32
    %c0_i32_1 = arith.constant 0 : i32
    return %c0_i32, %c0_i32_0 : i32, i32
  }
  func.func @transform_8(%arg0: i32) -> (i32, i32) {
    %c0_i32 = arith.constant 0 : i32
    %c0_i32_0 = arith.constant 0 : i32
    %c0_i32_1 = arith.constant 0 : i32
    return %c0_i32, %c0_i32_0 : i32, i32
  }
  func.func @transform_9(%arg0: i32) -> (i32, i32) {
    %c0_i32 = arith.constant 0 : i32
    %c0_i32_0 = arith.constant 0 : i32
    %c0_i32_1 = arith.constant 0 : i32
    return %c0_i32, %c0_i32_0 : i32, i32
  }
  func.func @transform_10(%arg0: i32) -> (i32, i32) {
    %c0_i32 = arith.constant 0 : i32
    %c0_i32_0 = arith.constant 0 : i32
    %c0_i32_1 = arith.constant 0 : i32
    return %c0_i32, %c0_i32_0 : i32, i32
  }
  func.func @transform_11(%arg0: i32) -> (i32, i32) {
    %c0_i32 = arith.constant 0 : i32
    %c0_i32_0 = arith.constant 0 : i32
    %c0_i32_1 = arith.constant 0 : i32
    return %c0_i32, %c0_i32_0 : i32, i32
  }
  func.func @transform_12(%arg0: i32) -> (i32, i32) {
    %c0_i32 = arith.constant 0 : i32
    %c0_i32_0 = arith.constant 0 : i32
    %c0_i32_1 = arith.constant 0 : i32
    return %c0_i32, %c0_i32_0 : i32, i32
  }
  func.func @transform_13(%arg0: i32) -> (i32, i32) {
    %c0_i32 = arith.constant 0 : i32
    %c0_i32_0 = arith.constant 0 : i32
    %c0_i32_1 = arith.constant 0 : i32
    return %c0_i32, %c0_i32_0 : i32, i32
  }
  func.func @transform_14(%arg0: i32) -> (i32, i32) {
    %c0_i32 = arith.constant 0 : i32
    %c0_i32_0 = arith.constant 0 : i32
    %c0_i32_1 = arith.constant 0 : i32
    return %c0_i32, %c0_i32_0 : i32, i32
  }
  func.func @transform_15(%arg0: i32) -> (i32, i32) {
    %c0_i32 = arith.constant 0 : i32
    %c0_i32_0 = arith.constant 0 : i32
    return %arg0, %c0_i32 : i32, i32
  }
}

</mosaic_0001>

<bundles_post_ra>
// kernel: noisy_cnn_dqn_forward.4
= control target key start
LH: loop header
LB: loop body
LE: loop exit
PB: predicated region body
PF: predicated region fallthrough
CT: control target
= control target key end

     0   :  { %s677_s1 = inlined_call_operand.vmem [shape: bf16[256,128], index: 1, kind: input, shape index: {}]   ;;  %s678_s0 = inlined_call_operand.vmem [shape: f32[128,256], index: 0, kind: input, shape index: {}]   ;;  %s679_s2 = inlined_call_operand.vmem [shape: f32[1,128], index: 2, kind: input, shape index: {}]   ;;  %s680_s3 = inlined_call_operand.vmem [shape: f32[128,128], index: 3, kind: output, shape index: {}]  }
   0x1   :  { %v428_v0 = vld [vmem:[%s677_s1 + $0x40] sm:$0xff]   ;;  %v430_v2 = vld [vmem:[%s677_s1 + $0x48] sm:$0xff]   ;;  %v432_v4 = vld [vmem:[%s677_s1 + $0x50] sm:$0xff]  }
   0x2   :  { %v429_v1 = vld [vmem:[%s677_s1] sm:$0xff]   ;;  %348 = vmatprep.subr.bf16.mxu0 %v428_v0  ;;  %412 = vmatprep.subr.bf16.mxu1 %v428_v0  ;;  %v431_v3 = vld [vmem:[%s677_s1 + $0x8] sm:$0xff]   ;;  %v433_v5 = vld [vmem:[%s677_s1 + $0x10] sm:$0xff]  }
   0x3   :  { %349 = vmatpush3.bf16.msra.mxu0 %v429_v1  ;;  %420 = vmatpush3.bf16.msra.mxu1 %v429_v1  ;;  %v434_v6 = vld [vmem:[%s677_s1 + $0x58] sm:$0xff]   ;;  %v436_v8 = vld [vmem:[%s677_s1 + $0x60] sm:$0xff]   ;;  %v438_v10 = vld [vmem:[%s677_s1 + $0x68] sm:$0xff]  }
   0x4   :  { %350 = vmatprep.subr.bf16.mxu0 %v430_v2  ;;  %413 = vmatprep.subr.bf16.mxu1 %v430_v2  ;;  %v435_v7 = vld [vmem:[%s677_s1 + $0x18] sm:$0xff]   ;;  %v437_v9 = vld [vmem:[%s677_s1 + $0x20] sm:$0xff]   ;;  %v16_v11 = vld [vmem:[%s678_s0 + $0x8] sm:$0xff] }
   0x5   :  { %v18_v12 = vld [vmem:[%s678_s0 + $0x18] sm:$0xff]  ;;  %v32_v13 = vld [vmem:[%s678_s0 + $0x88] sm:$0xff]  ;;  %v440_v18 = vld [vmem:[%s677_s1 + $0x70] sm:$0xff]  }
   0x6   :  { %v48_v14 = vpack.c.bf16 %v18_v12, %v16_v11  ;;  %v34_v15 = vld [vmem:[%s678_s0 + $0x98] sm:$0xff]  ;;  %v439_v17 = vld [vmem:[%s677_s1 + $0x28] sm:$0xff]   ;;  %v441_v19 = vld [vmem:[%s677_s1 + $0x30] sm:$0xff]  }
   0x7   :  { %351 = vmatpush3.bf16.msra.mxu0 %v431_v3  ;;  %421 = vmatpush3.bf16.msra.mxu1 %v431_v3  ;;  %v56_v16 = vpack.c.bf16 %v34_v15, %v32_v13  ;;  %v442_v20 = vld [vmem:[%s677_s1 + $0x78] sm:$0xff]   ;;  %v15_v22 = vld [vmem:[%s678_s0] sm:$0xff]  ;;  %v17_v23 = vld [vmem:[%s678_s0 + $0x10] sm:$0xff] }
   0x8   :  { %352 = vmatprep.subr.bf16.mxu0 %v432_v4  ;;  %414 = vmatprep.subr.bf16.mxu1 %v432_v4  ;;  %v443_v21 = vld [vmem:[%s677_s1 + $0x38] sm:$0xff]   ;;  %v31_v24 = vld [vmem:[%s678_s0 + $0x80] sm:$0xff]  ;;  %v33_v25 = vld [vmem:[%s678_s0 + $0x90] sm:$0xff]  ;;  %v47_v30 = vpack.c.bf16 %v17_v23, %v15_v22 }
   0x9   :  { %230 = vmatprep.mubr.bf16.mxu0 %v48_v14  ;;  %262 = vmatprep.mubr.bf16.mxu1 %v56_v16  ;;  %v20_v26 = vld [vmem:[%s678_s0 + $0x28] sm:$0xff]  ;;  %v22_v27 = vld [vmem:[%s678_s0 + $0x38] sm:$0xff]  ;;  %v55_v31 = vpack.c.bf16 %v33_v25, %v31_v24  ;;  %v19_v34 = vld [vmem:[%s678_s0 + $0x20] sm:$0xff] }
   0xa   :  { %v36_v28 = vld [vmem:[%s678_s0 + $0xa8] sm:$0xff]  ;;  %v38_v29 = vld [vmem:[%s678_s0 + $0xb8] sm:$0xff]  ;;  %v50_v32 = vpack.c.bf16 %v22_v27, %v20_v26  ;;  %v21_v35 = vld [vmem:[%s678_s0 + $0x30] sm:$0xff] }
   0xb   :  { %353 = vmatpush3.bf16.msra.mxu0 %v433_v5  ;;  %422 = vmatpush3.bf16.msra.mxu1 %v433_v5  ;;  %v58_v33 = vpack.c.bf16 %v38_v29, %v36_v28  ;;  %v35_v36 = vld [vmem:[%s678_s0 + $0xa0] sm:$0xff]  ;;  %v37_v37 = vld [vmem:[%s678_s0 + $0xb0] sm:$0xff]  ;;  %v24_v38 = vld [vmem:[%s678_s0 + $0x48] sm:$0xff]  ;;  %v49_v42 = vpack.c.bf16 %v21_v35, %v19_v34 }
   0xc   :  { %354 = vmatprep.subr.bf16.mxu0 %v434_v6  ;;  %415 = vmatprep.subr.bf16.mxu1 %v434_v6  ;;  %v26_v39 = vld [vmem:[%s678_s0 + $0x58] sm:$0xff]  ;;  %v40_v40 = vld [vmem:[%s678_s0 + $0xc8] sm:$0xff]  ;;  %v57_v43 = vpack.c.bf16 %v37_v37, %v35_v36  ;;  %v23_v46 = vld [vmem:[%s678_s0 + $0x40] sm:$0xff] }
   0xd   :  { %v42_v41 = vld [vmem:[%s678_s0 + $0xd8] sm:$0xff]  ;;  %v52_v44 = vpack.c.bf16 %v26_v39, %v24_v38  ;;  %v25_v47 = vld [vmem:[%s678_s0 + $0x50] sm:$0xff]  ;;  %v39_v48 = vld [vmem:[%s678_s0 + $0xc0] sm:$0xff] }
   0xe   :  { %v60_v45 = vpack.c.bf16 %v42_v41, %v40_v40  ;;  %v41_v49 = vld [vmem:[%s678_s0 + $0xd0] sm:$0xff]  ;;  %v28_v50 = vld [vmem:[%s678_s0 + $0x68] sm:$0xff]  ;;  %v30_v51 = vld [vmem:[%s678_s0 + $0x78] sm:$0xff]  ;;  %v51_v54 = vpack.c.bf16 %v25_v47, %v23_v46 }
   0xf   :  { %355 = vmatpush3.bf16.msra.mxu0 %v435_v7  ;;  %423 = vmatpush3.bf16.msra.mxu1 %v435_v7  ;;  %v44_v52 = vld [vmem:[%s678_s0 + $0xe8] sm:$0xff]  ;;  %v46_v53 = vld [vmem:[%s678_s0 + $0xf8] sm:$0xff]  ;;  %v59_v55 = vpack.c.bf16 %v41_v49, %v39_v48  ;;  %v54_v56 = vpack.c.bf16 %v30_v51, %v28_v50  ;;  %v27_v58 = vld [vmem:[%s678_s0 + $0x60] sm:$0xff] }
  0x10   :  { %356 = vmatprep.subr.bf16.mxu0 %v436_v8  ;;  %416 = vmatprep.subr.bf16.mxu1 %v436_v8  ;;  %v62_v57 = vpack.c.bf16 %v46_v53, %v44_v52  ;;  %v29_v59 = vld [vmem:[%s678_s0 + $0x70] sm:$0xff]  ;;  %v43_v60 = vld [vmem:[%s678_s0 + $0xe0] sm:$0xff] }
  0x11   :  { %v45_v61 = vld [vmem:[%s678_s0 + $0xf0] sm:$0xff]  ;;  %v53_v62 = vpack.c.bf16 %v29_v59, %v27_v58  ;;  %v611_v2 = vld [vmem:[%s679_s2] ss:$0 sm:$0xff] }
  0x12   :  { %v61_v63 = vpack.c.bf16 %v45_v61, %v43_v60 }
  0x13   :  { %357 = vmatpush3.bf16.msra.mxu0 %v437_v9  ;;  %424 = vmatpush3.bf16.msra.mxu1 %v437_v9 }
  0x14   :  { %358 = vmatprep.subr.bf16.mxu0 %v438_v10  ;;  %417 = vmatprep.subr.bf16.mxu1 %v438_v10 }
  0x17   :  { %359 = vmatpush3.bf16.msra.mxu0 %v439_v17  ;;  %425 = vmatpush3.bf16.msra.mxu1 %v439_v17 }
  0x18   :  { %360 = vmatprep.subr.bf16.mxu0 %v440_v18  ;;  %418 = vmatprep.subr.bf16.mxu1 %v440_v18 }
  0x1b   :  { %361 = vmatpush3.bf16.msra.mxu0 %v441_v19  ;;  %426 = vmatpush3.bf16.msra.mxu1 %v441_v19 }
  0x1c   :  { %362 = vmatprep.subr.bf16.mxu0 %v442_v20  ;;  %419 = vmatprep.subr.bf16.mxu1 %v442_v20 }
  0x1f   :  { %363 = vmatpush3.bf16.msra.mxu0 %v443_v21  ;;  %427 = vmatpush3.bf16.msra.mxu1 %v443_v21 }
  0x22   :  { %231 = vmatmul.mubr.bf16.vlgmr.msra.gmra.mrb[0].mxu0 %v47_v30  ;;  %263 = vmatmul.mubr.bf16.vlgmr.msra.gmra.mrb[0].mxu1 %v55_v31 }
  0x23   :  { %238 = vmatprep.mubr.bf16.mxu0 %v50_v32  ;;  %270 = vmatprep.mubr.bf16.mxu1 %v58_v33 }
  0x2a   :  { %239 = vmatmul.mubr.bf16.gmra.mrb[4].mxu0 %v49_v42  ;;  %271 = vmatmul.mubr.bf16.gmra.mrb[4].mxu1 %v57_v43 }
  0x2b   :  { %246 = vmatprep.mubr.bf16.mxu0 %v52_v44  ;;  %278 = vmatprep.mubr.bf16.mxu1 %v60_v45 }
  0x32   :  { %247 = vmatmul.mubr.bf16.gmra.mrb[8].mxu0 %v51_v54  ;;  %279 = vmatmul.mubr.bf16.gmra.mrb[8].mxu1 %v59_v55 }
  0x33   :  { %254 = vmatprep.mubr.bf16.mxu0 %v54_v56  ;;  %286 = vmatprep.mubr.bf16.mxu1 %v62_v57 }
  0x3a   :  { %255 = vmatmul.mubr.bf16.gmra.mrb[12].mxu0 %v53_v62  ;;  %287 = vmatmul.mubr.bf16.gmra.mrb[12].mxu1 %v61_v63 }
  0xf5   :  { %v364_v0 = vpop.f32.mrb[0].mxu0  ;;  %v388_v1 = vpop.f32.mrb[0].mxu1 }
  0xf6   :  { %v365_v3 = vpop.f32.mrb[1].mxu0  ;;  %v389_v4 = vpop.f32.mrb[1].mxu1 }
  0xf7   :  { %v366_v5 = vadd.f32 %v365_v3, %v364_v0  ;;  %v390_v6 = vadd.f32 %v389_v4, %v388_v1  ;;  %v367_v7 = vpop.f32.mrb[2].mxu0  ;;  %v391_v8 = vpop.f32.mrb[2].mxu1 }
  0xf8   :  { %v368_v9 = vpop.f32.mrb[3].mxu0  ;;  %v392_v10 = vpop.f32.mrb[3].mxu1 }
  0xf9   :  { %v233_v11 = vadd.f32 %v366_v5, %v611_v2  ;;  %v265_v12 = vadd.f32 %v390_v6, %v611_v2  ;;  %v369_v13 = vadd.f32 %v368_v9, %v367_v7  ;;  %v393_v14 = vadd.f32 %v392_v10, %v391_v8 }
  0xfb   :  { %v295_v15 = vmax.f32 %v233_v11, 0.0  ;;  %v303_v16 = vmax.f32 %v265_v12, 0.0  ;;  %v236_v17 = vadd.f32 %v369_v13, %v611_v2  ;;  %v268_v18 = vadd.f32 %v393_v14, %v611_v2 }
  0xfd   :  { %311 = vst [vmem:[%s680_s3] sm:$0xff] %v295_v15  ;;  %319 = vst [vmem:[%s680_s3 + $0x40] sm:$0xff] %v303_v16  ;;  %v296_v19 = vmax.f32 %v236_v17, 0.0  ;;  %v304_v20 = vmax.f32 %v268_v18, 0.0  ;;  %v370_v21 = vpop.f32.mrb[4].mxu0  ;;  %v394_v22 = vpop.f32.mrb[4].mxu1 }
  0xfe   :  { %v371_v23 = vpop.f32.mrb[5].mxu0  ;;  %v395_v24 = vpop.f32.mrb[5].mxu1 }
  0xff   :  { %312 = vst [vmem:[%s680_s3 + $0x8] sm:$0xff] %v296_v19  ;;  %320 = vst [vmem:[%s680_s3 + $0x48] sm:$0xff] %v304_v20  ;;  %v372_v25 = vadd.f32 %v371_v23, %v370_v21  ;;  %v396_v26 = vadd.f32 %v395_v24, %v394_v22  ;;  %v373_v27 = vpop.f32.mrb[6].mxu0  ;;  %v397_v28 = vpop.f32.mrb[6].mxu1 }
 0x100   :  { %v374_v29 = vpop.f32.mrb[7].mxu0  ;;  %v398_v30 = vpop.f32.mrb[7].mxu1 }
 0x101   :  { %v241_v31 = vadd.f32 %v372_v25, %v611_v2  ;;  %v273_v32 = vadd.f32 %v396_v26, %v611_v2  ;;  %v375_v33 = vadd.f32 %v374_v29, %v373_v27  ;;  %v399_v34 = vadd.f32 %v398_v30, %v397_v28 }
 0x103   :  { %v297_v35 = vmax.f32 %v241_v31, 0.0  ;;  %v305_v36 = vmax.f32 %v273_v32, 0.0  ;;  %v244_v37 = vadd.f32 %v375_v33, %v611_v2  ;;  %v276_v38 = vadd.f32 %v399_v34, %v611_v2 }
 0x105   :  { %313 = vst [vmem:[%s680_s3 + $0x10] sm:$0xff] %v297_v35  ;;  %321 = vst [vmem:[%s680_s3 + $0x50] sm:$0xff] %v305_v36  ;;  %v298_v39 = vmax.f32 %v244_v37, 0.0  ;;  %v306_v40 = vmax.f32 %v276_v38, 0.0  ;;  %v376_v41 = vpop.f32.mrb[8].mxu0  ;;  %v400_v42 = vpop.f32.mrb[8].mxu1 }
 0x106   :  { %v377_v43 = vpop.f32.mrb[9].mxu0  ;;  %v401_v44 = vpop.f32.mrb[9].mxu1 }
 0x107   :  { %314 = vst [vmem:[%s680_s3 + $0x18] sm:$0xff] %v298_v39  ;;  %322 = vst [vmem:[%s680_s3 + $0x58] sm:$0xff] %v306_v40  ;;  %v378_v45 = vadd.f32 %v377_v43, %v376_v41  ;;  %v402_v46 = vadd.f32 %v401_v44, %v400_v42  ;;  %v379_v47 = vpop.f32.mrb[10].mxu0  ;;  %v403_v48 = vpop.f32.mrb[10].mxu1 }
 0x108   :  { %v380_v49 = vpop.f32.mrb[11].mxu0  ;;  %v404_v50 = vpop.f32.mrb[11].mxu1 }
 0x109   :  { %v249_v51 = vadd.f32 %v378_v45, %v611_v2  ;;  %v281_v52 = vadd.f32 %v402_v46, %v611_v2  ;;  %v381_v53 = vadd.f32 %v380_v49, %v379_v47  ;;  %v405_v54 = vadd.f32 %v404_v50, %v403_v48 }
 0x10b   :  { %v299_v55 = vmax.f32 %v249_v51, 0.0  ;;  %v307_v56 = vmax.f32 %v281_v52, 0.0  ;;  %v252_v57 = vadd.f32 %v381_v53, %v611_v2  ;;  %v284_v58 = vadd.f32 %v405_v54, %v611_v2 }
 0x10d   :  { %315 = vst [vmem:[%s680_s3 + $0x20] sm:$0xff] %v299_v55  ;;  %323 = vst [vmem:[%s680_s3 + $0x60] sm:$0xff] %v307_v56  ;;  %v300_v59 = vmax.f32 %v252_v57, 0.0  ;;  %v308_v60 = vmax.f32 %v284_v58, 0.0  ;;  %v382_v61 = vpop.f32.mrb[12].mxu0  ;;  %v406_v62 = vpop.f32.mrb[12].mxu1 }
 0x10e   :  { %v383_v63 = vpop.f32.mrb[13].mxu0  ;;  %v407_v0 = vpop.f32.mrb[13].mxu1 }
 0x10f   :  { %316 = vst [vmem:[%s680_s3 + $0x28] sm:$0xff] %v300_v59  ;;  %324 = vst [vmem:[%s680_s3 + $0x68] sm:$0xff] %v308_v60  ;;  %v384_v1 = vadd.f32 %v383_v63, %v382_v61  ;;  %v408_v3 = vadd.f32 %v407_v0, %v406_v62  ;;  %v385_v4 = vpop.f32.mrb[14].mxu0  ;;  %v409_v5 = vpop.f32.mrb[14].mxu1 }
 0x110   :  { %v386_v6 = vpop.f32.mrb[15].mxu0  ;;  %v410_v7 = vpop.f32.mrb[15].mxu1 }
 0x111   :  { %v257_v8 = vadd.f32 %v384_v1, %v611_v2  ;;  %v289_v9 = vadd.f32 %v408_v3, %v611_v2  ;;  %v387_v10 = vadd.f32 %v386_v6, %v385_v4  ;;  %v411_v11 = vadd.f32 %v410_v7, %v409_v5 }
 0x113   :  { %v301_v12 = vmax.f32 %v257_v8, 0.0  ;;  %v309_v13 = vmax.f32 %v289_v9, 0.0  ;;  %v260_v14 = vadd.f32 %v387_v10, %v611_v2  ;;  %v292_v15 = vadd.f32 %v411_v11, %v611_v2 }
 0x115   :  { %317 = vst [vmem:[%s680_s3 + $0x30] sm:$0xff] %v301_v12  ;;  %325 = vst [vmem:[%s680_s3 + $0x70] sm:$0xff] %v309_v13  ;;  %v302_v16 = vmax.f32 %v260_v14, 0.0  ;;  %v310_v17 = vmax.f32 %v292_v15, 0.0 }
 0x117   :  { %318 = vst [vmem:[%s680_s3 + $0x38] sm:$0xff] %v302_v16  ;;  %326 = vst [vmem:[%s680_s3 + $0x78] sm:$0xff] %v310_v17 }

// kernel: noisy_cnn_dqn_forward.6
= control target key start
LH: loop header
LB: loop body
LE: loop exit
PB: predicated region body
PF: predicated region fallthrough
CT: control target
= control target key end

     0   :  { %vm1087_vm0 = vmmov 0   ;;  %s1357_s1 = inlined_call_operand.vmem [shape: bf16[1152,128], index: 1, kind: input, shape index: {}]   ;;  %s1358_s0 = inlined_call_operand.vmem [shape: f32[8,1152], index: 0, kind: input, shape index: {}]   ;;  %s1359_s2 = inlined_call_operand.vmem [shape: f32[1,128], index: 2, kind: input, shape index: {}]   ;;  %s1360_s3 = inlined_call_operand.vmem [shape: f32[8,128], index: 3, kind: output, shape index: {}]  }
   0x1   :  { %v1014_v0 = vld [vmem:[%s1357_s1 + $0x40] sm:$0xff]   ;;  %v1018_v4 = vld [vmem:[%s1357_s1 + $0x48] sm:$0xff]   ;;  %v1022_v8 = vld [vmem:[%s1357_s1 + $0x50] sm:$0xff]  }
   0x2   :  { %v1015_v1 = vld [vmem:[%s1357_s1] sm:$0xff]   ;;  %895 = vmatprep.subr.bf16.mxu0 %v1014_v0  ;;  %v1019_v5 = vld [vmem:[%s1357_s1 + $0x8] sm:$0xff]   ;;  %v1023_v9 = vld [vmem:[%s1357_s1 + $0x10] sm:$0xff]  }
   0x3   :  { %v1016_v2 = vld [vmem:[%s1357_s1 + $0xc0] sm:$0xff]   ;;  %896 = vmatpush3.bf16.msra.mxu0 %v1015_v1  ;;  %v1020_v6 = vld [vmem:[%s1357_s1 + $0xc8] sm:$0xff]   ;;  %v1024_v10 = vld [vmem:[%s1357_s1 + $0xd0] sm:$0xff]  }
   0x4   :  { %v1017_v3 = vld [vmem:[%s1357_s1 + $0x80] sm:$0xff]   ;;  %917 = vmatprep.subr.bf16.mxu1 %v1016_v2  ;;  %897 = vmatprep.subr.bf16.mxu0 %v1018_v4  ;;  %v1021_v7 = vld [vmem:[%s1357_s1 + $0x88] sm:$0xff]   ;;  %v1025_v11 = vld [vmem:[%s1357_s1 + $0x90] sm:$0xff]  }
   0x5   :  { %918 = vmatpush3.bf16.msra.mxu1 %v1017_v3  ;;  %v1026_v12 = vld [vmem:[%s1357_s1 + $0x58] sm:$0xff]   ;;  %v1030_v16 = vld [vmem:[%s1357_s1 + $0x60] sm:$0xff]   ;;  %v1034_v20 = vld [vmem:[%s1357_s1 + $0x68] sm:$0xff]  }
   0x6   :  { %919 = vmatprep.subr.bf16.mxu1 %v1020_v6  ;;  %v1027_v13 = vld [vmem:[%s1357_s1 + $0x18] sm:$0xff]   ;;  %v1031_v17 = vld [vmem:[%s1357_s1 + $0x20] sm:$0xff]   ;;  %v1035_v21 = vld [vmem:[%s1357_s1 + $0x28] sm:$0xff]  }
   0x7   :  { %898 = vmatpush3.bf16.msra.mxu0 %v1019_v5  ;;  %v1028_v14 = vld [vmem:[%s1357_s1 + $0xd8] sm:$0xff]   ;;  %v1032_v18 = vld [vmem:[%s1357_s1 + $0xe0] sm:$0xff]   ;;  %v1036_v22 = vld [vmem:[%s1357_s1 + $0xe8] sm:$0xff]  }
   0x8   :  { %899 = vmatprep.subr.bf16.mxu0 %v1022_v8  ;;  %v1029_v15 = vld [vmem:[%s1357_s1 + $0x98] sm:$0xff]   ;;  %v1033_v19 = vld [vmem:[%s1357_s1 + $0xa0] sm:$0xff]   ;;  %v1037_v23 = vld [vmem:[%s1357_s1 + $0xa8] sm:$0xff]  }
   0x9   :  { %920 = vmatpush3.bf16.msra.mxu1 %v1021_v7  ;;  %v1038_v24 = vld [vmem:[%s1357_s1 + $0x70] sm:$0xff]   ;;  %v1042_v28 = vld [vmem:[%s1357_s1 + $0x78] sm:$0xff]   ;;  %v16_v31 = vld [vmem:[%s1358_s0 + $0x8] sm:$0xff] }
   0xa   :  { %921 = vmatprep.subr.bf16.mxu1 %v1024_v10  ;;  %v1039_v25 = vld [vmem:[%s1357_s1 + $0x30] sm:$0xff]   ;;  %v1043_v29 = vld [vmem:[%s1357_s1 + $0x38] sm:$0xff]   ;;  %v25_v32 = vpack.c.bf16 %v16_v31, %v16_v31  ;;  %v15_v34 = vld [vmem:[%s1358_s0] sm:$0xff] }
   0xb   :  { %900 = vmatpush3.bf16.msra.mxu0 %v1023_v9  ;;  %v1040_v26 = vld [vmem:[%s1357_s1 + $0xf0] sm:$0xff]   ;;  %v1044_v30 = vld [vmem:[%s1357_s1 + $0xf8] sm:$0xff]   ;;  %v24_v35 = vpack.c.bf16 %v15_v34, %v15_v34  ;;  %v1046_v36 = vld [vmem:[%s1357_s1 + $0x140] sm:$0xff]  }
   0xc   :  { %901 = vmatprep.subr.bf16.mxu0 %v1026_v12  ;;  %v1041_v27 = vld [vmem:[%s1357_s1 + $0xb0] sm:$0xff]   ;;  %v1045_v33 = vld [vmem:[%s1357_s1 + $0xb8] sm:$0xff]   ;;  %648 = vmatprep.mubr.bf16.mxu0 %v25_v32  ;;  %v1047_v39 = vld [vmem:[%s1357_s1 + $0x100] sm:$0xff]   ;;  %v1086_v12 = vmov 0.0  }
   0xd   :  { %922 = vmatpush3.bf16.msra.mxu1 %v1025_v11  ;;  %v18_v37 = vld [vmem:[%s1358_s0 + $0x18] sm:$0xff]  ;;  %v17_v40 = vld [vmem:[%s1358_s0 + $0x10] sm:$0xff]  ;;  %v1048_v42 = vld [vmem:[%s1357_s1 + $0x1c0] sm:$0xff]  }
   0xe   :  { %923 = vmatprep.subr.bf16.mxu1 %v1028_v14  ;;  %v27_v38 = vpack.c.bf16 %v18_v37, %v18_v37  ;;  %v26_v41 = vpack.c.bf16 %v17_v40, %v17_v40  ;;  %v1049_v43 = vld [vmem:[%s1357_s1 + $0x180] sm:$0xff]   ;;  %v1050_v44 = vld [vmem:[%s1357_s1 + $0x148] sm:$0xff]   ;;  %v1054_v48 = vld [vmem:[%s1357_s1 + $0x150] sm:$0xff]  }
   0xf   :  { %902 = vmatpush3.bf16.msra.mxu0 %v1027_v13  ;;  %v1051_v45 = vld [vmem:[%s1357_s1 + $0x108] sm:$0xff]   ;;  %v1055_v49 = vld [vmem:[%s1357_s1 + $0x110] sm:$0xff]   ;;  %v1058_v52 = vld [vmem:[%s1357_s1 + $0x158] sm:$0xff]  }
  0x10   :  { %903 = vmatprep.subr.bf16.mxu0 %v1030_v16  ;;  %688 = vmatprep.mubr.bf16.mxu1 %v27_v38  ;;  %v1052_v46 = vld [vmem:[%s1357_s1 + $0x1c8] sm:$0xff]   ;;  %v1056_v50 = vld [vmem:[%s1357_s1 + $0x1d0] sm:$0xff]   ;;  %v1059_v53 = vld [vmem:[%s1357_s1 + $0x118] sm:$0xff]  }
  0x11   :  { %924 = vmatpush3.bf16.msra.mxu1 %v1029_v15  ;;  %v1053_v47 = vld [vmem:[%s1357_s1 + $0x188] sm:$0xff]   ;;  %v1057_v51 = vld [vmem:[%s1357_s1 + $0x190] sm:$0xff]   ;;  %v1060_v54 = vld [vmem:[%s1357_s1 + $0x1d8] sm:$0xff]  }
  0x12   :  { %925 = vmatprep.subr.bf16.mxu1 %v1032_v18  ;;  %v1061_v55 = vld [vmem:[%s1357_s1 + $0x198] sm:$0xff]   ;;  %v1062_v56 = vld [vmem:[%s1357_s1 + $0x160] sm:$0xff]   ;;  %v1066_v60 = vld [vmem:[%s1357_s1 + $0x168] sm:$0xff]  }
  0x13   :  { %904 = vmatpush3.bf16.msra.mxu0 %v1031_v17  ;;  %v1063_v57 = vld [vmem:[%s1357_s1 + $0x120] sm:$0xff]   ;;  %v1067_v61 = vld [vmem:[%s1357_s1 + $0x128] sm:$0xff]   ;;  %v1070_v0 = vld [vmem:[%s1357_s1 + $0x170] sm:$0xff]  }
  0x14   :  { %905 = vmatprep.subr.bf16.mxu0 %v1034_v20  ;;  %v1064_v58 = vld [vmem:[%s1357_s1 + $0x1e0] sm:$0xff]   ;;  %v1068_v62 = vld [vmem:[%s1357_s1 + $0x1e8] sm:$0xff]   ;;  %v1071_v1 = vld [vmem:[%s1357_s1 + $0x130] sm:$0xff]  }
  0x15   :  { %926 = vmatpush3.bf16.msra.mxu1 %v1033_v19  ;;  %v1065_v59 = vld [vmem:[%s1357_s1 + $0x1a0] sm:$0xff]   ;;  %v1069_v63 = vld [vmem:[%s1357_s1 + $0x1a8] sm:$0xff]   ;;  %v1072_v2 = vld [vmem:[%s1357_s1 + $0x1f0] sm:$0xff]  }
  0x16   :  { %927 = vmatprep.subr.bf16.mxu1 %v1036_v22  ;;  %v1073_v3 = vld [vmem:[%s1357_s1 + $0x1b0] sm:$0xff]   ;;  %v1074_v4 = vld [vmem:[%s1357_s1 + $0x178] sm:$0xff]   ;;  %v20_v7 = vld [vmem:[%s1358_s0 + $0x28] sm:$0xff] }
  0x17   :  { %906 = vmatpush3.bf16.msra.mxu0 %v1035_v21  ;;  %v1075_v5 = vld [vmem:[%s1357_s1 + $0x138] sm:$0xff]   ;;  %v29_v8 = vpack.c.bf16 %v20_v7, %v20_v7  ;;  %v19_v10 = vld [vmem:[%s1358_s0 + $0x20] sm:$0xff]  ;;  %v21_v16 = vld [vmem:[%s1358_s0 + $0x30] sm:$0xff] }
  0x18   :  { %907 = vmatprep.subr.bf16.mxu0 %v1038_v24  ;;  %v1076_v6 = vld [vmem:[%s1357_s1 + $0x1f8] sm:$0xff]   ;;  %v28_v11 = vpack.c.bf16 %v19_v10, %v19_v10  ;;  %v1078_v15 = vld [vmem:[%s1357_s1 + $0x200] sm:$0xff]   ;;  %v30_v17 = vpack.c.bf16 %v21_v16, %v21_v16  ;;  %v1079_v18 = vld [vmem:[%s1357_s1 + $0x208] sm:$0xff]  }
  0x19   :  { %928 = vmatpush3.bf16.msra.mxu1 %v1037_v23  ;;  %v1077_v9 = vld [vmem:[%s1357_s1 + $0x1b8] sm:$0xff]   ;;  %v1080_v19 = vld [vmem:[%s1357_s1 + $0x210] sm:$0xff]   ;;  %v1082_v21 = vld [vmem:[%s1357_s1 + $0x220] sm:$0xff]  }
  0x1a   :  { %929 = vmatprep.subr.bf16.mxu1 %v1040_v26  ;;  %v22_v13 = vld [vmem:[%s1358_s0 + $0x38] sm:$0xff]  ;;  %v1083_v22 = vld [vmem:[%s1357_s1 + $0x228] sm:$0xff]   ;;  %v1084_v23 = vld [vmem:[%s1357_s1 + $0x230] sm:$0xff]  }
  0x1b   :  { %908 = vmatpush3.bf16.msra.mxu0 %v1039_v25  ;;  %v31_v14 = vpack.c.bf16 %v22_v13, %v22_v13  ;;  %v1081_v20 = vld [vmem:[%s1357_s1 + $0x218] sm:$0xff]   ;;  %v23_v25 = vld [vmem:[%s1358_s0 + $0x40] sm:$0xff] }
  0x1c   :  { %909 = vmatprep.subr.bf16.mxu0 %v1042_v28  ;;  %v1085_v24 = vld [vmem:[%s1357_s1 + $0x238] sm:$0xff]   ;;  %v32_v26 = vpack.c.bf16 %v23_v25, %v23_v25  ;;  %v822_v28 = vld [vmem:[%s1359_s2] ss:$0 sm:$0xff] }
  0x1d   :  { %930 = vmatpush3.bf16.msra.mxu1 %v1041_v27 }
  0x1e   :  { %931 = vmatprep.subr.bf16.mxu1 %v1044_v30 }
  0x1f   :  { %910 = vmatpush3.bf16.msra.mxu0 %v1043_v29 }
  0x20   :  { %939 = vmatprep.subr.bf16.mxu0 %v1046_v36 }
  0x21   :  { %932 = vmatpush3.bf16.msra.mxu1 %v1045_v33 }
  0x22   :  { %649 = vmatmul.mubr.bf16.vlgmr.msra.gmra.mrb[0].mxu0 %v24_v35  ;;  %961 = vmatprep.subr.bf16.mxu1 %v1048_v42 }
  0x23   :  { %940 = vmatpush3.bf16.msra.mxu0 %v1047_v39  ;;  %728 = vmatprep.mubr.bf16.mxu0 %v29_v8 }
  0x24   :  { %689 = vmatmul.mubr.bf16.vlgmr.msra.gmra.mrb[0].mxu1 %v26_v41  ;;  %941 = vmatprep.subr.bf16.mxu0 %v1050_v44 }
  0x25   :  { %962 = vmatpush3.bf16.msra.mxu1 %v1049_v43  ;;  %768 = vmatprep.mubr.bf16.mxu1 %v31_v14 }
  0x26   :  { %963 = vmatprep.subr.bf16.mxu1 %v1052_v46 }
  0x27   :  { %942 = vmatpush3.bf16.msra.mxu0 %v1051_v45 }
  0x28   :  { %943 = vmatprep.subr.bf16.mxu0 %v1054_v48 }
  0x29   :  { %964 = vmatpush3.bf16.msra.mxu1 %v1053_v47 }
  0x2a   :  { %965 = vmatprep.subr.bf16.mxu1 %v1056_v50 }
  0x2b   :  { %944 = vmatpush3.bf16.msra.mxu0 %v1055_v49 }
  0x2c   :  { %945 = vmatprep.subr.bf16.mxu0 %v1058_v52 }
  0x2d   :  { %966 = vmatpush3.bf16.msra.mxu1 %v1057_v51 }
  0x2e   :  { %967 = vmatprep.subr.bf16.mxu1 %v1060_v54 }
  0x2f   :  { %946 = vmatpush3.bf16.msra.mxu0 %v1059_v53 }
  0x30   :  { %947 = vmatprep.subr.bf16.mxu0 %v1062_v56 }
  0x31   :  { %968 = vmatpush3.bf16.msra.mxu1 %v1061_v55 }
  0x32   :  { %969 = vmatprep.subr.bf16.mxu1 %v1064_v58 }
  0x33   :  { %948 = vmatpush3.bf16.msra.mxu0 %v1063_v57 }
  0x34   :  { %949 = vmatprep.subr.bf16.mxu0 %v1066_v60 }
  0x35   :  { %970 = vmatpush3.bf16.msra.mxu1 %v1065_v59 }
  0x36   :  { %971 = vmatprep.subr.bf16.mxu1 %v1068_v62 }
  0x37   :  { %950 = vmatpush3.bf16.msra.mxu0 %v1067_v61 }
  0x38   :  { %951 = vmatprep.subr.bf16.mxu0 %v1070_v0 }
  0x39   :  { %972 = vmatpush3.bf16.msra.mxu1 %v1069_v63 }
  0x3a   :  { %973 = vmatprep.subr.bf16.mxu1 %v1072_v2 }
  0x3b   :  { %952 = vmatpush3.bf16.msra.mxu0 %v1071_v1 }
  0x3c   :  { %953 = vmatprep.subr.bf16.mxu0 %v1074_v4 }
  0x3d   :  { %974 = vmatpush3.bf16.msra.mxu1 %v1073_v3 }
  0x3e   :  { %975 = vmatprep.subr.bf16.mxu1 %v1076_v6 }
  0x3f   :  { %954 = vmatpush3.bf16.msra.mxu0 %v1075_v5 }
  0x40   :  { %992 = vmatprep.subr.bf16.mxu0 %v1086_v12 }
  0x41   :  { %976 = vmatpush3.bf16.msra.mxu1 %v1077_v9 }
  0x42   :  { %729 = vmatmul.mubr.bf16.vlgmr.msra.gmra.mrb[4].mxu0 %v28_v11 }
  0x43   :  { %993 = vmatpush3.bf16.msra.mxu0 %v1078_v15  ;;  %1008 = vmatprep.mubr.msk.bf16.mxu0 %vm1087_vm0, %v1086_v12 }
  0x44   :  { %769 = vmatmul.mubr.bf16.vlgmr.msra.gmra.mrb[4].mxu1 %v30_v17  ;;  %994 = vmatprep.subr.bf16.mxu0 %v1086_v12 }
  0x47   :  { %995 = vmatpush3.bf16.msra.mxu0 %v1079_v18 }
  0x48   :  { %996 = vmatprep.subr.bf16.mxu0 %v1086_v12 }
  0x4b   :  { %997 = vmatpush3.bf16.msra.mxu0 %v1080_v19 }
  0x4c   :  { %998 = vmatprep.subr.bf16.mxu0 %v1086_v12 }
  0x4f   :  { %999 = vmatpush3.bf16.msra.mxu0 %v1081_v20 }
  0x50   :  { %1000 = vmatprep.subr.bf16.mxu0 %v1086_v12 }
  0x53   :  { %1001 = vmatpush3.bf16.msra.mxu0 %v1082_v21 }
  0x54   :  { %1002 = vmatprep.subr.bf16.mxu0 %v1086_v12 }
  0x57   :  { %1003 = vmatpush3.bf16.msra.mxu0 %v1083_v22 }
  0x58   :  { %1004 = vmatprep.subr.bf16.mxu0 %v1086_v12 }
  0x5b   :  { %1005 = vmatpush3.bf16.msra.mxu0 %v1084_v23 }
  0x5c   :  { %1006 = vmatprep.subr.bf16.mxu0 %v1086_v12 }
  0x5f   :  { %1007 = vmatpush3.bf16.msra.mxu0 %v1085_v24 }
  0x62   :  { %1009 = vmatmul.mubr.bf16.vlgmr.msra.gmra.mrb[8].mxu0 %v32_v26 }
  0xf5   :  { %v911_v27 = vpop.f32.mrb[0].mxu0 }
  0xf6   :  { %v912_v29 = vpop.f32.mrb[1].mxu0 }
  0xf7   :  { %v913_v30 = vadd.f32 %v912_v29, %v911_v27  ;;  %v914_v31 = vpop.f32.mrb[2].mxu0  ;;  %v933_v32 = vpop.f32.mrb[0].mxu1 }
  0xf8   :  { %v915_v33 = vpop.f32.mrb[3].mxu0  ;;  %v934_v35 = vpop.f32.mrb[1].mxu1 }
  0xf9   :  { %v651_v34 = vadd.f32 %v913_v30, %v822_v28  ;;  %v935_v36 = vadd.f32 %v934_v35, %v933_v32  ;;  %v936_v37 = vpop.f32.mrb[2].mxu1 }
  0xfa   :  { %v937_v38 = vpop.f32.mrb[3].mxu1 }
  0xfb   :  { %v691_v39 = vadd.f32 %v935_v36, %v651_v34 }
 0x115   :  { %v955_v40 = vpop.f32.mrb[4].mxu0 }
 0x116   :  { %v956_v41 = vpop.f32.mrb[5].mxu0 }
 0x117   :  { %v957_v42 = vadd.f32 %v956_v41, %v955_v40  ;;  %v958_v43 = vpop.f32.mrb[6].mxu0  ;;  %v977_v44 = vpop.f32.mrb[4].mxu1 }
 0x118   :  { %v959_v45 = vpop.f32.mrb[7].mxu0  ;;  %v978_v46 = vpop.f32.mrb[5].mxu1 }
 0x119   :  { %v731_v47 = vadd.f32 %v957_v42, %v691_v39  ;;  %v979_v48 = vadd.f32 %v978_v46, %v977_v44  ;;  %v980_v49 = vpop.f32.mrb[6].mxu1 }
 0x11a   :  { %v981_v50 = vpop.f32.mrb[7].mxu1 }
 0x11b   :  { %v771_v51 = vadd.f32 %v979_v48, %v731_v47 }
 0x135   :  { %v810_v52 = vpop.f32.mrb[8].mxu0 }
 0x136   :  { %v811_v53 = vadd.f32 %v810_v52, %v771_v51  ;;  %v1010_v54 = vpop.f32.mrb[9].mxu0 }
 0x137   :  { %v813_v55 = vpop.f32.mrb[10].mxu0 }
 0x138   :  { %v816_v56 = vmax.f32 %v811_v53, 0.0  ;;  %v1011_v57 = vpop.f32.mrb[11].mxu0 }
 0x13a   :  { %817 = vst [vmem:[%s1360_s3] sm:$0xff] %v816_v56 }

// kernel: noisy_cnn_dqn_forward.5
= control target key start
LH: loop header
LB: loop body
LE: loop exit
PB: predicated region body
PF: predicated region fallthrough
CT: control target
= control target key end

     0   :  { %s2561_s1 = inlined_call_operand.vmem [shape: bf16[2048,128], index: 1, kind: input, shape index: {}]   ;;  %s2562_s0 = inlined_call_operand.vmem [shape: f32[24,2048], index: 0, kind: input, shape index: {}]   ;;  %s2563_s2 = inlined_call_operand.vmem [shape: f32[1,128], index: 2, kind: input, shape index: {}]   ;;  %s2564_s3 = inlined_call_operand.vmem [shape: f32[24,128], index: 3, kind: output, shape index: {}]  }
   0x1   :  { %v1873_v0 = vld [vmem:[%s2561_s1 + $0x40] sm:$0xff]   ;;  %v1877_v4 = vld [vmem:[%s2561_s1 + $0x48] sm:$0xff]   ;;  %v1881_v8 = vld [vmem:[%s2561_s1 + $0x50] sm:$0xff]  }
   0x2   :  { %v1874_v1 = vld [vmem:[%s2561_s1 + $0xc0] sm:$0xff]   ;;  %1649 = vmatprep.subr.bf16.mxu0 %v1873_v0  ;;  %v1878_v5 = vld [vmem:[%s2561_s1 + $0xc8] sm:$0xff]   ;;  %v1882_v9 = vld [vmem:[%s2561_s1 + $0xd0] sm:$0xff]  }
   0x3   :  { %v1875_v2 = vld [vmem:[%s2561_s1] sm:$0xff]   ;;  %1677 = vmatprep.subr.bf16.mxu1 %v1874_v1  ;;  %v1879_v6 = vld [vmem:[%s2561_s1 + $0x8] sm:$0xff]   ;;  %v1883_v10 = vld [vmem:[%s2561_s1 + $0x10] sm:$0xff]  }
   0x4   :  { %v1876_v3 = vld [vmem:[%s2561_s1 + $0x80] sm:$0xff]   ;;  %1650 = vmatpush3.bf16.msra.mxu0 %v1875_v2  ;;  %v1880_v7 = vld [vmem:[%s2561_s1 + $0x88] sm:$0xff]   ;;  %v1884_v11 = vld [vmem:[%s2561_s1 + $0x90] sm:$0xff]  }
   0x5   :  { %1678 = vmatpush3.bf16.msra.mxu1 %v1876_v3  ;;  %1651 = vmatprep.subr.bf16.mxu0 %v1877_v4  ;;  %v1885_v12 = vld [vmem:[%s2561_s1 + $0x58] sm:$0xff]   ;;  %v1889_v16 = vld [vmem:[%s2561_s1 + $0x60] sm:$0xff]   ;;  %v1893_v20 = vld [vmem:[%s2561_s1 + $0x68] sm:$0xff]  }
   0x6   :  { %1679 = vmatprep.subr.bf16.mxu1 %v1878_v5  ;;  %v1886_v13 = vld [vmem:[%s2561_s1 + $0xd8] sm:$0xff]   ;;  %v1890_v17 = vld [vmem:[%s2561_s1 + $0xe0] sm:$0xff]   ;;  %v1894_v21 = vld [vmem:[%s2561_s1 + $0xe8] sm:$0xff]  }
   0x7   :  { %v1887_v14 = vld [vmem:[%s2561_s1 + $0x18] sm:$0xff]   ;;  %v1891_v18 = vld [vmem:[%s2561_s1 + $0x20] sm:$0xff]   ;;  %v1895_v22 = vld [vmem:[%s2561_s1 + $0x28] sm:$0xff]  }
   0x8   :  { %1652 = vmatpush3.bf16.msra.mxu0 %v1879_v6  ;;  %v1888_v15 = vld [vmem:[%s2561_s1 + $0x98] sm:$0xff]   ;;  %v1892_v19 = vld [vmem:[%s2561_s1 + $0xa0] sm:$0xff]   ;;  %v1896_v23 = vld [vmem:[%s2561_s1 + $0xa8] sm:$0xff]  }
   0x9   :  { %1680 = vmatpush3.bf16.msra.mxu1 %v1880_v7  ;;  %1653 = vmatprep.subr.bf16.mxu0 %v1881_v8  ;;  %v1897_v24 = vld [vmem:[%s2561_s1 + $0x70] sm:$0xff]   ;;  %v1901_v28 = vld [vmem:[%s2561_s1 + $0x78] sm:$0xff]   ;;  %v16_v32 = vld [vmem:[%s2562_s0 + $0x8] sm:$0xff] }
   0xa   :  { %1681 = vmatprep.subr.bf16.mxu1 %v1882_v9  ;;  %v1898_v25 = vld [vmem:[%s2561_s1 + $0xf0] sm:$0xff]   ;;  %v1902_v29 = vld [vmem:[%s2561_s1 + $0xf8] sm:$0xff]   ;;  %v32_v33 = vld [vmem:[%s2562_s0 + $0x88] sm:$0xff] }
   0xb   :  { %v1899_v26 = vld [vmem:[%s2561_s1 + $0x30] sm:$0xff]   ;;  %v1903_v30 = vld [vmem:[%s2561_s1 + $0x38] sm:$0xff]   ;;  %v64_v35 = vpack.c.bf16 %v32_v33, %v16_v32  ;;  %v15_v37 = vld [vmem:[%s2562_s0] sm:$0xff] }
   0xc   :  { %1654 = vmatpush3.bf16.msra.mxu0 %v1883_v10  ;;  %v1900_v27 = vld [vmem:[%s2561_s1 + $0xb0] sm:$0xff]   ;;  %v1904_v31 = vld [vmem:[%s2561_s1 + $0xb8] sm:$0xff]   ;;  %v31_v38 = vld [vmem:[%s2562_s0 + $0x80] sm:$0xff] }
   0xd   :  { %1682 = vmatpush3.bf16.msra.mxu1 %v1884_v11  ;;  %1655 = vmatprep.subr.bf16.mxu0 %v1885_v12  ;;  %v18_v34 = vld [vmem:[%s2562_s0 + $0x18] sm:$0xff]  ;;  %v63_v40 = vpack.c.bf16 %v31_v38, %v15_v37  ;;  %v17_v41 = vld [vmem:[%s2562_s0 + $0x10] sm:$0xff]  ;;  %v1905_v44 = vld [vmem:[%s2561_s1 + $0x140] sm:$0xff]  }
   0xe   :  { %1683 = vmatprep.subr.bf16.mxu1 %v1886_v13  ;;  %v34_v36 = vld [vmem:[%s2562_s0 + $0x98] sm:$0xff]  ;;  %v33_v42 = vld [vmem:[%s2562_s0 + $0x90] sm:$0xff]  ;;  %1158 = vmatprep.mubr.bf16.mxu0 %v64_v35  ;;  %v1906_v45 = vld [vmem:[%s2561_s1 + $0x1c0] sm:$0xff]  }
   0xf   :  { %v66_v39 = vpack.c.bf16 %v34_v36, %v18_v34  ;;  %v65_v43 = vpack.c.bf16 %v33_v42, %v17_v41  ;;  %v1907_v46 = vld [vmem:[%s2561_s1 + $0x100] sm:$0xff]   ;;  %v1909_v48 = vld [vmem:[%s2561_s1 + $0x148] sm:$0xff]   ;;  %v1913_v52 = vld [vmem:[%s2561_s1 + $0x150] sm:$0xff]  }
  0x10   :  { %1656 = vmatpush3.bf16.msra.mxu0 %v1887_v14  ;;  %v1908_v47 = vld [vmem:[%s2561_s1 + $0x180] sm:$0xff]   ;;  %v1910_v49 = vld [vmem:[%s2561_s1 + $0x1c8] sm:$0xff]   ;;  %v1914_v53 = vld [vmem:[%s2561_s1 + $0x1d0] sm:$0xff]  }
  0x11   :  { %1684 = vmatpush3.bf16.msra.mxu1 %v1888_v15  ;;  %1657 = vmatprep.subr.bf16.mxu0 %v1889_v16  ;;  %v1911_v50 = vld [vmem:[%s2561_s1 + $0x108] sm:$0xff]   ;;  %v1915_v54 = vld [vmem:[%s2561_s1 + $0x110] sm:$0xff]   ;;  %v1917_v56 = vld [vmem:[%s2561_s1 + $0x158] sm:$0xff]  }
  0x12   :  { %1685 = vmatprep.subr.bf16.mxu1 %v1890_v17  ;;  %1206 = vmatprep.mubr.bf16.mxu1 %v66_v39  ;;  %v1912_v51 = vld [vmem:[%s2561_s1 + $0x188] sm:$0xff]   ;;  %v1916_v55 = vld [vmem:[%s2561_s1 + $0x190] sm:$0xff]   ;;  %v1918_v57 = vld [vmem:[%s2561_s1 + $0x1d8] sm:$0xff]  }
  0x13   :  { %v1919_v58 = vld [vmem:[%s2561_s1 + $0x118] sm:$0xff]   ;;  %v1921_v60 = vld [vmem:[%s2561_s1 + $0x160] sm:$0xff]   ;;  %v1925_v0 = vld [vmem:[%s2561_s1 + $0x168] sm:$0xff]  }
  0x14   :  { %1658 = vmatpush3.bf16.msra.mxu0 %v1891_v18  ;;  %v1920_v59 = vld [vmem:[%s2561_s1 + $0x198] sm:$0xff]   ;;  %v1922_v61 = vld [vmem:[%s2561_s1 + $0x1e0] sm:$0xff]   ;;  %v1926_v1 = vld [vmem:[%s2561_s1 + $0x1e8] sm:$0xff]  }
  0x15   :  { %1686 = vmatpush3.bf16.msra.mxu1 %v1892_v19  ;;  %1659 = vmatprep.subr.bf16.mxu0 %v1893_v20  ;;  %v1923_v62 = vld [vmem:[%s2561_s1 + $0x120] sm:$0xff]   ;;  %v48_v2 = vld [vmem:[%s2562_s0 + $0x108] sm:$0xff]  ;;  %v50_v7 = vld [vmem:[%s2562_s0 + $0x118] sm:$0xff] }
  0x16   :  { %1687 = vmatprep.subr.bf16.mxu1 %v1894_v21  ;;  %v1924_v63 = vld [vmem:[%s2561_s1 + $0x1a0] sm:$0xff]   ;;  %v80_v3 = vpack.c.bf16 %v48_v2, %v48_v2  ;;  %v1927_v4 = vld [vmem:[%s2561_s1 + $0x128] sm:$0xff]   ;;  %v49_v8 = vld [vmem:[%s2562_s0 + $0x110] sm:$0xff]  ;;  %v82_v10 = vpack.c.bf16 %v50_v7, %v50_v7 }
  0x17   :  { %v1928_v5 = vld [vmem:[%s2561_s1 + $0x1a8] sm:$0xff]   ;;  %v47_v6 = vld [vmem:[%s2562_s0 + $0x100] sm:$0xff]  ;;  %v81_v11 = vpack.c.bf16 %v49_v8, %v49_v8  ;;  %v1929_v12 = vld [vmem:[%s2561_s1 + $0x170] sm:$0xff]  }
  0x18   :  { %1660 = vmatpush3.bf16.msra.mxu0 %v1895_v22  ;;  %v79_v9 = vpack.c.bf16 %v47_v6, %v47_v6  ;;  %v1930_v13 = vld [vmem:[%s2561_s1 + $0x1f0] sm:$0xff]   ;;  %v1933_v16 = vld [vmem:[%s2561_s1 + $0x178] sm:$0xff]   ;;  %v20_v20 = vld [vmem:[%s2562_s0 + $0x28] sm:$0xff] }
  0x19   :  { %1688 = vmatpush3.bf16.msra.mxu1 %v1896_v23  ;;  %1661 = vmatprep.subr.bf16.mxu0 %v1897_v24  ;;  %v1931_v14 = vld [vmem:[%s2561_s1 + $0x130] sm:$0xff]   ;;  %v1934_v17 = vld [vmem:[%s2561_s1 + $0x1f8] sm:$0xff]   ;;  %v36_v21 = vld [vmem:[%s2562_s0 + $0xa8] sm:$0xff] }
  0x1a   :  { %1689 = vmatprep.subr.bf16.mxu1 %v1898_v25  ;;  %v1932_v15 = vld [vmem:[%s2561_s1 + $0x1b0] sm:$0xff]   ;;  %v1935_v18 = vld [vmem:[%s2561_s1 + $0x138] sm:$0xff]   ;;  %v68_v23 = vpack.c.bf16 %v36_v21, %v20_v20  ;;  %v19_v25 = vld [vmem:[%s2562_s0 + $0x20] sm:$0xff] }
  0x1b   :  { %v1936_v19 = vld [vmem:[%s2561_s1 + $0x1b8] sm:$0xff]   ;;  %v1937_v32 = vld [vmem:[%s2561_s1 + $0x240] sm:$0xff]   ;;  %v1941_v36 = vld [vmem:[%s2561_s1 + $0x248] sm:$0xff]  }
  0x1c   :  { %1662 = vmatpush3.bf16.msra.mxu0 %v1899_v26  ;;  %v22_v22 = vld [vmem:[%s2562_s0 + $0x38] sm:$0xff]  ;;  %v35_v26 = vld [vmem:[%s2562_s0 + $0xa0] sm:$0xff]  ;;  %v1942_v37 = vld [vmem:[%s2561_s1 + $0x2c8] sm:$0xff]  }
  0x1d   :  { %1690 = vmatpush3.bf16.msra.mxu1 %v1900_v27  ;;  %1663 = vmatprep.subr.bf16.mxu0 %v1901_v28  ;;  %v38_v24 = vld [vmem:[%s2562_s0 + $0xb8] sm:$0xff]  ;;  %v67_v28 = vpack.c.bf16 %v35_v26, %v19_v25  ;;  %v1938_v33 = vld [vmem:[%s2561_s1 + $0x2c0] sm:$0xff]   ;;  %v1943_v38 = vld [vmem:[%s2561_s1 + $0x208] sm:$0xff]  }
  0x1e   :  { %1691 = vmatprep.subr.bf16.mxu1 %v1902_v29  ;;  %v70_v27 = vpack.c.bf16 %v38_v24, %v22_v22  ;;  %v21_v29 = vld [vmem:[%s2562_s0 + $0x30] sm:$0xff]  ;;  %v1939_v34 = vld [vmem:[%s2561_s1 + $0x200] sm:$0xff]   ;;  %v1944_v39 = vld [vmem:[%s2561_s1 + $0x288] sm:$0xff]  }
  0x1f   :  { %v1940_v35 = vld [vmem:[%s2561_s1 + $0x280] sm:$0xff]   ;;  %v1963_v2 = vld [vmem:[%s2561_s1 + $0x230] sm:$0xff]   ;;  %v1967_v6 = vld [vmem:[%s2561_s1 + $0x238] sm:$0xff]  }
  0x20   :  { %1664 = vmatpush3.bf16.msra.mxu0 %v1903_v30  ;;  %v37_v30 = vld [vmem:[%s2562_s0 + $0xb0] sm:$0xff]  ;;  %v51_v42 = vld [vmem:[%s2562_s0 + $0x120] sm:$0xff]  ;;  %v1968_v7 = vld [vmem:[%s2561_s1 + $0x2b8] sm:$0xff]  }
  0x21   :  { %1692 = vmatpush3.bf16.msra.mxu1 %v1904_v31  ;;  %1705 = vmatprep.subr.bf16.mxu0 %v1905_v44  ;;  %v69_v31 = vpack.c.bf16 %v37_v30, %v21_v29  ;;  %v1945_v44 = vld [vmem:[%s2561_s1 + $0x250] sm:$0xff]   ;;  %v24_v8 = vld [vmem:[%s2562_s0 + $0x48] sm:$0xff]  ;;  %v1969_v20 = vld [vmem:[%s2561_s1 + $0x340] sm:$0xff]  }
  0x22   :  { %1733 = vmatprep.subr.bf16.mxu1 %v1906_v45  ;;  %v1946_v45 = vld [vmem:[%s2561_s1 + $0x2d0] sm:$0xff]   ;;  %v1970_v21 = vld [vmem:[%s2561_s1 + $0x3c0] sm:$0xff]   ;;  %v1973_v24 = vld [vmem:[%s2561_s1 + $0x348] sm:$0xff]  }
  0x23   :  { %1159 = vmatmul.mubr.bf16.vlgmr.msra.gmra.mrb[0].mxu0 %v63_v40  ;;  %v52_v40 = vld [vmem:[%s2562_s0 + $0x128] sm:$0xff]  ;;  %v1971_v22 = vld [vmem:[%s2561_s1 + $0x300] sm:$0xff]  }
  0x24   :  { %1207 = vmatmul.mubr.bf16.vlgmr.msra.gmra.mrb[0].mxu1 %v65_v43  ;;  %1706 = vmatpush3.bf16.msra.mxu0 %v1907_v46  ;;  %v84_v41 = vpack.c.bf16 %v52_v40, %v52_v40  ;;  %v83_v43 = vpack.c.bf16 %v51_v42, %v51_v42  ;;  %v54_v46 = vld [vmem:[%s2562_s0 + $0x138] sm:$0xff]  ;;  %v1974_v25 = vld [vmem:[%s2561_s1 + $0x3c8] sm:$0xff]   ;;  %v55_v30 = vld [vmem:[%s2562_s0 + $0x140] sm:$0xff] }
  0x25   :  { %1734 = vmatpush3.bf16.msra.mxu1 %v1908_v47  ;;  %1707 = vmatprep.subr.bf16.mxu0 %v1909_v48  ;;  %v86_v47 = vpack.c.bf16 %v54_v46, %v54_v46  ;;  %v1947_v48 = vld [vmem:[%s2561_s1 + $0x210] sm:$0xff]   ;;  %v1975_v26 = vld [vmem:[%s2561_s1 + $0x308] sm:$0xff]   ;;  %v1981_v40 = vld [vmem:[%s2561_s1 + $0x358] sm:$0xff]  }
  0x26   :  { %1735 = vmatprep.subr.bf16.mxu1 %v1910_v49  ;;  %1166 = vmatprep.mubr.bf16.mxu0 %v80_v3  ;;  %v1948_v49 = vld [vmem:[%s2561_s1 + $0x290] sm:$0xff]   ;;  %v1983_v42 = vld [vmem:[%s2561_s1 + $0x318] sm:$0xff]   ;;  %v1987_v46 = vld [vmem:[%s2561_s1 + $0x320] sm:$0xff]  }
  0x27   :  { %1214 = vmatprep.mubr.bf16.mxu1 %v82_v10  ;;  %v1964_v3 = vld [vmem:[%s2561_s1 + $0x2b0] sm:$0xff]   ;;  %v26_v10 = vld [vmem:[%s2562_s0 + $0x58] sm:$0xff] }
  0x28   :  { %1708 = vmatpush3.bf16.msra.mxu0 %v1911_v50  ;;  %v53_v50 = vld [vmem:[%s2562_s0 + $0x130] sm:$0xff] }
  0x29   :  { %1736 = vmatpush3.bf16.msra.mxu1 %v1912_v51  ;;  %1709 = vmatprep.subr.bf16.mxu0 %v1913_v52  ;;  %v85_v51 = vpack.c.bf16 %v53_v50, %v53_v50  ;;  %v1949_v52 = vld [vmem:[%s2561_s1 + $0x258] sm:$0xff]   ;;  %v1991_v50 = vld [vmem:[%s2561_s1 + $0x328] sm:$0xff]  }
  0x2a   :  { %1737 = vmatprep.subr.bf16.mxu1 %v1914_v53  ;;  %v1950_v53 = vld [vmem:[%s2561_s1 + $0x2d8] sm:$0xff]  }
  0x2b   :  { %1167 = vmatmul.mubr.bf16.gmra.mrb[4].mxu0 %v79_v9  ;;  %v40_v9 = vld [vmem:[%s2562_s0 + $0xc8] sm:$0xff] }
  0x2c   :  { %1710 = vmatpush3.bf16.msra.mxu0 %v1915_v54  ;;  %1215 = vmatmul.mubr.bf16.gmra.mrb[4].mxu1 %v81_v11  ;;  %v1951_v54 = vld [vmem:[%s2561_s1 + $0x218] sm:$0xff]   ;;  %v72_v11 = vpack.c.bf16 %v40_v9, %v24_v8 }
  0x2d   :  { %1738 = vmatpush3.bf16.msra.mxu1 %v1916_v55  ;;  %1711 = vmatprep.subr.bf16.mxu0 %v1917_v56  ;;  %v1952_v55 = vld [vmem:[%s2561_s1 + $0x298] sm:$0xff]   ;;  %v1953_v56 = vld [vmem:[%s2561_s1 + $0x260] sm:$0xff]  }
  0x2e   :  { %1739 = vmatprep.subr.bf16.mxu1 %v1918_v57  ;;  %1254 = vmatprep.mubr.bf16.mxu0 %v68_v23  ;;  %v1954_v57 = vld [vmem:[%s2561_s1 + $0x2e0] sm:$0xff]  }
  0x2f   :  { %1302 = vmatprep.mubr.bf16.mxu1 %v70_v27  ;;  %v1972_v23 = vld [vmem:[%s2561_s1 + $0x380] sm:$0xff]   ;;  %v1976_v27 = vld [vmem:[%s2561_s1 + $0x388] sm:$0xff]  }
  0x30   :  { %1712 = vmatpush3.bf16.msra.mxu0 %v1919_v58  ;;  %v1955_v58 = vld [vmem:[%s2561_s1 + $0x220] sm:$0xff]  }
  0x31   :  { %1740 = vmatpush3.bf16.msra.mxu1 %v1920_v59  ;;  %1713 = vmatprep.subr.bf16.mxu0 %v1921_v60  ;;  %v1956_v59 = vld [vmem:[%s2561_s1 + $0x2a0] sm:$0xff]   ;;  %v1957_v60 = vld [vmem:[%s2561_s1 + $0x268] sm:$0xff]  }
  0x32   :  { %1741 = vmatprep.subr.bf16.mxu1 %v1922_v61  ;;  %v1958_v61 = vld [vmem:[%s2561_s1 + $0x2e8] sm:$0xff]  }
  0x34   :  { %1714 = vmatpush3.bf16.msra.mxu0 %v1923_v62  ;;  %v1959_v62 = vld [vmem:[%s2561_s1 + $0x228] sm:$0xff]  }
  0x35   :  { %1742 = vmatpush3.bf16.msra.mxu1 %v1924_v63  ;;  %1715 = vmatprep.subr.bf16.mxu0 %v1925_v0  ;;  %v1960_v63 = vld [vmem:[%s2561_s1 + $0x2a8] sm:$0xff]   ;;  %v1961_v0 = vld [vmem:[%s2561_s1 + $0x270] sm:$0xff]  }
  0x36   :  { %1743 = vmatprep.subr.bf16.mxu1 %v1926_v1  ;;  %v1962_v1 = vld [vmem:[%s2561_s1 + $0x2f0] sm:$0xff]  }
  0x38   :  { %1716 = vmatpush3.bf16.msra.mxu0 %v1927_v4  ;;  %v1965_v4 = vld [vmem:[%s2561_s1 + $0x278] sm:$0xff]  }
  0x39   :  { %1744 = vmatpush3.bf16.msra.mxu1 %v1928_v5  ;;  %1717 = vmatprep.subr.bf16.mxu0 %v1929_v12  ;;  %v1966_v5 = vld [vmem:[%s2561_s1 + $0x2f8] sm:$0xff]  }
  0x3a   :  { %1745 = vmatprep.subr.bf16.mxu1 %v1930_v13  ;;  %v42_v12 = vld [vmem:[%s2562_s0 + $0xd8] sm:$0xff]  ;;  %v23_v13 = vld [vmem:[%s2562_s0 + $0x40] sm:$0xff] }
  0x3c   :  { %1718 = vmatpush3.bf16.msra.mxu0 %v1931_v14  ;;  %v39_v14 = vld [vmem:[%s2562_s0 + $0xc0] sm:$0xff] }
  0x3d   :  { %1746 = vmatpush3.bf16.msra.mxu1 %v1932_v15  ;;  %1719 = vmatprep.subr.bf16.mxu0 %v1933_v16  ;;  %v74_v15 = vpack.c.bf16 %v42_v12, %v26_v10  ;;  %v71_v16 = vpack.c.bf16 %v39_v14, %v23_v13  ;;  %v62_v10 = vld [vmem:[%s2562_s0 + $0x178] sm:$0xff]  ;;  %v59_v12 = vld [vmem:[%s2562_s0 + $0x160] sm:$0xff]  ;;  %v61_v13 = vld [vmem:[%s2562_s0 + $0x170] sm:$0xff] }
  0x3e   :  { %1747 = vmatprep.subr.bf16.mxu1 %v1934_v17  ;;  %v25_v17 = vld [vmem:[%s2562_s0 + $0x50] sm:$0xff]  ;;  %v91_v14 = vpack.c.bf16 %v59_v12, %v59_v12 }
  0x40   :  { %1720 = vmatpush3.bf16.msra.mxu0 %v1935_v18  ;;  %v41_v18 = vld [vmem:[%s2562_s0 + $0xd0] sm:$0xff] }
  0x41   :  { %1748 = vmatpush3.bf16.msra.mxu1 %v1936_v19  ;;  %1761 = vmatprep.subr.bf16.mxu0 %v1937_v32  ;;  %v73_v19 = vpack.c.bf16 %v41_v18, %v25_v17  ;;  %v1977_v32 = vld [vmem:[%s2561_s1 + $0x350] sm:$0xff]   ;;  %v1520_v18 = vld [vmem:[%s2563_s2] ss:$0 sm:$0xff] }
  0x42   :  { %1789 = vmatprep.subr.bf16.mxu1 %v1938_v33  ;;  %v1978_v33 = vld [vmem:[%s2561_s1 + $0x3d0] sm:$0xff]  }
  0x43   :  { %1255 = vmatmul.mubr.bf16.vlgmr.msra.gmra.mrb[8].mxu0 %v67_v28  ;;  %v56_v28 = vld [vmem:[%s2562_s0 + $0x148] sm:$0xff] }
  0x44   :  { %1303 = vmatmul.mubr.bf16.vlgmr.msra.gmra.mrb[8].mxu1 %v69_v31  ;;  %1762 = vmatpush3.bf16.msra.mxu0 %v1939_v34  ;;  %v88_v29 = vpack.c.bf16 %v56_v28, %v56_v28  ;;  %v87_v31 = vpack.c.bf16 %v55_v30, %v55_v30  ;;  %v58_v34 = vld [vmem:[%s2562_s0 + $0x158] sm:$0xff] }
  0x45   :  { %1790 = vmatpush3.bf16.msra.mxu1 %v1940_v35  ;;  %1763 = vmatprep.subr.bf16.mxu0 %v1941_v36  ;;  %v90_v35 = vpack.c.bf16 %v58_v34, %v58_v34  ;;  %v1979_v36 = vld [vmem:[%s2561_s1 + $0x310] sm:$0xff]  }
  0x46   :  { %1791 = vmatprep.subr.bf16.mxu1 %v1942_v37  ;;  %1262 = vmatprep.mubr.bf16.mxu0 %v84_v41  ;;  %v1980_v37 = vld [vmem:[%s2561_s1 + $0x390] sm:$0xff]   ;;  %v1982_v41 = vld [vmem:[%s2561_s1 + $0x3d8] sm:$0xff]  }
  0x47   :  { %1310 = vmatprep.mubr.bf16.mxu1 %v86_v47  ;;  %v1988_v47 = vld [vmem:[%s2561_s1 + $0x3a0] sm:$0xff]  }
  0x48   :  { %1764 = vmatpush3.bf16.msra.mxu0 %v1943_v38  ;;  %v57_v38 = vld [vmem:[%s2562_s0 + $0x150] sm:$0xff] }
  0x49   :  { %1792 = vmatpush3.bf16.msra.mxu1 %v1944_v39  ;;  %1765 = vmatprep.subr.bf16.mxu0 %v1945_v44  ;;  %v89_v39 = vpack.c.bf16 %v57_v38, %v57_v38  ;;  %v1985_v44 = vld [vmem:[%s2561_s1 + $0x360] sm:$0xff]  }
  0x4a   :  { %1793 = vmatprep.subr.bf16.mxu1 %v1946_v45  ;;  %v1986_v45 = vld [vmem:[%s2561_s1 + $0x3e0] sm:$0xff]  }
  0x4b   :  { %1263 = vmatmul.mubr.bf16.gmra.mrb[12].mxu0 %v83_v43  ;;  %v1984_v43 = vld [vmem:[%s2561_s1 + $0x398] sm:$0xff]  }
  0x4c   :  { %1766 = vmatpush3.bf16.msra.mxu0 %v1947_v48  ;;  %1311 = vmatmul.mubr.bf16.gmra.mrb[12].mxu1 %v85_v51  ;;  %v1989_v48 = vld [vmem:[%s2561_s1 + $0x368] sm:$0xff]  }
  0x4d   :  { %1794 = vmatpush3.bf16.msra.mxu1 %v1948_v49  ;;  %1767 = vmatprep.subr.bf16.mxu0 %v1949_v52  ;;  %v1990_v49 = vld [vmem:[%s2561_s1 + $0x3e8] sm:$0xff]   ;;  %v1993_v52 = vld [vmem:[%s2561_s1 + $0x370] sm:$0xff]  }
  0x4e   :  { %1795 = vmatprep.subr.bf16.mxu1 %v1950_v53  ;;  %1350 = vmatprep.mubr.bf16.mxu0 %v72_v11  ;;  %v1992_v51 = vld [vmem:[%s2561_s1 + $0x3a8] sm:$0xff]   ;;  %v1994_v53 = vld [vmem:[%s2561_s1 + $0x3f0] sm:$0xff]   ;;  %v94_v11 = vpack.c.bf16 %v62_v10, %v62_v10 }
  0x4f   :  { %1398 = vmatprep.mubr.bf16.mxu1 %v74_v15  ;;  %v93_v15 = vpack.c.bf16 %v61_v13, %v61_v13 }
  0x50   :  { %1768 = vmatpush3.bf16.msra.mxu0 %v1951_v54  ;;  %v1995_v54 = vld [vmem:[%s2561_s1 + $0x330] sm:$0xff]  }
  0x51   :  { %1796 = vmatpush3.bf16.msra.mxu1 %v1952_v55  ;;  %1769 = vmatprep.subr.bf16.mxu0 %v1953_v56  ;;  %v1996_v55 = vld [vmem:[%s2561_s1 + $0x3b0] sm:$0xff]   ;;  %v1997_v56 = vld [vmem:[%s2561_s1 + $0x378] sm:$0xff]  }
  0x52   :  { %1797 = vmatprep.subr.bf16.mxu1 %v1954_v57  ;;  %v1998_v57 = vld [vmem:[%s2561_s1 + $0x3f8] sm:$0xff]  }
  0x54   :  { %1770 = vmatpush3.bf16.msra.mxu0 %v1955_v58  ;;  %v1999_v58 = vld [vmem:[%s2561_s1 + $0x338] sm:$0xff]  }
  0x55   :  { %1798 = vmatpush3.bf16.msra.mxu1 %v1956_v59  ;;  %1771 = vmatprep.subr.bf16.mxu0 %v1957_v60  ;;  %v2000_v59 = vld [vmem:[%s2561_s1 + $0x3b8] sm:$0xff]   ;;  %v28_v60 = vld [vmem:[%s2562_s0 + $0x68] sm:$0xff] }
  0x56   :  { %1799 = vmatprep.subr.bf16.mxu1 %v1958_v61  ;;  %v44_v61 = vld [vmem:[%s2562_s0 + $0xe8] sm:$0xff] }
  0x58   :  { %1772 = vmatpush3.bf16.msra.mxu0 %v1959_v62  ;;  %v30_v62 = vld [vmem:[%s2562_s0 + $0x78] sm:$0xff] }
  0x59   :  { %1800 = vmatpush3.bf16.msra.mxu1 %v1960_v63  ;;  %1773 = vmatprep.subr.bf16.mxu0 %v1961_v0  ;;  %v76_v63 = vpack.c.bf16 %v44_v61, %v28_v60  ;;  %v46_v0 = vld [vmem:[%s2562_s0 + $0xf8] sm:$0xff] }
  0x5a   :  { %1801 = vmatprep.subr.bf16.mxu1 %v1962_v1  ;;  %v27_v1 = vld [vmem:[%s2562_s0 + $0x60] sm:$0xff] }
  0x5c   :  { %1774 = vmatpush3.bf16.msra.mxu0 %v1963_v2  ;;  %v43_v2 = vld [vmem:[%s2562_s0 + $0xe0] sm:$0xff] }
  0x5d   :  { %1802 = vmatpush3.bf16.msra.mxu1 %v1964_v3  ;;  %1775 = vmatprep.subr.bf16.mxu0 %v1965_v4  ;;  %v78_v3 = vpack.c.bf16 %v46_v0, %v30_v62  ;;  %v75_v4 = vpack.c.bf16 %v43_v2, %v27_v1 }
  0x5e   :  { %1803 = vmatprep.subr.bf16.mxu1 %v1966_v5  ;;  %v29_v5 = vld [vmem:[%s2562_s0 + $0x70] sm:$0xff] }
  0x60   :  { %1776 = vmatpush3.bf16.msra.mxu0 %v1967_v6  ;;  %v45_v6 = vld [vmem:[%s2562_s0 + $0xf0] sm:$0xff] }
  0x61   :  { %1804 = vmatpush3.bf16.msra.mxu1 %v1968_v7  ;;  %1817 = vmatprep.subr.bf16.mxu0 %v1969_v20  ;;  %v60_v7 = vld [vmem:[%s2562_s0 + $0x168] sm:$0xff]  ;;  %v77_v8 = vpack.c.bf16 %v45_v6, %v29_v5 }
  0x62   :  { %1845 = vmatprep.subr.bf16.mxu1 %v1970_v21  ;;  %v92_v9 = vpack.c.bf16 %v60_v7, %v60_v7 }
  0x63   :  { %1351 = vmatmul.mubr.bf16.vlgmr.msra.gmra.mrb[16].mxu0 %v71_v16 }
  0x64   :  { %1399 = vmatmul.mubr.bf16.vlgmr.msra.gmra.mrb[16].mxu1 %v73_v19  ;;  %1818 = vmatpush3.bf16.msra.mxu0 %v1971_v22 }
  0x65   :  { %1846 = vmatpush3.bf16.msra.mxu1 %v1972_v23  ;;  %1819 = vmatprep.subr.bf16.mxu0 %v1973_v24 }
  0x66   :  { %1847 = vmatprep.subr.bf16.mxu1 %v1974_v25  ;;  %1358 = vmatprep.mubr.bf16.mxu0 %v88_v29 }
  0x67   :  { %1406 = vmatprep.mubr.bf16.mxu1 %v90_v35 }
  0x68   :  { %1820 = vmatpush3.bf16.msra.mxu0 %v1975_v26 }
  0x69   :  { %1848 = vmatpush3.bf16.msra.mxu1 %v1976_v27  ;;  %1821 = vmatprep.subr.bf16.mxu0 %v1977_v32 }
  0x6a   :  { %1849 = vmatprep.subr.bf16.mxu1 %v1978_v33 }
  0x6b   :  { %1359 = vmatmul.mubr.bf16.gmra.mrb[20].mxu0 %v87_v31 }
  0x6c   :  { %1822 = vmatpush3.bf16.msra.mxu0 %v1979_v36  ;;  %1407 = vmatmul.mubr.bf16.gmra.mrb[20].mxu1 %v89_v39 }
  0x6d   :  { %1850 = vmatpush3.bf16.msra.mxu1 %v1980_v37  ;;  %1823 = vmatprep.subr.bf16.mxu0 %v1981_v40 }
  0x6e   :  { %1851 = vmatprep.subr.bf16.mxu1 %v1982_v41  ;;  %1446 = vmatprep.mubr.bf16.mxu0 %v76_v63 }
  0x6f   :  { %1494 = vmatprep.mubr.bf16.mxu1 %v78_v3 }
  0x70   :  { %1824 = vmatpush3.bf16.msra.mxu0 %v1983_v42 }
  0x71   :  { %1852 = vmatpush3.bf16.msra.mxu1 %v1984_v43  ;;  %1825 = vmatprep.subr.bf16.mxu0 %v1985_v44 }
  0x72   :  { %1853 = vmatprep.subr.bf16.mxu1 %v1986_v45 }
  0x74   :  { %1826 = vmatpush3.bf16.msra.mxu0 %v1987_v46 }
  0x75   :  { %1854 = vmatpush3.bf16.msra.mxu1 %v1988_v47  ;;  %1827 = vmatprep.subr.bf16.mxu0 %v1989_v48 }
  0x76   :  { %1855 = vmatprep.subr.bf16.mxu1 %v1990_v49 }
  0x78   :  { %1828 = vmatpush3.bf16.msra.mxu0 %v1991_v50 }
  0x79   :  { %1856 = vmatpush3.bf16.msra.mxu1 %v1992_v51  ;;  %1829 = vmatprep.subr.bf16.mxu0 %v1993_v52 }
  0x7a   :  { %1857 = vmatprep.subr.bf16.mxu1 %v1994_v53 }
  0x7c   :  { %1830 = vmatpush3.bf16.msra.mxu0 %v1995_v54 }
  0x7d   :  { %1858 = vmatpush3.bf16.msra.mxu1 %v1996_v55  ;;  %1831 = vmatprep.subr.bf16.mxu0 %v1997_v56 }
  0x7e   :  { %1859 = vmatprep.subr.bf16.mxu1 %v1998_v57 }
  0x80   :  { %1832 = vmatpush3.bf16.msra.mxu0 %v1999_v58 }
  0x81   :  { %1860 = vmatpush3.bf16.msra.mxu1 %v2000_v59 }
  0x83   :  { %1447 = vmatmul.mubr.bf16.vlgmr.msra.gmra.mrb[24].mxu0 %v75_v4 }
  0x84   :  { %1495 = vmatmul.mubr.bf16.vlgmr.msra.gmra.mrb[24].mxu1 %v77_v8  ;;  %1454 = vmatprep.mubr.bf16.mxu0 %v92_v9 }
  0x85   :  { %1502 = vmatprep.mubr.bf16.mxu1 %v94_v11 }
  0x8b   :  { %1455 = vmatmul.mubr.bf16.gmra.mrb[28].mxu0 %v91_v14 }
  0x8c   :  { %1503 = vmatmul.mubr.bf16.gmra.mrb[28].mxu1 %v93_v15 }
  0xf6   :  { %v1665_v16 = vpop.f32.mrb[0].mxu0 }
  0xf7   :  { %v1693_v17 = vpop.f32.mrb[0].mxu1  ;;  %v1666_v19 = vpop.f32.mrb[1].mxu0 }
  0xf8   :  { %v1667_v20 = vadd.f32 %v1666_v19, %v1665_v16  ;;  %v1694_v21 = vpop.f32.mrb[1].mxu1  ;;  %v1668_v22 = vpop.f32.mrb[2].mxu0 }
  0xf9   :  { %v1695_v23 = vadd.f32 %v1694_v21, %v1693_v17  ;;  %v1696_v24 = vpop.f32.mrb[2].mxu1  ;;  %v1669_v25 = vpop.f32.mrb[3].mxu0 }
  0xfa   :  { %v1161_v26 = vadd.f32 %v1667_v20, %v1520_v18  ;;  %v1670_v27 = vadd.f32 %v1669_v25, %v1668_v22  ;;  %v1697_v28 = vpop.f32.mrb[3].mxu1 }
  0xfb   :  { %v1698_v29 = vadd.f32 %v1697_v28, %v1696_v24 }
  0xfc   :  { %v1209_v30 = vadd.f32 %v1695_v23, %v1161_v26  ;;  %v1164_v31 = vadd.f32 %v1670_v27, %v1520_v18 }
  0xfe   :  { %v1212_v32 = vadd.f32 %v1698_v29, %v1164_v31  ;;  %v1671_v33 = vpop.f32.mrb[4].mxu0 }
  0xff   :  { %v1672_v34 = vpop.f32.mrb[5].mxu0  ;;  %v1699_v35 = vpop.f32.mrb[4].mxu1 }
 0x100   :  { %v1673_v36 = vadd.f32 %v1672_v34, %v1671_v33  ;;  %v1674_v37 = vpop.f32.mrb[6].mxu0  ;;  %v1700_v38 = vpop.f32.mrb[5].mxu1 }
 0x101   :  { %v1675_v39 = vpop.f32.mrb[7].mxu0  ;;  %v1701_v40 = vadd.f32 %v1700_v38, %v1699_v35  ;;  %v1702_v41 = vpop.f32.mrb[6].mxu1 }
 0x102   :  { %v1169_v42 = vadd.f32 %v1673_v36, %v1520_v18  ;;  %v1703_v43 = vpop.f32.mrb[7].mxu1 }
 0x104   :  { %v1217_v44 = vadd.f32 %v1701_v40, %v1169_v42 }
 0x116   :  { %v1721_v45 = vpop.f32.mrb[8].mxu0 }
 0x117   :  { %v1749_v46 = vpop.f32.mrb[8].mxu1  ;;  %v1722_v47 = vpop.f32.mrb[9].mxu0 }
 0x118   :  { %v1723_v48 = vadd.f32 %v1722_v47, %v1721_v45  ;;  %v1750_v49 = vpop.f32.mrb[9].mxu1  ;;  %v1724_v50 = vpop.f32.mrb[10].mxu0 }
 0x119   :  { %v1751_v51 = vadd.f32 %v1750_v49, %v1749_v46  ;;  %v1752_v52 = vpop.f32.mrb[10].mxu1  ;;  %v1725_v53 = vpop.f32.mrb[11].mxu0 }
 0x11a   :  { %v1257_v54 = vadd.f32 %v1723_v48, %v1209_v30  ;;  %v1726_v55 = vadd.f32 %v1725_v53, %v1724_v50  ;;  %v1753_v56 = vpop.f32.mrb[11].mxu1 }
 0x11b   :  { %v1754_v57 = vadd.f32 %v1753_v56, %v1752_v52 }
 0x11c   :  { %v1305_v58 = vadd.f32 %v1751_v51, %v1257_v54  ;;  %v1260_v59 = vadd.f32 %v1726_v55, %v1212_v32 }
 0x11e   :  { %v1308_v60 = vadd.f32 %v1754_v57, %v1260_v59  ;;  %v1727_v61 = vpop.f32.mrb[12].mxu0 }
 0x11f   :  { %v1728_v62 = vpop.f32.mrb[13].mxu0  ;;  %v1755_v3 = vpop.f32.mrb[12].mxu1 }
 0x120   :  { %v1729_v63 = vadd.f32 %v1728_v62, %v1727_v61  ;;  %v1730_v0 = vpop.f32.mrb[14].mxu0  ;;  %v1756_v4 = vpop.f32.mrb[13].mxu1 }
 0x121   :  { %v1731_v1 = vpop.f32.mrb[15].mxu0  ;;  %v1757_v5 = vadd.f32 %v1756_v4, %v1755_v3  ;;  %v1758_v6 = vpop.f32.mrb[14].mxu1 }
 0x122   :  { %v1265_v2 = vadd.f32 %v1729_v63, %v1217_v44  ;;  %v1759_v7 = vpop.f32.mrb[15].mxu1 }
 0x124   :  { %v1313_v8 = vadd.f32 %v1757_v5, %v1265_v2 }
 0x136   :  { %v1777_v9 = vpop.f32.mrb[16].mxu0 }
 0x137   :  { %v1805_v10 = vpop.f32.mrb[16].mxu1  ;;  %v1778_v11 = vpop.f32.mrb[17].mxu0 }
 0x138   :  { %v1779_v12 = vadd.f32 %v1778_v11, %v1777_v9  ;;  %v1806_v13 = vpop.f32.mrb[17].mxu1  ;;  %v1780_v14 = vpop.f32.mrb[18].mxu0 }
 0x139   :  { %v1807_v15 = vadd.f32 %v1806_v13, %v1805_v10  ;;  %v1808_v16 = vpop.f32.mrb[18].mxu1  ;;  %v1781_v17 = vpop.f32.mrb[19].mxu0 }
 0x13a   :  { %v1353_v18 = vadd.f32 %v1779_v12, %v1305_v58  ;;  %v1782_v19 = vadd.f32 %v1781_v17, %v1780_v14  ;;  %v1809_v20 = vpop.f32.mrb[19].mxu1 }
 0x13b   :  { %v1810_v21 = vadd.f32 %v1809_v20, %v1808_v16 }
 0x13c   :  { %v1401_v22 = vadd.f32 %v1807_v15, %v1353_v18  ;;  %v1356_v23 = vadd.f32 %v1782_v19, %v1308_v60 }
 0x13e   :  { %v1404_v24 = vadd.f32 %v1810_v21, %v1356_v23  ;;  %v1783_v25 = vpop.f32.mrb[20].mxu0 }
 0x13f   :  { %v1784_v26 = vpop.f32.mrb[21].mxu0  ;;  %v1811_v31 = vpop.f32.mrb[20].mxu1 }
 0x140   :  { %v1785_v27 = vadd.f32 %v1784_v26, %v1783_v25  ;;  %v1786_v28 = vpop.f32.mrb[22].mxu0  ;;  %v1812_v32 = vpop.f32.mrb[21].mxu1 }
 0x141   :  { %v1787_v29 = vpop.f32.mrb[23].mxu0  ;;  %v1813_v33 = vadd.f32 %v1812_v32, %v1811_v31  ;;  %v1814_v34 = vpop.f32.mrb[22].mxu1 }
 0x142   :  { %v1361_v30 = vadd.f32 %v1785_v27, %v1313_v8  ;;  %v1815_v35 = vpop.f32.mrb[23].mxu1 }
 0x144   :  { %v1409_v36 = vadd.f32 %v1813_v33, %v1361_v30 }
 0x156   :  { %v1833_v37 = vpop.f32.mrb[24].mxu0 }
 0x157   :  { %v1861_v38 = vpop.f32.mrb[24].mxu1  ;;  %v1834_v39 = vpop.f32.mrb[25].mxu0 }
 0x158   :  { %v1835_v40 = vadd.f32 %v1834_v39, %v1833_v37  ;;  %v1862_v41 = vpop.f32.mrb[25].mxu1  ;;  %v1836_v42 = vpop.f32.mrb[26].mxu0 }
 0x159   :  { %v1863_v43 = vadd.f32 %v1862_v41, %v1861_v38  ;;  %v1864_v44 = vpop.f32.mrb[26].mxu1  ;;  %v1837_v45 = vpop.f32.mrb[27].mxu0 }
 0x15a   :  { %v1449_v46 = vadd.f32 %v1835_v40, %v1401_v22  ;;  %v1838_v47 = vadd.f32 %v1837_v45, %v1836_v42  ;;  %v1865_v48 = vpop.f32.mrb[27].mxu1 }
 0x15b   :  { %v1866_v49 = vadd.f32 %v1865_v48, %v1864_v44 }
 0x15c   :  { %v1497_v50 = vadd.f32 %v1863_v43, %v1449_v46  ;;  %v1452_v51 = vadd.f32 %v1838_v47, %v1404_v24 }
 0x15e   :  { %v1510_v52 = vmax.f32 %v1497_v50, 0.0  ;;  %v1500_v53 = vadd.f32 %v1866_v49, %v1452_v51  ;;  %v1839_v54 = vpop.f32.mrb[28].mxu0 }
 0x15f   :  { %v1867_v55 = vpop.f32.mrb[28].mxu1  ;;  %v1840_v56 = vpop.f32.mrb[29].mxu0 }
 0x160   :  { %1513 = vst [vmem:[%s2564_s3] sm:$0xff] %v1510_v52  ;;  %v1511_v57 = vmax.f32 %v1500_v53, 0.0  ;;  %v1841_v58 = vadd.f32 %v1840_v56, %v1839_v54  ;;  %v1868_v59 = vpop.f32.mrb[29].mxu1  ;;  %v1842_v60 = vpop.f32.mrb[30].mxu0 }
 0x161   :  { %v1869_v61 = vadd.f32 %v1868_v59, %v1867_v55  ;;  %v1870_v62 = vpop.f32.mrb[30].mxu1  ;;  %v1843_v63 = vpop.f32.mrb[31].mxu0 }
 0x162   :  { %1514 = vst [vmem:[%s2564_s3 + $0x8] sm:$0xff] %v1511_v57  ;;  %v1457_v0 = vadd.f32 %v1841_v58, %v1409_v36  ;;  %v1871_v1 = vpop.f32.mrb[31].mxu1 }
 0x164   :  { %v1505_v2 = vadd.f32 %v1869_v61, %v1457_v0 }
 0x166   :  { %v1512_v3 = vmax.f32 %v1505_v2, 0.0 }
 0x168   :  { %1515 = vst [vmem:[%s2564_s3 + $0x10] sm:$0xff] %v1512_v3 }

// kernel: noisy_cnn_dqn_forward.7
= control target key start
LH: loop header
LB: loop body
LE: loop exit
PB: predicated region body
PF: predicated region fallthrough
CT: control target
= control target key end

     0   :  { %v1527_v0 = vmov 0   ;;  %v277_v61 = vlaneseq  ;;  %s3098_s3 = inlined_call_operand.vmem [shape: f32[128,1], index: 3, kind: input, shape index: {}]   ;;  %s3099_s10 = inlined_call_operand.vmem [shape: f32[512,1], index: 10, kind: input, shape index: {}]   ;;  %s3100_s4 = inlined_call_operand.vmem [shape: f32[1,512], index: 4, kind: input, shape index: {}]   ;;  %s3101_s0 = inlined_call_operand.vmem [shape: f32[8,128], index: 0, kind: input, shape index: {}]   ;;  %s3102_s2 = inlined_call_operand.vmem [shape: f32[128,512], index: 2, kind: input, shape index: {}]   ;;  %s3103_s1 = inlined_call_operand.vmem [shape: f32[128,512], index: 1, kind: input, shape index: {}]   ;;  %s3104_s11 = inlined_call_operand.vmem [shape: f32[1,128], index: 11, kind: input, shape index: {}]   ;;  %s3105_s9 = inlined_call_operand.vmem [shape: f32[512,128], index: 9, kind: input, shape index: {}]   ;;  %s3106_s8 = inlined_call_operand.vmem [shape: f32[512,128], index: 8, kind: input, shape index: {}]   ;;  %s3107_s6 = inlined_call_operand.vmem [shape: f32[1,512], index: 6, kind: input, shape index: {}]   ;;  %s3108_s7 = inlined_call_operand.vmem [shape: f32[1,512], index: 7, kind: input, shape index: {}]   ;;  %s3109_s5 = inlined_call_operand.vmem [shape: f32[1,512], index: 5, kind: input, shape index: {}]   ;;  %s3110_s13 = inlined_call_operand.vmem [shape: f32[1,128], index: 13, kind: input, shape index: {}]   ;;  %s3111_s14 = inlined_call_operand.vmem [shape: f32[1,128], index: 14, kind: input, shape index: {}]   ;;  %s3112_s12 = inlined_call_operand.vmem [shape: f32[1,128], index: 12, kind: input, shape index: {}]   ;;  %s3113_s15 = inlined_call_operand.vmem [shape: f32[8,128], index: 15, kind: output, shape index: {}]  }
   0x1   :  { %1525 = vset.pattern.permute.xlu1 %v1527_v0  ;;  %1524 = vset.pattern.permute.xlu0 %v1527_v0  ;;  %v181_v1 = vld [vmem:[%s3098_s3 + $0x10] sm:$0xff]  ;;  %v179_v2 = vld [vmem:[%s3098_s3] sm:$0xff]  ;;  %v182_v3 = vld [vmem:[%s3098_s3 + $0x18] sm:$0xff] }
   0x2   :  { %208 = vperm.xlu1 %1525, %v181_v1   ;;  %198 = vperm.xlu0 %1524, %v179_v2   ;;  %v180_v4 = vld [vmem:[%s3098_s3 + $0x8] sm:$0xff]  ;;  %v183_v6 = vld [vmem:[%s3098_s3 + $0x20] sm:$0xff]  ;;  %v186_v7 = vld [vmem:[%s3098_s3 + $0x38] sm:$0xff] }
   0x3   :  { %581 = vmatprep.mubr.bf16.mxu0 %v1527_v0  ;;  %622 = vmatprep.mubr.bf16.mxu1 %v1527_v0  ;;  %v184_v5 = vld [vmem:[%s3098_s3 + $0x28] sm:$0xff]  ;;  %v185_v8 = vld [vmem:[%s3098_s3 + $0x30] sm:$0xff]  ;;  %v187_v10 = vld [vmem:[%s3098_s3 + $0x40] sm:$0xff]  ;;  %v1794_v0 = vshrl.u32 %v277_v61, 7 }
   0x4   :  { %v188_v9 = vld [vmem:[%s3098_s3 + $0x48] sm:$0xff]  ;;  %v190_v11 = vld [vmem:[%s3098_s3 + $0x58] sm:$0xff]  ;;  %v189_v12 = vld [vmem:[%s3098_s3 + $0x50] sm:$0xff] }
   0x5   :  { %v192_v13 = vld [vmem:[%s3098_s3 + $0x68] sm:$0xff]  ;;  %v191_v14 = vld [vmem:[%s3098_s3 + $0x60] sm:$0xff]  ;;  %v194_v15 = vld [vmem:[%s3098_s3 + $0x78] sm:$0xff] }
   0x6   :  { %213 = vperm.xlu1 %1525, %v182_v3   ;;  %203 = vperm.xlu0 %1524, %v180_v4   ;;  %v193_v16 = vld [vmem:[%s3098_s3 + $0x70] sm:$0xff]  ;;  %v780_v17 = vld [vmem:[%s3099_s10 + $0x88] sm:$0xff]  ;;  %v779_v18 = vld [vmem:[%s3099_s10 + $0x80] sm:$0xff]  ;;  %v1803_v3 = vsub.s32 0, %v1794_v0  ;;  %v283_v4 = vsub.s32 1, %v1794_v0 }
   0x7   :  { %v764_v19 = vld [vmem:[%s3099_s10 + $0x8] sm:$0xff]  ;;  %v763_v20 = vld [vmem:[%s3099_s10] sm:$0xff]  ;;  %v782_v25 = vld [vmem:[%s3099_s10 + $0x98] sm:$0xff] }
   0x8   :  { %v812_v21 = vld [vmem:[%s3099_s10 + $0x188] sm:$0xff]  ;;  %v811_v22 = vld [vmem:[%s3099_s10 + $0x180] sm:$0xff]  ;;  %v781_v26 = vld [vmem:[%s3099_s10 + $0x90] sm:$0xff] }
   0x9   :  { %v796_v23 = vld [vmem:[%s3099_s10 + $0x108] sm:$0xff]  ;;  %v795_v24 = vld [vmem:[%s3099_s10 + $0x100] sm:$0xff]  ;;  %v766_v27 = vld [vmem:[%s3099_s10 + $0x18] sm:$0xff] }
   0xa   :  { %223 = vperm.xlu1 %1525, %v184_v5   ;;  %218 = vperm.xlu0 %1524, %v183_v6   ;;  %v765_v28 = vld [vmem:[%s3099_s10 + $0x10] sm:$0xff]  ;;  %v814_v29 = vld [vmem:[%s3099_s10 + $0x198] sm:$0xff]  ;;  %v784_v33 = vld [vmem:[%s3099_s10 + $0xa8] sm:$0xff]  ;;  %v287_v5 = vsub.s32 2, %v1794_v0  ;;  %v3114_v6 = vsub.s32 3, %v1794_v0 }
   0xb   :  { %v813_v30 = vld [vmem:[%s3099_s10 + $0x190] sm:$0xff]  ;;  %v798_v31 = vld [vmem:[%s3099_s10 + $0x118] sm:$0xff]  ;;  %v783_v34 = vld [vmem:[%s3099_s10 + $0xa0] sm:$0xff] }
   0xc   :  { %v797_v32 = vld [vmem:[%s3099_s10 + $0x110] sm:$0xff]  ;;  %v768_v35 = vld [vmem:[%s3099_s10 + $0x28] sm:$0xff]  ;;  %v767_v36 = vld [vmem:[%s3099_s10 + $0x20] sm:$0xff] }
   0xd   :  { %v816_v37 = vld [vmem:[%s3099_s10 + $0x1a8] sm:$0xff]  ;;  %v815_v38 = vld [vmem:[%s3099_s10 + $0x1a0] sm:$0xff]  ;;  %v786_v41 = vld [vmem:[%s3099_s10 + $0xb8] sm:$0xff] }
   0xe   :  { %233 = vperm.xlu1 %1525, %v186_v7   ;;  %228 = vperm.xlu0 %1524, %v185_v8   ;;  %v800_v39 = vld [vmem:[%s3099_s10 + $0x128] sm:$0xff]  ;;  %v799_v40 = vld [vmem:[%s3099_s10 + $0x120] sm:$0xff]  ;;  %v785_v42 = vld [vmem:[%s3099_s10 + $0xb0] sm:$0xff] }
   0xf   :  { %v770_v43 = vld [vmem:[%s3099_s10 + $0x38] sm:$0xff]  ;;  %v769_v44 = vld [vmem:[%s3099_s10 + $0x30] sm:$0xff]  ;;  %v788_v49 = vld [vmem:[%s3099_s10 + $0xc8] sm:$0xff] }
  0x10   :  { %v818_v45 = vld [vmem:[%s3099_s10 + $0x1b8] sm:$0xff]  ;;  %v817_v46 = vld [vmem:[%s3099_s10 + $0x1b0] sm:$0xff]  ;;  %v787_v50 = vld [vmem:[%s3099_s10 + $0xc0] sm:$0xff] }
  0x11   :  { %v802_v47 = vld [vmem:[%s3099_s10 + $0x138] sm:$0xff]  ;;  %v801_v48 = vld [vmem:[%s3099_s10 + $0x130] sm:$0xff]  ;;  %v772_v51 = vld [vmem:[%s3099_s10 + $0x48] sm:$0xff] }
  0x12   :  { %243 = vperm.xlu1 %1525, %v188_v9   ;;  %238 = vperm.xlu0 %1524, %v187_v10   ;;  %v771_v52 = vld [vmem:[%s3099_s10 + $0x40] sm:$0xff]  ;;  %v820_v53 = vld [vmem:[%s3099_s10 + $0x1c8] sm:$0xff]  ;;  %v790_v57 = vld [vmem:[%s3099_s10 + $0xd8] sm:$0xff] }
  0x13   :  { %v819_v54 = vld [vmem:[%s3099_s10 + $0x1c0] sm:$0xff]  ;;  %v804_v55 = vld [vmem:[%s3099_s10 + $0x148] sm:$0xff]  ;;  %v789_v58 = vld [vmem:[%s3099_s10 + $0xd0] sm:$0xff] }
  0x14   :  { %v803_v56 = vld [vmem:[%s3099_s10 + $0x140] sm:$0xff]  ;;  %v774_v59 = vld [vmem:[%s3099_s10 + $0x58] sm:$0xff]  ;;  %v773_v60 = vld [vmem:[%s3099_s10 + $0x50] sm:$0xff] }
  0x15   :  { %v822_v62 = vld [vmem:[%s3099_s10 + $0x1d8] sm:$0xff]  ;;  %v821_v63 = vld [vmem:[%s3099_s10 + $0x1d0] sm:$0xff]  ;;  %v195_v7 = vld [vmem:[%s3100_s4] sm:$0xf] }
  0x16   :  { %253 = vperm.xlu1 %1525, %v190_v11   ;;  %248 = vperm.xlu0 %1524, %v189_v12   ;;  %v806_v1 = vld [vmem:[%s3099_s10 + $0x158] sm:$0xff]  ;;  %v805_v2 = vld [vmem:[%s3099_s10 + $0x150] sm:$0xff]  ;;  %v494_v8 = vld [vmem:[%s3101_s0] sm:$0xff]  ;;  %v1815_v9 = vrot.slane %v195_v7, %v1803_v3  ;;  %v1819_v10 = vrot.slane %v195_v7, %v283_v4  ;;  %v1823_v11 = vrot.slane %v195_v7, %v287_v5 }
  0x17   :  { %v1827_v12 = vrot.slane %v195_v7, %v3114_v6 }
  0x1a   :  { %263 = vperm.xlu1 %1525, %v192_v13   ;;  %258 = vperm.xlu0 %1524, %v191_v14   ;;  %v792_v13 = vld [vmem:[%s3099_s10 + $0xe8] sm:$0xff]  ;;  %v123_v14 = vld [vmem:[%s3102_s2 + $0x40] sm:$0xff] }
  0x1e   :  { %273 = vperm.xlu1 %1525, %v194_v15   ;;  %268 = vperm.xlu0 %1524, %v193_v16   ;;  %v124_v15 = vld [vmem:[%s3102_s2 + $0x48] sm:$0xff]  ;;  %v791_v16 = vld [vmem:[%s3099_s10 + $0xe0] sm:$0xff] }
  0x22   :  { %915 = vperm.xlu1 %1525, %v780_v17   ;;  %910 = vperm.xlu0 %1524, %v779_v18   ;;  %v125_v18 = vld [vmem:[%s3102_s2 + $0x50] sm:$0xff] }
  0x26   :  { %835 = vperm.xlu1 %1525, %v764_v19   ;;  %830 = vperm.xlu0 %1524, %v763_v20   ;;  %v126_v19 = vld [vmem:[%s3102_s2 + $0x58] sm:$0xff] }
  0x2a   :  { %1075 = vperm.xlu1 %1525, %v812_v21   ;;  %1070 = vperm.xlu0 %1524, %v811_v22   ;;  %v116_v21 = vld [vmem:[%s3102_s2 + $0x8] sm:$0xff]  ;;  %v1850_v22 = vpack.c.bf16 %v494_v8, %v494_v8  ;;  %v135_v8 = vld [vmem:[%s3102_s2 + $0xa0] sm:$0xff] }
  0x2e   :  { %995 = vperm.xlu1 %1525, %v796_v23   ;;  %990 = vperm.xlu0 %1524, %v795_v24  }
  0x32   :  { %925 = vperm.xlu1 %1525, %v782_v25   ;;  %920 = vperm.xlu0 %1524, %v781_v26  }
  0x36   :  { %845 = vperm.xlu1 %1525, %v766_v27   ;;  %840 = vperm.xlu0 %1524, %v765_v28   ;;  %v118_v27 = vld [vmem:[%s3102_s2 + $0x18] sm:$0xff]  ;;  %v115_v28 = vld [vmem:[%s3102_s2] sm:$0xff] }
  0x3a   :  { %1085 = vperm.xlu1 %1525, %v814_v29   ;;  %1080 = vperm.xlu0 %1524, %v813_v30   ;;  %v117_v29 = vld [vmem:[%s3102_s2 + $0x10] sm:$0xff] }
  0x3e   :  { %1005 = vperm.xlu1 %1525, %v798_v31   ;;  %1000 = vperm.xlu0 %1524, %v797_v32  }
  0x42   :  { %935 = vperm.xlu1 %1525, %v784_v33   ;;  %930 = vperm.xlu0 %1524, %v783_v34   ;;  %v776_v34 = vld [vmem:[%s3099_s10 + $0x68] sm:$0xff] }
  0x46   :  { %855 = vperm.xlu1 %1525, %v768_v35   ;;  %850 = vperm.xlu0 %1524, %v767_v36  }
  0x4a   :  { %1095 = vperm.xlu1 %1525, %v816_v37   ;;  %1090 = vperm.xlu0 %1524, %v815_v38  }
  0x4e   :  { %1015 = vperm.xlu1 %1525, %v800_v39   ;;  %1010 = vperm.xlu0 %1524, %v799_v40   ;;  %v127_v39 = vld [vmem:[%s3102_s2 + $0x60] sm:$0xff]  ;;  %v128_v40 = vld [vmem:[%s3102_s2 + $0x68] sm:$0xff] }
  0x52   :  { %945 = vperm.xlu1 %1525, %v786_v41   ;;  %940 = vperm.xlu0 %1524, %v785_v42   ;;  %v775_v41 = vld [vmem:[%s3099_s10 + $0x60] sm:$0xff] }
  0x56   :  { %865 = vperm.xlu1 %1525, %v770_v43   ;;  %860 = vperm.xlu0 %1524, %v769_v44   ;;  %v129_v43 = vld [vmem:[%s3102_s2 + $0x70] sm:$0xff]  ;;  %v130_v44 = vld [vmem:[%s3102_s2 + $0x78] sm:$0xff] }
  0x5a   :  { %1105 = vperm.xlu1 %1525, %v818_v45   ;;  %1100 = vperm.xlu0 %1524, %v817_v46   ;;  %v52_v46 = vld [vmem:[%s3103_s1 + $0x8] sm:$0xff] }
  0x5e   :  { %1025 = vperm.xlu1 %1525, %v802_v47   ;;  %1020 = vperm.xlu0 %1524, %v801_v48  }
  0x62   :  { %955 = vperm.xlu1 %1525, %v788_v49   ;;  %950 = vperm.xlu0 %1524, %v787_v50  }
  0x66   :  { %875 = vperm.xlu1 %1525, %v772_v51   ;;  %870 = vperm.xlu0 %1524, %v771_v52  }
  0x6a   :  { %1115 = vperm.xlu1 %1525, %v820_v53   ;;  %1110 = vperm.xlu0 %1524, %v819_v54  }
  0x6e   :  { %1035 = vperm.xlu1 %1525, %v804_v55   ;;  %1030 = vperm.xlu0 %1524, %v803_v56   ;;  %v120_v55 = vld [vmem:[%s3102_s2 + $0x28] sm:$0xff]  ;;  %v54_v56 = vld [vmem:[%s3103_s1 + $0x18] sm:$0xff] }
  0x72   :  { %965 = vperm.xlu1 %1525, %v790_v57   ;;  %960 = vperm.xlu0 %1524, %v789_v58   ;;  %v122_v57 = vld [vmem:[%s3102_s2 + $0x38] sm:$0xff] }
  0x76   :  { %885 = vperm.xlu1 %1525, %v774_v59   ;;  %880 = vperm.xlu0 %1524, %v773_v60  }
  0x7a   :  { %1125 = vperm.xlu1 %1525, %v822_v62   ;;  %1120 = vperm.xlu0 %1524, %v821_v63   ;;  %v824_v62 = vld [vmem:[%s3099_s10 + $0x1e8] sm:$0xff] }
  0x7e   :  { %1045 = vperm.xlu1 %1525, %v806_v1   ;;  %1040 = vperm.xlu0 %1524, %v805_v2  }
  0x81   :  { %v209_v17 = vpop.permute.xlu1 %208  ;;  %v199_v20 = vpop.permute.xlu0 %198 }
  0x82   :  { %v305_v23 = vmul.f32 %v1815_v9, %v209_v17  ;;  %v306_v24 = vmul.f32 %v1819_v10, %v209_v17  ;;  %v307_v25 = vmul.f32 %v1823_v11, %v209_v17  ;;  %v308_v26 = vmul.f32 %v1827_v12, %v209_v17  ;;  %975 = vperm.xlu1 %1525, %v792_v13   ;;  %v136_v13 = vld [vmem:[%s3102_s2 + $0xa8] sm:$0xff]  ;;  %v138_v17 = vld [vmem:[%s3102_s2 + $0xb8] sm:$0xff] }
  0x83   :  { %v297_v30 = vmul.f32 %v1815_v9, %v199_v20  ;;  %v298_v31 = vmul.f32 %v1819_v10, %v199_v20  ;;  %v299_v32 = vmul.f32 %v1823_v11, %v199_v20  ;;  %v300_v33 = vmul.f32 %v1827_v12, %v199_v20  ;;  %970 = vperm.xlu0 %1524, %v791_v16   ;;  %v137_v16 = vld [vmem:[%s3102_s2 + $0xb0] sm:$0xff] }
  0x84   :  { %v1872_v35 = vmul.f32 %v305_v23, %v123_v14  ;;  %v1874_v36 = vmul.f32 %v306_v24, %v124_v15  ;;  %v1876_v37 = vmul.f32 %v307_v25, %v125_v18  ;;  %v1878_v38 = vmul.f32 %v308_v26, %v126_v19  ;;  %v823_v14 = vld [vmem:[%s3099_s10 + $0x1e0] sm:$0xff] }
  0x85   :  { %v214_v42 = vpop.permute.xlu1 %213  ;;  %v204_v45 = vpop.permute.xlu0 %203  ;;  %v362_v47 = vmul.f32 %v298_v31, %v116_v21  ;;  %v364_v48 = vmul.f32 %v300_v33, %v118_v27  ;;  %v1898_v49 = vmul.f32 %v297_v30, %v115_v28  ;;  %v1900_v50 = vmul.f32 %v299_v32, %v117_v29  ;;  %v131_v19 = vld [vmem:[%s3102_s2 + $0x80] sm:$0xff]  ;;  %v132_v29 = vld [vmem:[%s3102_s2 + $0x88] sm:$0xff]  ;;  %v133_v30 = vld [vmem:[%s3102_s2 + $0x90] sm:$0xff] }
  0x86   :  { %v309_v51 = vmul.f32 %v1815_v9, %v214_v42  ;;  %v310_v52 = vmul.f32 %v1819_v10, %v214_v42  ;;  %v311_v53 = vmul.f32 %v1823_v11, %v214_v42  ;;  %v312_v54 = vmul.f32 %v1827_v12, %v214_v42  ;;  %895 = vperm.xlu1 %1525, %v776_v34   ;;  %v134_v31 = vld [vmem:[%s3102_s2 + $0x98] sm:$0xff]  ;;  %v145_v42 = vld [vmem:[%s3102_s2 + $0xf0] sm:$0xff] }
  0x87   :  { %v1916_v58 = vmul.f32 %v1815_v9, %v204_v45  ;;  %v302_v59 = vmul.f32 %v1819_v10, %v204_v45  ;;  %v1920_v60 = vmul.f32 %v1823_v11, %v204_v45  ;;  %v304_v61 = vmul.f32 %v1827_v12, %v204_v45  ;;  %890 = vperm.xlu0 %1524, %v775_v41   ;;  %v144_v41 = vld [vmem:[%s3102_s2 + $0xe8] sm:$0xff] }
  0x88   :  { %v1926_v63 = vmul.f32 %v309_v51, %v127_v39  ;;  %v1928_v1 = vmul.f32 %v310_v52, %v128_v40  ;;  %v1930_v2 = vmul.f32 %v311_v53, %v129_v43  ;;  %v1932_v7 = vmul.f32 %v312_v54, %v130_v44  ;;  %v143_v40 = vld [vmem:[%s3102_s2 + $0xe0] sm:$0xff]  ;;  %v146_v43 = vld [vmem:[%s3102_s2 + $0xf8] sm:$0xff]  ;;  %v808_v44 = vld [vmem:[%s3099_s10 + $0x168] sm:$0xff] }
  0x89   :  { %v224_v15 = vpop.permute.xlu1 %223  ;;  %v219_v18 = vpop.permute.xlu0 %218  ;;  %v1952_v20 = vmul.f32 %v302_v59, %v120_v55  ;;  %v1954_v21 = vadd.f32 %v362_v47, %v52_v46  ;;  %v1956_v23 = vmul.f32 %v304_v61, %v122_v57  ;;  %v1958_v24 = vadd.f32 %v364_v48, %v54_v56  ;;  %v139_v51 = vld [vmem:[%s3102_s2 + $0xc0] sm:$0xff]  ;;  %v140_v52 = vld [vmem:[%s3102_s2 + $0xc8] sm:$0xff] }
  0x8a   :  { %v317_v25 = vmul.f32 %v1815_v9, %v224_v15  ;;  %v318_v26 = vmul.f32 %v1819_v10, %v224_v15  ;;  %v319_v27 = vmul.f32 %v1823_v11, %v224_v15  ;;  %v320_v28 = vmul.f32 %v1827_v12, %v224_v15  ;;  %1135 = vperm.xlu1 %1525, %v824_v62   ;;  %v807_v53 = vld [vmem:[%s3099_s10 + $0x160] sm:$0xff]  ;;  %v141_v62 = vld [vmem:[%s3102_s2 + $0xd0] sm:$0xff] }
  0x8b   :  { %v313_v32 = vmul.f32 %v1815_v9, %v219_v18  ;;  %v314_v33 = vmul.f32 %v1819_v10, %v219_v18  ;;  %v315_v34 = vmul.f32 %v1823_v11, %v219_v18  ;;  %v316_v39 = vmul.f32 %v1827_v12, %v219_v18  ;;  %1130 = vperm.xlu0 %1524, %v823_v14   ;;  %v58_v18 = vld [vmem:[%s3103_s1 + $0x38] sm:$0xff] }
  0x8c   :  { %v1992_v45 = vmul.f32 %v317_v25, %v135_v8  ;;  %v1994_v46 = vmul.f32 %v318_v26, %v136_v13  ;;  %v1996_v47 = vmul.f32 %v319_v27, %v137_v16  ;;  %v1998_v48 = vmul.f32 %v320_v28, %v138_v17  ;;  %v142_v8 = vld [vmem:[%s3102_s2 + $0xd8] sm:$0xff]  ;;  %v56_v13 = vld [vmem:[%s3103_s1 + $0x28] sm:$0xff]  ;;  %v119_v25 = vld [vmem:[%s3102_s2 + $0x20] sm:$0xff] }
  0x8d   :  { %v2009_v54 = vmul.f32 %v313_v32, %v131_v19  ;;  %v2011_v55 = vmul.f32 %v314_v33, %v132_v29  ;;  %v2013_v56 = vmul.f32 %v315_v34, %v133_v30  ;;  %v2015_v57 = vmul.f32 %v316_v39, %v134_v31  ;;  %v234_v59 = vpop.permute.xlu1 %233  ;;  %v229_v61 = vpop.permute.xlu0 %228  ;;  %v51_v19 = vld [vmem:[%s3103_s1] sm:$0xff]  ;;  %v53_v30 = vld [vmem:[%s3103_s1 + $0x10] sm:$0xff]  ;;  %v794_v32 = vld [vmem:[%s3099_s10 + $0xf8] sm:$0xff] }
  0x8e   :  { %v325_v14 = vmul.f32 %v1815_v9, %v234_v59  ;;  %v326_v15 = vmul.f32 %v1819_v10, %v234_v59  ;;  %v327_v16 = vmul.f32 %v1823_v11, %v234_v59  ;;  %v328_v17 = vmul.f32 %v1827_v12, %v234_v59  ;;  %1055 = vperm.xlu1 %1525, %v808_v44   ;;  %v121_v31 = vld [vmem:[%s3102_s2 + $0x30] sm:$0xff]  ;;  %v64_v59 = vld [vmem:[%s3103_s1 + $0x68] sm:$0xff] }
  0x8f   :  { %v321_v26 = vmul.f32 %v1815_v9, %v229_v61  ;;  %v322_v27 = vmul.f32 %v1819_v10, %v229_v61  ;;  %v323_v28 = vmul.f32 %v1823_v11, %v229_v61  ;;  %v324_v29 = vmul.f32 %v1827_v12, %v229_v61  ;;  %1050 = vperm.xlu0 %1524, %v807_v53   ;;  %v60_v53 = vld [vmem:[%s3103_s1 + $0x48] sm:$0xff]  ;;  %v793_v61 = vld [vmem:[%s3099_s10 + $0xf0] sm:$0xff] }
  0x90   :  { %v2052_v33 = vmul.f32 %v325_v14, %v143_v40  ;;  %v2054_v34 = vmul.f32 %v326_v15, %v144_v41  ;;  %v2056_v39 = vmul.f32 %v327_v16, %v145_v42  ;;  %v2058_v44 = vmul.f32 %v328_v17, %v146_v43  ;;  %v55_v14 = vld [vmem:[%s3103_s1 + $0x20] sm:$0xff]  ;;  %v62_v15 = vld [vmem:[%s3103_s1 + $0x58] sm:$0xff] }
  0x91   :  { %v2069_v40 = vmul.f32 %v321_v26, %v139_v51  ;;  %v2071_v41 = vmul.f32 %v322_v27, %v140_v52  ;;  %v2073_v42 = vmul.f32 %v323_v28, %v141_v62  ;;  %v2075_v43 = vmul.f32 %v324_v29, %v142_v8  ;;  %v244_v16 = vpop.permute.xlu1 %243  ;;  %v239_v17 = vpop.permute.xlu0 %238  ;;  %v57_v8 = vld [vmem:[%s3103_s1 + $0x30] sm:$0xff]  ;;  %v66_v26 = vld [vmem:[%s3103_s1 + $0x78] sm:$0xff] }
  0x92   :  { %v430_v6 = vadd.f32 %v1952_v20, %v56_v13  ;;  %v432_v51 = vadd.f32 %v1956_v23, %v58_v18  ;;  %v365_v52 = vmul.f32 %v1916_v58, %v119_v25  ;;  %v425_v62 = vadd.f32 %v1898_v49, %v51_v19  ;;  %985 = vperm.xlu1 %1525, %v794_v32   ;;  %v151_v19 = vld [vmem:[%s3102_s2 + $0x120] sm:$0xff] }
  0x93   :  { %v367_v27 = vmul.f32 %v1920_v60, %v121_v31  ;;  %v427_v28 = vadd.f32 %v1900_v50, %v53_v30  ;;  %v434_v20 = vadd.f32 %v1874_v36, %v60_v53  ;;  %v438_v23 = vadd.f32 %v1928_v1, %v64_v59  ;;  %980 = vperm.xlu0 %1524, %v793_v61   ;;  %v152_v50 = vld [vmem:[%s3102_s2 + $0x128] sm:$0xff]  ;;  %v778_v36 = vld [vmem:[%s3099_s10 + $0x78] sm:$0xff]  ;;  %v147_v25 = vld [vmem:[%s3102_s2 + $0x100] sm:$0xff] }
  0x94   :  { %v497_v49 = vpack.c.bf16 %v430_v6, %v1954_v21  ;;  %v499_v58 = vpack.c.bf16 %v432_v51, %v1958_v24  ;;  %v429_v13 = vadd.f32 %v365_v52, %v55_v14  ;;  %v436_v18 = vadd.f32 %v1878_v38, %v62_v15  ;;  %v153_v38 = vld [vmem:[%s3102_s2 + $0x130] sm:$0xff]  ;;  %v154_v21 = vld [vmem:[%s3102_s2 + $0x138] sm:$0xff]  ;;  %v148_v53 = vld [vmem:[%s3102_s2 + $0x108] sm:$0xff] }
  0x95   :  { %v431_v60 = vadd.f32 %v367_v27, %v57_v8  ;;  %v501_v1 = vpack.c.bf16 %v438_v23, %v434_v20  ;;  %v440_v6 = vadd.f32 %v1932_v7, %v66_v26  ;;  %v333_v24 = vmul.f32 %v1815_v9, %v244_v16  ;;  %v2120_v29 = vpop.permute.xlu1 %253  ;;  %v2122_v30 = vpop.permute.xlu0 %248  ;;  %v149_v59 = vld [vmem:[%s3102_s2 + $0x110] sm:$0xff]  ;;  %v150_v61 = vld [vmem:[%s3102_s2 + $0x118] sm:$0xff]  ;;  %v63_v8 = vld [vmem:[%s3103_s1 + $0x60] sm:$0xff] }
  0x96   :  { %549 = vmatprep.subr.bf16.mxu0 %v497_v49  ;;  %590 = vmatprep.subr.bf16.mxu1 %v499_v58  ;;  %v496_v7 = vpack.c.bf16 %v429_v13, %v425_v62  ;;  %v334_v31 = vmul.f32 %v1819_v10, %v244_v16  ;;  %v335_v32 = vmul.f32 %v1823_v11, %v244_v16  ;;  %v59_v62 = vld [vmem:[%s3103_s1 + $0x40] sm:$0xff]  ;;  %v61_v26 = vld [vmem:[%s3103_s1 + $0x50] sm:$0xff]  ;;  %v68_v49 = vld [vmem:[%s3103_s1 + $0x88] sm:$0xff] }
  0x97   :  { %v498_v14 = vpack.c.bf16 %v431_v60, %v427_v28  ;;  %v503_v15 = vpack.c.bf16 %v440_v6, %v436_v18  ;;  %v336_v51 = vmul.f32 %v1827_v12, %v244_v16  ;;  %v2136_v52 = vmul.f32 %v333_v24, %v151_v19  ;;  %905 = vperm.xlu1 %1525, %v778_v36   ;;  %v65_v23 = vld [vmem:[%s3103_s1 + $0x70] sm:$0xff]  ;;  %v70_v36 = vld [vmem:[%s3103_s1 + $0x98] sm:$0xff] }
  0x98   :  { %550 = vmatpush1.bf16.msra.mxu0 %v496_v7  ;;  %v2147_v27 = vmul.f32 %v334_v31, %v152_v50  ;;  %v2149_v28 = vmul.f32 %v335_v32, %v153_v38  ;;  %v329_v16 = vmul.f32 %v1815_v9, %v239_v17  ;;  %v330_v20 = vmul.f32 %v1819_v10, %v239_v17  ;;  %v777_v58 = vld [vmem:[%s3099_s10 + $0x70] sm:$0xff]  ;;  %v72_v50 = vld [vmem:[%s3103_s1 + $0xa8] sm:$0xff]  ;;  %v74_v7 = vld [vmem:[%s3103_s1 + $0xb8] sm:$0xff] }
  0x99   :  { %591 = vmatpush1.bf16.msra.mxu1 %v498_v14  ;;  %551 = vmatprep.subr.bf16.mxu0 %v501_v1  ;;  %v2162_v13 = vmul.f32 %v336_v51, %v154_v21  ;;  %v331_v18 = vmul.f32 %v1823_v11, %v239_v17  ;;  %v332_v19 = vmul.f32 %v1827_v12, %v239_v17  ;;  %v2172_v60 = vpop.permute.xlu1 %263  ;;  %v2174_v6 = vpop.permute.xlu0 %258  ;;  %v826_v1 = vld [vmem:[%s3099_s10 + $0x1f8] sm:$0xff]  ;;  %v155_v51 = vld [vmem:[%s3102_s2 + $0x140] sm:$0xff] }
  0x9a   :  { %592 = vmatprep.subr.bf16.mxu1 %v503_v15  ;;  %v2179_v38 = vmul.f32 %v329_v16, %v147_v25  ;;  %v2181_v17 = vmul.f32 %v330_v20, %v148_v53  ;;  %v433_v21 = vadd.f32 %v1872_v35, %v59_v62  ;;  %v437_v24 = vadd.f32 %v1926_v63, %v63_v8  ;;  %v159_v25 = vld [vmem:[%s3102_s2 + $0x160] sm:$0xff]  ;;  %v160_v35 = vld [vmem:[%s3102_s2 + $0x168] sm:$0xff]  ;;  %v158_v16 = vld [vmem:[%s3102_s2 + $0x158] sm:$0xff] }
  0x9b   :  { %v2188_v31 = vmul.f32 %v331_v18, %v149_v59  ;;  %v2190_v32 = vmul.f32 %v332_v19, %v150_v61  ;;  %v435_v14 = vadd.f32 %v1876_v37, %v61_v26  ;;  %v439_v15 = vadd.f32 %v1930_v2, %v65_v23  ;;  %900 = vperm.xlu0 %1524, %v777_v58   ;;  %v161_v37 = vld [vmem:[%s3102_s2 + $0x170] sm:$0xff]  ;;  %v162_v2 = vld [vmem:[%s3102_s2 + $0x178] sm:$0xff]  ;;  %v156_v8 = vld [vmem:[%s3102_s2 + $0x148] sm:$0xff] }
  0x9c   :  { %v500_v63 = vpack.c.bf16 %v437_v24, %v433_v21  ;;  %v442_v53 = vadd.f32 %v2011_v55, %v68_v49  ;;  %v446_v59 = vadd.f32 %v1994_v46, %v72_v50  ;;  %v444_v61 = vadd.f32 %v2015_v57, %v70_v36  ;;  %1145 = vperm.xlu1 %1525, %v826_v1   ;;  %v157_v26 = vld [vmem:[%s3102_s2 + $0x150] sm:$0xff]  ;;  %v67_v19 = vld [vmem:[%s3103_s1 + $0x80] sm:$0xff] }
  0x9d   :  { %v502_v62 = vpack.c.bf16 %v439_v15, %v435_v14  ;;  %v448_v55 = vadd.f32 %v1998_v48, %v74_v7  ;;  %v341_v46 = vmul.f32 %v1815_v9, %v2120_v29  ;;  %v342_v57 = vmul.f32 %v1819_v10, %v2120_v29  ;;  %v2226_v20 = vpop.permute.xlu1 %273  ;;  %v2228_v48 = vpop.permute.xlu0 %268  ;;  %v71_v50 = vld [vmem:[%s3103_s1 + $0xa0] sm:$0xff]  ;;  %v69_v36 = vld [vmem:[%s3103_s1 + $0x90] sm:$0xff]  ;;  %v76_v14 = vld [vmem:[%s3103_s1 + $0xc8] sm:$0xff] }
  0x9e   :  { %552 = vmatpush1.bf16.msra.mxu0 %v500_v63  ;;  %v505_v23 = vpack.c.bf16 %v446_v59, %v442_v53  ;;  %v343_v49 = vmul.f32 %v1823_v11, %v2120_v29  ;;  %v344_v58 = vmul.f32 %v1827_v12, %v2120_v29  ;;  %v337_v18 = vmul.f32 %v1815_v9, %v2122_v30  ;;  %v73_v7 = vld [vmem:[%s3103_s1 + $0xb0] sm:$0xff]  ;;  %v80_v59 = vld [vmem:[%s3103_s1 + $0xe8] sm:$0xff] }
  0x9f   :  { %593 = vmatpush1.bf16.msra.mxu1 %v502_v62  ;;  %v507_v1 = vpack.c.bf16 %v448_v55, %v444_v61  ;;  %v2245_v21 = vmul.f32 %v341_v46, %v159_v25  ;;  %v2247_v29 = vmul.f32 %v342_v57, %v160_v35  ;;  %v338_v24 = vmul.f32 %v1819_v10, %v2122_v30  ;;  %v825_v15 = vld [vmem:[%s3099_s10 + $0x1f0] sm:$0xff]  ;;  %v78_v61 = vld [vmem:[%s3103_s1 + $0xd8] sm:$0xff] }
  0xa0   :  { %553 = vmatprep.subr.bf16.mxu0 %v505_v23  ;;  %v2260_v25 = vmul.f32 %v343_v49, %v161_v37  ;;  %v2262_v35 = vmul.f32 %v344_v58, %v162_v2  ;;  %v339_v63 = vmul.f32 %v1823_v11, %v2122_v30  ;;  %v340_v53 = vmul.f32 %v1827_v12, %v2122_v30  ;;  %v810_v37 = vld [vmem:[%s3099_s10 + $0x178] sm:$0xff] }
  0xa1   :  { %594 = vmatprep.subr.bf16.mxu1 %v507_v1  ;;  %v2277_v2 = vmul.f32 %v337_v18, %v155_v51  ;;  %v2279_v62 = vmul.f32 %v338_v24, %v156_v8  ;;  %v441_v55 = vadd.f32 %v2009_v54, %v67_v19  ;;  %v445_v30 = vadd.f32 %v1992_v45, %v71_v50  ;;  %v82_v46 = vld [vmem:[%s3103_s1 + $0xf8] sm:$0xff]  ;;  %v2286_v57 = vpop.permute.xlu1 %915  ;;  %v2288_v23 = vpop.permute.xlu0 %910  ;;  %v167_v45 = vld [vmem:[%s3102_s2 + $0x1a0] sm:$0xff]  ;;  %v164_v1 = vld [vmem:[%s3102_s2 + $0x188] sm:$0xff] }
  0xa2   :  { %v2290_v49 = vmul.f32 %v339_v63, %v157_v26  ;;  %v2292_v58 = vmul.f32 %v340_v53, %v158_v16  ;;  %v443_v51 = vadd.f32 %v2013_v56, %v69_v36  ;;  %v447_v8 = vadd.f32 %v1996_v47, %v73_v7  ;;  %1140 = vperm.xlu0 %1524, %v825_v15   ;;  %v168_v26 = vld [vmem:[%s3102_s2 + $0x1a8] sm:$0xff]  ;;  %v169_v47 = vld [vmem:[%s3102_s2 + $0x1b0] sm:$0xff]  ;;  %v170_v56 = vld [vmem:[%s3102_s2 + $0x1b8] sm:$0xff] }
  0xa3   :  { %v504_v54 = vpack.c.bf16 %v445_v30, %v441_v55  ;;  %v450_v18 = vadd.f32 %v2071_v41, %v76_v14  ;;  %v454_v19 = vadd.f32 %v2054_v34, %v80_v59  ;;  %v452_v50 = vadd.f32 %v2075_v43, %v78_v61  ;;  %1065 = vperm.xlu1 %1525, %v810_v37   ;;  %v163_v36 = vld [vmem:[%s3102_s2 + $0x180] sm:$0xff]  ;;  %v165_v24 = vld [vmem:[%s3102_s2 + $0x190] sm:$0xff]  ;;  %v166_v15 = vld [vmem:[%s3102_s2 + $0x198] sm:$0xff] }
  0xa4   :  { %v506_v16 = vpack.c.bf16 %v447_v8, %v443_v51  ;;  %v456_v41 = vadd.f32 %v2058_v44, %v82_v46  ;;  %v349_v34 = vmul.f32 %v1815_v9, %v2172_v60  ;;  %v350_v43 = vmul.f32 %v1819_v10, %v2172_v60  ;;  %v75_v53 = vld [vmem:[%s3103_s1 + $0xc0] sm:$0xff]  ;;  %v77_v51 = vld [vmem:[%s3103_s1 + $0xd0] sm:$0xff] }
  0xa5   :  { %554 = vmatpush1.bf16.msra.mxu0 %v504_v54  ;;  %v509_v44 = vpack.c.bf16 %v454_v19, %v450_v18  ;;  %v351_v7 = vmul.f32 %v1823_v11, %v2172_v60  ;;  %v352_v14 = vmul.f32 %v1827_v12, %v2172_v60  ;;  %v345_v63 = vmul.f32 %v1815_v9, %v2174_v6  ;;  %v79_v59 = vld [vmem:[%s3103_s1 + $0xe0] sm:$0xff]  ;;  %v2340_v61 = vpop.permute.xlu1 %835  ;;  %v2342_v37 = vpop.permute.xlu0 %830  ;;  %v81_v8 = vld [vmem:[%s3103_s1 + $0xf0] sm:$0xff] }
  0xa6   :  { %595 = vmatpush1.bf16.msra.mxu1 %v506_v16  ;;  %v511_v60 = vpack.c.bf16 %v456_v41, %v452_v50  ;;  %v2344_v55 = vmul.f32 %v349_v34, %v167_v45  ;;  %v2346_v30 = vmul.f32 %v350_v43, %v168_v26  ;;  %v346_v46 = vmul.f32 %v1819_v10, %v2174_v6  ;;  %v809_v54 = vld [vmem:[%s3099_s10 + $0x170] sm:$0xff]  ;;  %v84_v26 = vld [vmem:[%s3103_s1 + $0x108] sm:$0xff]  ;;  %v90_v43 = vld [vmem:[%s3103_s1 + $0x138] sm:$0xff] }
  0xa7   :  { %555 = vmatprep.subr.bf16.mxu0 %v509_v44  ;;  %v2359_v45 = vmul.f32 %v351_v7, %v169_v47  ;;  %v2361_v18 = vmul.f32 %v352_v14, %v170_v56  ;;  %v347_v19 = vmul.f32 %v1823_v11, %v2174_v6  ;;  %v348_v50 = vmul.f32 %v1827_v12, %v2174_v6  ;;  %v88_v16 = vld [vmem:[%s3103_s1 + $0x128] sm:$0xff]  ;;  %v86_v47 = vld [vmem:[%s3103_s1 + $0x118] sm:$0xff] }
  0xa8   :  { %596 = vmatprep.subr.bf16.mxu1 %v511_v60  ;;  %v2376_v56 = vmul.f32 %v345_v63, %v163_v36  ;;  %v2378_v41 = vmul.f32 %v346_v46, %v164_v1  ;;  %v449_v34 = vadd.f32 %v2069_v40, %v75_v53  ;;  %v453_v6 = vadd.f32 %v2052_v33, %v79_v59  ;;  %v171_v46 = vld [vmem:[%s3102_s2 + $0x1c0] sm:$0xff] }
  0xa9   :  { %v2385_v44 = vmul.f32 %v347_v19, %v165_v24  ;;  %v2387_v7 = vmul.f32 %v348_v50, %v166_v15  ;;  %v451_v14 = vadd.f32 %v2073_v42, %v77_v51  ;;  %v455_v60 = vadd.f32 %v2056_v39, %v81_v8  ;;  %1060 = vperm.xlu0 %1524, %v809_v54   ;;  %v2391_v36 = vpop.permute.xlu1 %1075  ;;  %v2393_v1 = vpop.permute.xlu0 %1070  ;;  %v175_v24 = vld [vmem:[%s3102_s2 + $0x1e0] sm:$0xff]  ;;  %v176_v39 = vld [vmem:[%s3102_s2 + $0x1e8] sm:$0xff]  ;;  %v177_v42 = vld [vmem:[%s3102_s2 + $0x1f0] sm:$0xff] }
  0xaa   :  { %v508_v40 = vpack.c.bf16 %v453_v6, %v449_v34  ;;  %v458_v33 = vadd.f32 %v2181_v17, %v84_v26  ;;  %v462_v63 = vadd.f32 %v2147_v27, %v88_v16  ;;  %v460_v53 = vadd.f32 %v2190_v32, %v86_v47  ;;  %v178_v27 = vld [vmem:[%s3102_s2 + $0x1f8] sm:$0xff]  ;;  %v172_v51 = vld [vmem:[%s3102_s2 + $0x1c8] sm:$0xff]  ;;  %v173_v19 = vld [vmem:[%s3102_s2 + $0x1d0] sm:$0xff] }
  0xab   :  { %v510_v15 = vpack.c.bf16 %v455_v60, %v451_v14  ;;  %v464_v59 = vadd.f32 %v2162_v13, %v90_v43  ;;  %v357_v17 = vmul.f32 %v1815_v9, %v2226_v20  ;;  %v358_v32 = vmul.f32 %v1819_v10, %v2226_v20  ;;  %v83_v26 = vld [vmem:[%s3103_s1 + $0x100] sm:$0xff]  ;;  %v174_v6 = vld [vmem:[%s3102_s2 + $0x1d8] sm:$0xff]  ;;  %v85_v43 = vld [vmem:[%s3103_s1 + $0x110] sm:$0xff] }
  0xac   :  { %556 = vmatpush1.bf16.msra.mxu0 %v508_v40  ;;  %v513_v13 = vpack.c.bf16 %v462_v63, %v458_v33  ;;  %v359_v8 = vmul.f32 %v1823_v11, %v2226_v20  ;;  %v360_v54 = vmul.f32 %v1827_v12, %v2226_v20  ;;  %v353_v50 = vmul.f32 %v1815_v9, %v2228_v48  ;;  %v87_v16 = vld [vmem:[%s3103_s1 + $0x120] sm:$0xff]  ;;  %v89_v14 = vld [vmem:[%s3103_s1 + $0x130] sm:$0xff] }
  0xad   :  { %597 = vmatpush1.bf16.msra.mxu1 %v510_v15  ;;  %v515_v47 = vpack.c.bf16 %v464_v59, %v460_v53  ;;  %v2436_v34 = vmul.f32 %v357_v17, %v175_v24  ;;  %v2438_v20 = vmul.f32 %v358_v32, %v176_v39  ;;  %v354_v9 = vmul.f32 %v1819_v10, %v2228_v48  ;;  %v2451_v60 = vpop.permute.xlu1 %995  ;;  %v2453_v40 = vpop.permute.xlu0 %990  ;;  %v92_v24 = vld [vmem:[%s3103_s1 + $0x148] sm:$0xff] }
  0xae   :  { %557 = vmatprep.subr.bf16.mxu0 %v513_v13  ;;  %v2455_v33 = vmul.f32 %v359_v8, %v177_v42  ;;  %v2457_v63 = vmul.f32 %v360_v54, %v178_v27  ;;  %v355_v10 = vmul.f32 %v1823_v11, %v2228_v48  ;;  %v356_v53 = vmul.f32 %v1827_v12, %v2228_v48  ;;  %v96_v39 = vld [vmem:[%s3103_s1 + $0x168] sm:$0xff]  ;;  %v94_v42 = vld [vmem:[%s3103_s1 + $0x158] sm:$0xff]  ;;  %v2484_v27 = vld [vmem:[%s3104_s11] ss:$0 sm:$0xff] }
  0xaf   :  { %598 = vmatprep.subr.bf16.mxu1 %v515_v47  ;;  %v2472_v15 = vmul.f32 %v353_v50, %v171_v46  ;;  %v2474_v59 = vmul.f32 %v354_v9, %v172_v51  ;;  %v457_v11 = vadd.f32 %v2179_v38, %v83_v26  ;;  %v461_v12 = vadd.f32 %v2136_v52, %v87_v16  ;;  %v98_v48 = vld [vmem:[%s3103_s1 + $0x178] sm:$0xff]  ;;  %v91_v52 = vld [vmem:[%s3103_s1 + $0x140] sm:$0xff]  ;;  %v93_v13 = vld [vmem:[%s3103_s1 + $0x150] sm:$0xff] }
  0xb0   :  { %v2486_v17 = vmul.f32 %v355_v10, %v173_v19  ;;  %v2488_v32 = vmul.f32 %v356_v53, %v174_v6  ;;  %v459_v46 = vadd.f32 %v2188_v31, %v85_v43  ;;  %v463_v51 = vadd.f32 %v2149_v28, %v89_v14  ;;  %v95_v38 = vld [vmem:[%s3103_s1 + $0x160] sm:$0xff]  ;;  %v716_v28 = vld [vmem:[%s3105_s9 + $0x88] sm:$0xff]  ;;  %v97_v26 = vld [vmem:[%s3103_s1 + $0x170] sm:$0xff] }
  0xb1   :  { %v512_v8 = vpack.c.bf16 %v461_v12, %v457_v11  ;;  %v466_v54 = vadd.f32 %v2279_v62, %v92_v24  ;;  %v470_v19 = vadd.f32 %v2247_v29, %v96_v39  ;;  %v468_v31 = vadd.f32 %v2292_v58, %v94_v42  ;;  %v715_v50 = vld [vmem:[%s3105_s9 + $0x80] sm:$0xff]  ;;  %v2513_v16 = vpop.permute.xlu1 %925  ;;  %v2515_v47 = vpop.permute.xlu0 %920  ;;  %v100_v9 = vld [vmem:[%s3103_s1 + $0x188] sm:$0xff]  ;;  %v102_v14 = vld [vmem:[%s3103_s1 + $0x198] sm:$0xff] }
  0xb2   :  { %v514_v62 = vpack.c.bf16 %v463_v51, %v459_v46  ;;  %v472_v29 = vadd.f32 %v2262_v35, %v98_v48  ;;  %v1171_v58 = vmul.f32 %v2484_v27, %v2286_v57  ;;  %v1170_v6 = vmul.f32 %v2484_v27, %v2288_v23  ;;  %v104_v43 = vld [vmem:[%s3103_s1 + $0x1a8] sm:$0xff]  ;;  %v651_v23 = vld [vmem:[%s3106_s8 + $0x80] sm:$0xff]  ;;  %v106_v39 = vld [vmem:[%s3103_s1 + $0x1b8] sm:$0xff] }
  0xb3   :  { %558 = vmatpush1.bf16.msra.mxu0 %v512_v8  ;;  %v517_v35 = vpack.c.bf16 %v470_v19, %v466_v54  ;;  %v652_v57 = vld [vmem:[%s3106_s8 + $0x88] sm:$0xff]  ;;  %v465_v10 = vadd.f32 %v2277_v2, %v91_v52  ;;  %v469_v53 = vadd.f32 %v2245_v21, %v95_v38  ;;  %v467_v24 = vadd.f32 %v2290_v49, %v93_v13  ;;  %v99_v21 = vld [vmem:[%s3103_s1 + $0x180] sm:$0xff]  ;;  %v101_v38 = vld [vmem:[%s3103_s1 + $0x190] sm:$0xff] }
  0xb4   :  { %599 = vmatpush1.bf16.msra.mxu1 %v514_v62  ;;  %v519_v42 = vpack.c.bf16 %v472_v29, %v468_v31  ;;  %v1235_v11 = vmul.f32 %v1171_v58, %v716_v28  ;;  %v1234_v12 = vmul.f32 %v1170_v6, %v715_v50  ;;  %v471_v48 = vadd.f32 %v2260_v25, %v97_v26  ;;  %v700_v46 = vld [vmem:[%s3105_s9 + $0x8] sm:$0xff]  ;;  %v103_v25 = vld [vmem:[%s3103_s1 + $0x1a0] sm:$0xff]  ;;  %v105_v13 = vld [vmem:[%s3103_s1 + $0x1b0] sm:$0xff] }
  0xb5   :  { %559 = vmatprep.subr.bf16.mxu0 %v517_v35  ;;  %v516_v2 = vpack.c.bf16 %v469_v53, %v465_v10  ;;  %v474_v49 = vadd.f32 %v2378_v41, %v100_v9  ;;  %v478_v51 = vadd.f32 %v2346_v30, %v104_v43  ;;  %v476_v52 = vadd.f32 %v2387_v7, %v102_v14  ;;  %v2562_v8 = vpop.permute.xlu1 %845  ;;  %v2564_v54 = vpop.permute.xlu0 %840  ;;  %v699_v31 = vld [vmem:[%s3105_s9] sm:$0xff]  ;;  %v108_v28 = vld [vmem:[%s3103_s1 + $0x1c8] sm:$0xff]  ;;  %v110_v58 = vld [vmem:[%s3103_s1 + $0x1d8] sm:$0xff] }
  0xb6   :  { %600 = vmatprep.subr.bf16.mxu1 %v519_v42  ;;  %v2566_v30 = vadd.f32 %v1235_v11, %v652_v57  ;;  %v2568_v41 = vadd.f32 %v1234_v12, %v651_v23  ;;  %v518_v7 = vpack.c.bf16 %v471_v48, %v467_v24  ;;  %v480_v19 = vadd.f32 %v2361_v18, %v106_v39  ;;  %v112_v50 = vld [vmem:[%s3103_s1 + $0x1e8] sm:$0xff]  ;;  %v114_v6 = vld [vmem:[%s3103_s1 + $0x1f8] sm:$0xff]  ;;  %v107_v53 = vld [vmem:[%s3103_s1 + $0x1c0] sm:$0xff] }
  0xb7   :  { %560 = vmatpush1.bf16.msra.mxu0 %v516_v2  ;;  %v521_v26 = vpack.c.bf16 %v478_v51, %v474_v49  ;;  %v1155_v62 = vmul.f32 %v2484_v27, %v2340_v61  ;;  %v1154_v18 = vmul.f32 %v2484_v27, %v2342_v37  ;;  %v473_v29 = vadd.f32 %v2376_v56, %v99_v21  ;;  %v636_v43 = vld [vmem:[%s3106_s8 + $0x8] sm:$0xff]  ;;  %v635_v61 = vld [vmem:[%s3106_s8] sm:$0xff]  ;;  %v109_v11 = vld [vmem:[%s3103_s1 + $0x1d0] sm:$0xff] }
  0xb8   :  { %601 = vmatpush1.bf16.msra.mxu1 %v518_v7  ;;  %v523_v9 = vpack.c.bf16 %v480_v19, %v476_v52  ;;  %v477_v37 = vadd.f32 %v2344_v55, %v103_v25  ;;  %v475_v56 = vadd.f32 %v2385_v44, %v101_v38  ;;  %v479_v14 = vadd.f32 %v2359_v45, %v105_v13  ;;  %v113_v21 = vld [vmem:[%s3103_s1 + $0x1f0] sm:$0xff]  ;;  %v684_v49 = vld [vmem:[%s3106_s8 + $0x188] sm:$0xff]  ;;  %v683_v38 = vld [vmem:[%s3106_s8 + $0x180] sm:$0xff] }
  0xb9   :  { %561 = vmatprep.subr.bf16.mxu0 %v521_v26  ;;  %v1219_v35 = vmul.f32 %v1155_v62, %v700_v46  ;;  %v1218_v57 = vmul.f32 %v1154_v18, %v699_v31  ;;  %v482_v23 = vadd.f32 %v2474_v59, %v108_v28  ;;  %v486_v10 = vadd.f32 %v2438_v20, %v112_v50  ;;  %v2605_v24 = vpop.permute.xlu1 %1085  ;;  %v2607_v39 = vpop.permute.xlu0 %1080  ;;  %v748_v59 = vld [vmem:[%s3105_s9 + $0x188] sm:$0xff]  ;;  %v111_v20 = vld [vmem:[%s3103_s1 + $0x1e0] sm:$0xff] }
  0xba   :  { %602 = vmatprep.subr.bf16.mxu1 %v523_v9  ;;  %v520_v55 = vpack.c.bf16 %v477_v37, %v473_v29  ;;  %v522_v44 = vpack.c.bf16 %v479_v14, %v475_v56  ;;  %v484_v45 = vadd.f32 %v2488_v32, %v110_v58  ;;  %v488_v42 = vadd.f32 %v2457_v63, %v114_v6  ;;  %v747_v32 = vld [vmem:[%s3105_s9 + $0x180] sm:$0xff]  ;;  %v732_v19 = vld [vmem:[%s3105_s9 + $0x108] sm:$0xff]  ;;  %v717_v29 = vld [vmem:[%s3105_s9 + $0x90] sm:$0xff] }
  0xbb   :  { %v2620_v12 = vadd.f32 %v1219_v35, %v636_v43  ;;  %v2622_v48 = vadd.f32 %v1218_v57, %v635_v61  ;;  %v525_v46 = vpack.c.bf16 %v486_v10, %v482_v23  ;;  %v1203_v63 = vmul.f32 %v2484_v27, %v2391_v36  ;;  %v654_v43 = vld [vmem:[%s3106_s8 + $0x98] sm:$0xff]  ;;  %v653_v14 = vld [vmem:[%s3106_s8 + $0x90] sm:$0xff] }
  0xbc   :  { %562 = vmatpush1.bf16.msra.mxu0 %v520_v55  ;;  %603 = vmatpush1.bf16.msra.mxu1 %v522_v44  ;;  %v527_v2 = vpack.c.bf16 %v488_v42, %v484_v45  ;;  %v1202_v51 = vmul.f32 %v2484_v27, %v2393_v1  ;;  %v481_v36 = vadd.f32 %v2472_v15, %v107_v53  ;;  %v638_v44 = vld [vmem:[%s3106_s8 + $0x18] sm:$0xff]  ;;  %v637_v45 = vld [vmem:[%s3106_s8 + $0x10] sm:$0xff] }
  0xbd   :  { %v1355_v52 = vpack.c.bf16 %v2620_v12, %v2622_v48  ;;  %563 = vmatprep.subr.bf16.mxu0 %v525_v46  ;;  %v1267_v25 = vmul.f32 %v1203_v63, %v748_v59  ;;  %v485_v13 = vadd.f32 %v2436_v34, %v111_v20  ;;  %v483_v7 = vadd.f32 %v2486_v17, %v109_v11  ;;  %v1006_v1 = vpop.permute.xlu1 %1005  ;;  %v2648_v31 = vpop.permute.xlu0 %1000  ;;  %v731_v34 = vld [vmem:[%s3105_s9 + $0x100] sm:$0xff]  ;;  %v718_v17 = vld [vmem:[%s3105_s9 + $0x98] sm:$0xff]  ;;  %v749_v11 = vld [vmem:[%s3105_s9 + $0x190] sm:$0xff] }
  0xbe   :  { %604 = vmatprep.subr.bf16.mxu1 %v527_v2  ;;  %v1266_v15 = vmul.f32 %v1202_v51, %v747_v32  ;;  %v487_v28 = vadd.f32 %v2455_v33, %v113_v21  ;;  %v1363_v50 = vpack.c.bf16 %v2566_v30, %v2568_v41  ;;  %v1187_v26 = vmul.f32 %v2484_v27, %v2451_v60  ;;  %v668_v33 = vld [vmem:[%s3106_s8 + $0x108] sm:$0xff]  ;;  %v667_v30 = vld [vmem:[%s3106_s8 + $0x100] sm:$0xff]  ;;  %v686_v2 = vld [vmem:[%s3106_s8 + $0x198] sm:$0xff] }
  0xbf   :  { %v1331_v62 = vadd.f32 %v1267_v25, %v684_v49  ;;  %v524_v18 = vpack.c.bf16 %v485_v13, %v481_v36  ;;  %v1186_v60 = vmul.f32 %v2484_v27, %v2453_v40  ;;  %v1173_v41 = vmul.f32 %v2484_v27, %v2513_v16  ;;  %v702_v40 = vld [vmem:[%s3105_s9 + $0x18] sm:$0xff]  ;;  %v701_v16 = vld [vmem:[%s3105_s9 + $0x10] sm:$0xff]  ;;  %v720_v13 = vld [vmem:[%s3105_s9 + $0xa8] sm:$0xff] }
  0xc0   :  { %v1330_v58 = vadd.f32 %v1266_v15, %v683_v38  ;;  %v526_v6 = vpack.c.bf16 %v487_v28, %v483_v7  ;;  %v1251_v9 = vmul.f32 %v1187_v26, %v732_v19  ;;  %v1172_v61 = vmul.f32 %v2484_v27, %v2515_v47  ;;  %v685_v49 = vld [vmem:[%s3106_s8 + $0x190] sm:$0xff]  ;;  %v719_v7 = vld [vmem:[%s3105_s9 + $0xa0] sm:$0xff]  ;;  %v670_v15 = vld [vmem:[%s3106_s8 + $0x118] sm:$0xff] }
  0xc1   :  { %564 = vmatpush1.bf16.msra.mxu0 %v524_v18  ;;  %v1250_v37 = vmul.f32 %v1186_v60, %v731_v34  ;;  %v1237_v56 = vmul.f32 %v1173_v41, %v718_v17  ;;  %v1157_v35 = vmul.f32 %v2484_v27, %v2562_v8  ;;  %v1156_v47 = vmul.f32 %v2484_v27, %v2564_v54  ;;  %v936_v57 = vpop.permute.xlu1 %935  ;;  %v931_v23 = vpop.permute.xlu0 %930  ;;  %v750_v54 = vld [vmem:[%s3105_s9 + $0x198] sm:$0xff]  ;;  %v733_v38 = vld [vmem:[%s3105_s9 + $0x110] sm:$0xff]  ;;  %v704_v34 = vld [vmem:[%s3105_s9 + $0x28] sm:$0xff] }
  0xc2   :  { %605 = vmatpush1.bf16.msra.mxu1 %v526_v6  ;;  %1479 = vmatprep.subr.bf16.mxu0 %v1363_v50  ;;  %v1315_v10 = vadd.f32 %v1251_v9, %v668_v33  ;;  %v1236_v53 = vmul.f32 %v1172_v61, %v717_v29  ;;  %v1379_v55 = vpack.c.bf16 %v1331_v62, %v1330_v58  ;;  %v656_v33 = vld [vmem:[%s3106_s8 + $0xa8] sm:$0xff]  ;;  %v703_v60 = vld [vmem:[%s3105_s9 + $0x20] sm:$0xff] }
  0xc3   :  { %v1314_v42 = vadd.f32 %v1250_v37, %v667_v30  ;;  %v1301_v8 = vadd.f32 %v1237_v56, %v654_v43  ;;  %v1221_v59 = vmul.f32 %v1157_v35, %v702_v40  ;;  %v1220_v20 = vmul.f32 %v1156_v47, %v701_v16  ;;  %v640_v6 = vld [vmem:[%s3106_s8 + $0x28] sm:$0xff] }
  0xc4   :  { %582 = vmatmul.mubr.bf16.vlgmr.msra.gmra.mrb[0].mxu0 %v1850_v22  ;;  %v1300_v12 = vadd.f32 %v1236_v53, %v653_v14  ;;  %1501 = vmatprep.subr.bf16.mxu1 %v1379_v55  ;;  %v1205_v48 = vmul.f32 %v2484_v27, %v2605_v24  ;;  %v1204_v46 = vmul.f32 %v2484_v27, %v2607_v39  ;;  %v734_v24 = vld [vmem:[%s3105_s9 + $0x118] sm:$0xff]  ;;  %v752_v43 = vld [vmem:[%s3105_s9 + $0x1a8] sm:$0xff]  ;;  %v639_v14 = vld [vmem:[%s3106_s8 + $0x20] sm:$0xff] }
  0xc5   :  { %v1371_v63 = vpack.c.bf16 %v1315_v10, %v1314_v42  ;;  %623 = vmatmul.mubr.bf16.vlgmr.msra.gmra.mrb[0].mxu1 %v1850_v22  ;;  %1480 = vmatpush3.bf16.msra.mxu0 %v1355_v52  ;;  %v1285_v32 = vadd.f32 %v1221_v59, %v638_v44  ;;  %v1284_v21 = vadd.f32 %v1220_v20, %v637_v45  ;;  %v856_v51 = vpop.permute.xlu1 %855  ;;  %v851_v39 = vpop.permute.xlu0 %850  ;;  %v751_v53 = vld [vmem:[%s3105_s9 + $0x1a0] sm:$0xff]  ;;  %v688_v44 = vld [vmem:[%s3106_s8 + $0x1a8] sm:$0xff] }
  0xc6   :  { %v1269_v36 = vmul.f32 %v1205_v48, %v750_v54  ;;  %v1268_v25 = vmul.f32 %v1204_v46, %v749_v11  ;;  %v1364_v22 = vpack.c.bf16 %v1301_v8, %v1300_v12  ;;  %v1189_v52 = vmul.f32 %v2484_v27, %v1006_v1  ;;  %v669_v1 = vld [vmem:[%s3106_s8 + $0x110] sm:$0xff]  ;;  %v687_v20 = vld [vmem:[%s3106_s8 + $0x1a0] sm:$0xff]  ;;  %v736_v11 = vld [vmem:[%s3105_s9 + $0x128] sm:$0xff] }
  0xc7   :  { %v1356_v19 = vpack.c.bf16 %v1285_v32, %v1284_v21  ;;  %1502 = vmatpush3.bf16.msra.mxu1 %v1371_v63  ;;  %v1188_v28 = vmul.f32 %v2484_v27, %v2648_v31  ;;  %v1175_v50 = vmul.f32 %v2484_v27, %v936_v57  ;;  %v1174_v26 = vmul.f32 %v2484_v27, %v931_v23  ;;  %v655_v31 = vld [vmem:[%s3106_s8 + $0xa0] sm:$0xff] }
  0xc8   :  { %v1333_v17 = vadd.f32 %v1269_v36, %v686_v2  ;;  %v1332_v62 = vadd.f32 %v1268_v25, %v685_v49  ;;  %1481 = vmatprep.subr.bf16.mxu0 %v1364_v22  ;;  %v1253_v18 = vmul.f32 %v1189_v52, %v734_v24  ;;  %v1159_v30 = vmul.f32 %v2484_v27, %v856_v51  ;;  %v735_v48 = vld [vmem:[%s3105_s9 + $0x120] sm:$0xff]  ;;  %v672_v24 = vld [vmem:[%s3106_s8 + $0x128] sm:$0xff]  ;;  %v722_v22 = vld [vmem:[%s3105_s9 + $0xb8] sm:$0xff] }
  0xc9   :  { %v1252_v41 = vmul.f32 %v1188_v28, %v733_v38  ;;  %1482 = vmatpush3.bf16.msra.mxu0 %v1356_v19  ;;  %v1239_v29 = vmul.f32 %v1175_v50, %v720_v13  ;;  %v1238_v58 = vmul.f32 %v1174_v26, %v719_v7  ;;  %v1158_v9 = vmul.f32 %v2484_v27, %v851_v39  ;;  %v1096_v61 = vpop.permute.xlu1 %1095  ;;  %v1091_v40 = vpop.permute.xlu0 %1090  ;;  %v671_v51 = vld [vmem:[%s3106_s8 + $0x120] sm:$0xff]  ;;  %v721_v38 = vld [vmem:[%s3105_s9 + $0xb0] sm:$0xff]  ;;  %v658_v28 = vld [vmem:[%s3106_s8 + $0xb8] sm:$0xff] }
  0xca   :  { %v1317_v16 = vadd.f32 %v1253_v18, %v670_v15  ;;  %v1380_v37 = vpack.c.bf16 %v1333_v17, %v1332_v62  ;;  %v1223_v56 = vmul.f32 %v1159_v30, %v704_v34  ;;  %v1207_v35 = vmul.f32 %v2484_v27, %v1096_v61  ;;  %v657_v50 = vld [vmem:[%s3106_s8 + $0xb0] sm:$0xff]  ;;  %v706_v18 = vld [vmem:[%s3105_s9 + $0x38] sm:$0xff] }
  0xcb   :  { %v1316_v47 = vadd.f32 %v1252_v41, %v669_v1  ;;  %v1303_v57 = vadd.f32 %v1239_v29, %v656_v33  ;;  %v1302_v23 = vadd.f32 %v1238_v58, %v655_v31  ;;  %v1222_v10 = vmul.f32 %v1158_v9, %v703_v60  ;;  %v705_v31 = vld [vmem:[%s3105_s9 + $0x30] sm:$0xff] }
  0xcc   :  { %1503 = vmatprep.subr.bf16.mxu1 %v1380_v37  ;;  %v1287_v55 = vadd.f32 %v1223_v56, %v640_v6  ;;  %v1271_v45 = vmul.f32 %v1207_v35, %v752_v43  ;;  %v1206_v42 = vmul.f32 %v2484_v27, %v1091_v40  ;;  %v642_v6 = vld [vmem:[%s3106_s8 + $0x38] sm:$0xff]  ;;  %v641_v9 = vld [vmem:[%s3106_s8 + $0x30] sm:$0xff] }
  0xcd   :  { %v1372_v8 = vpack.c.bf16 %v1317_v16, %v1316_v47  ;;  %v1286_v59 = vadd.f32 %v1222_v10, %v639_v14  ;;  %v1365_v54 = vpack.c.bf16 %v1303_v57, %v1302_v23  ;;  %v1016_v12 = vpop.permute.xlu1 %1015  ;;  %v1011_v46 = vpop.permute.xlu0 %1010  ;;  %v754_v16 = vld [vmem:[%s3105_s9 + $0x1b8] sm:$0xff]  ;;  %v753_v56 = vld [vmem:[%s3105_s9 + $0x1b0] sm:$0xff] }
  0xce   :  { %v1270_v63 = vmul.f32 %v1206_v42, %v751_v53  ;;  %v1191_v32 = vmul.f32 %v2484_v27, %v1016_v12  ;;  %v1190_v21 = vmul.f32 %v2484_v27, %v1011_v46  ;;  %v1335_v49 = vadd.f32 %v1271_v45, %v688_v44  ;;  %v690_v10 = vld [vmem:[%s3106_s8 + $0x1b8] sm:$0xff]  ;;  %v689_v53 = vld [vmem:[%s3106_s8 + $0x1b0] sm:$0xff] }
  0xcf   :  { %v1357_v2 = vpack.c.bf16 %v1287_v55, %v1286_v59  ;;  %1504 = vmatpush3.bf16.msra.mxu1 %v1372_v8  ;;  %1483 = vmatprep.subr.bf16.mxu0 %v1365_v54  ;;  %v738_v42 = vld [vmem:[%s3105_s9 + $0x138] sm:$0xff]  ;;  %v737_v59 = vld [vmem:[%s3105_s9 + $0x130] sm:$0xff] }
  0xd0   :  { %v1334_v39 = vadd.f32 %v1270_v63, %v687_v20  ;;  %v1255_v36 = vmul.f32 %v1191_v32, %v736_v11  ;;  %v1254_v25 = vmul.f32 %v1190_v21, %v735_v48  ;;  %v674_v46 = vld [vmem:[%s3106_s8 + $0x138] sm:$0xff]  ;;  %v673_v63 = vld [vmem:[%s3106_s8 + $0x130] sm:$0xff] }
  0xd1   :  { %1484 = vmatpush3.bf16.msra.mxu0 %v1357_v2  ;;  %v946_v52 = vpop.permute.xlu1 %945  ;;  %v941_v13 = vpop.permute.xlu0 %940 }
  0xd2   :  { %v1319_v7 = vadd.f32 %v1255_v36, %v672_v24  ;;  %v1318_v19 = vadd.f32 %v1254_v25, %v671_v51  ;;  %v1177_v15 = vmul.f32 %v2484_v27, %v946_v52  ;;  %v1176_v1 = vmul.f32 %v2484_v27, %v941_v13  ;;  %v723_v51 = vld [vmem:[%s3105_s9 + $0xc0] sm:$0xff] }
  0xd3   :  { %v1381_v26 = vpack.c.bf16 %v1335_v49, %v1334_v39  ;;  %v724_v49 = vld [vmem:[%s3105_s9 + $0xc8] sm:$0xff]  ;;  %v659_v13 = vld [vmem:[%s3106_s8 + $0xc0] sm:$0xff] }
  0xd4   :  { %v1373_v34 = vpack.c.bf16 %v1319_v7, %v1318_v19  ;;  %v1241_v17 = vmul.f32 %v1177_v15, %v722_v22  ;;  %v1240_v62 = vmul.f32 %v1176_v1, %v721_v38  ;;  %v660_v38 = vld [vmem:[%s3106_s8 + $0xc8] sm:$0xff] }
  0xd5   :  { %1505 = vmatprep.subr.bf16.mxu1 %v1381_v26  ;;  %v866_v33 = vpop.permute.xlu1 %865  ;;  %v861_v30 = vpop.permute.xlu0 %860  ;;  %v708_v1 = vld [vmem:[%s3105_s9 + $0x48] sm:$0xff] }
  0xd6   :  { %v1305_v60 = vadd.f32 %v1241_v17, %v658_v28  ;;  %v1304_v41 = vadd.f32 %v1240_v62, %v657_v50  ;;  %v1161_v29 = vmul.f32 %v2484_v27, %v866_v33  ;;  %v1160_v58 = vmul.f32 %v2484_v27, %v861_v30  ;;  %1506 = vmatpush3.bf16.msra.mxu1 %v1373_v34  ;;  %v707_v50 = vld [vmem:[%s3105_s9 + $0x40] sm:$0xff]  ;;  %v644_v33 = vld [vmem:[%s3106_s8 + $0x48] sm:$0xff] }
  0xd8   :  { %v1225_v43 = vmul.f32 %v1161_v29, %v706_v18  ;;  %v1224_v61 = vmul.f32 %v1160_v58, %v705_v31  ;;  %v1366_v40 = vpack.c.bf16 %v1305_v60, %v1304_v41  ;;  %v643_v31 = vld [vmem:[%s3106_s8 + $0x40] sm:$0xff]  ;;  %v756_v29 = vld [vmem:[%s3105_s9 + $0x1c8] sm:$0xff] }
  0xd9   :  { %v1106_v37 = vpop.permute.xlu1 %1105  ;;  %v1101_v14 = vpop.permute.xlu0 %1100 }
  0xda   :  { %v1289_v35 = vadd.f32 %v1225_v43, %v642_v6  ;;  %v1288_v47 = vadd.f32 %v1224_v61, %v641_v9  ;;  %v1209_v57 = vmul.f32 %v2484_v27, %v1106_v37  ;;  %v1208_v23 = vmul.f32 %v2484_v27, %v1101_v14  ;;  %1485 = vmatprep.subr.bf16.mxu0 %v1366_v40  ;;  %v755_v6 = vld [vmem:[%s3105_s9 + $0x1c0] sm:$0xff]  ;;  %v692_v37 = vld [vmem:[%s3106_s8 + $0x1c8] sm:$0xff] }
  0xdc   :  { %v1358_v55 = vpack.c.bf16 %v1289_v35, %v1288_v47  ;;  %v1273_v44 = vmul.f32 %v1209_v57, %v754_v16  ;;  %v1272_v45 = vmul.f32 %v1208_v23, %v753_v56  ;;  %v691_v56 = vld [vmem:[%s3106_s8 + $0x1c0] sm:$0xff]  ;;  %v740_v57 = vld [vmem:[%s3105_s9 + $0x148] sm:$0xff] }
  0xdd   :  { %v1026_v8 = vpop.permute.xlu1 %1025  ;;  %v1021_v20 = vpop.permute.xlu0 %1020 }
  0xde   :  { %v1337_v54 = vadd.f32 %v1273_v44, %v690_v10  ;;  %v1336_v11 = vadd.f32 %v1272_v45, %v689_v53  ;;  %v1193_v12 = vmul.f32 %v2484_v27, %v1026_v8  ;;  %v1192_v48 = vmul.f32 %v2484_v27, %v1021_v20  ;;  %1486 = vmatpush3.bf16.msra.mxu0 %v1358_v55  ;;  %v739_v10 = vld [vmem:[%s3105_s9 + $0x140] sm:$0xff]  ;;  %v676_v8 = vld [vmem:[%s3106_s8 + $0x148] sm:$0xff] }
  0xe0   :  { %v1257_v32 = vmul.f32 %v1193_v12, %v738_v42  ;;  %v1256_v21 = vmul.f32 %v1192_v48, %v737_v59  ;;  %v1382_v2 = vpack.c.bf16 %v1337_v54, %v1336_v11  ;;  %v675_v59 = vld [vmem:[%s3106_s8 + $0x140] sm:$0xff]  ;;  %v726_v12 = vld [vmem:[%s3105_s9 + $0xd8] sm:$0xff] }
  0xe1   :  { %v956_v24 = vpop.permute.xlu1 %955  ;;  %v951_v39 = vpop.permute.xlu0 %950 }
  0xe2   :  { %v1321_v36 = vadd.f32 %v1257_v32, %v674_v46  ;;  %v1320_v25 = vadd.f32 %v1256_v21, %v673_v63  ;;  %v1179_v22 = vmul.f32 %v2484_v27, %v956_v24  ;;  %v1178_v52 = vmul.f32 %v2484_v27, %v951_v39  ;;  %1507 = vmatprep.subr.bf16.mxu1 %v1382_v2  ;;  %v725_v46 = vld [vmem:[%s3105_s9 + $0xd0] sm:$0xff]  ;;  %v662_v24 = vld [vmem:[%s3106_s8 + $0xd8] sm:$0xff] }
  0xe4   :  { %v1374_v7 = vpack.c.bf16 %v1321_v36, %v1320_v25  ;;  %v1243_v19 = vmul.f32 %v1179_v22, %v724_v49  ;;  %v1242_v15 = vmul.f32 %v1178_v52, %v723_v51  ;;  %v661_v51 = vld [vmem:[%s3106_s8 + $0xd0] sm:$0xff]  ;;  %v710_v22 = vld [vmem:[%s3105_s9 + $0x58] sm:$0xff] }
  0xe5   :  { %v876_v28 = vpop.permute.xlu1 %875  ;;  %v871_v26 = vpop.permute.xlu0 %870 }
  0xe6   :  { %v1307_v34 = vadd.f32 %v1243_v19, %v660_v38  ;;  %v1306_v17 = vadd.f32 %v1242_v15, %v659_v13  ;;  %v1163_v62 = vmul.f32 %v2484_v27, %v876_v28  ;;  %v1162_v18 = vmul.f32 %v2484_v27, %v871_v26  ;;  %1508 = vmatpush3.bf16.msra.mxu1 %v1374_v7  ;;  %v709_v38 = vld [vmem:[%s3105_s9 + $0x50] sm:$0xff]  ;;  %v646_v28 = vld [vmem:[%s3106_s8 + $0x58] sm:$0xff] }
  0xe8   :  { %v1227_v30 = vmul.f32 %v1163_v62, %v708_v1  ;;  %v1226_v60 = vmul.f32 %v1162_v18, %v707_v50  ;;  %v1367_v41 = vpack.c.bf16 %v1307_v34, %v1306_v17  ;;  %v645_v50 = vld [vmem:[%s3106_s8 + $0x50] sm:$0xff]  ;;  %v758_v62 = vld [vmem:[%s3105_s9 + $0x1d8] sm:$0xff] }
  0xe9   :  { %v1116_v58 = vpop.permute.xlu1 %1115  ;;  %v1111_v9 = vpop.permute.xlu0 %1110 }
  0xea   :  { %v1291_v43 = vadd.f32 %v1227_v30, %v644_v33  ;;  %v1290_v61 = vadd.f32 %v1226_v60, %v643_v31  ;;  %v1211_v40 = vmul.f32 %v2484_v27, %v1116_v58  ;;  %v1210_v16 = vmul.f32 %v2484_v27, %v1111_v9  ;;  %1487 = vmatprep.subr.bf16.mxu0 %v1367_v41  ;;  %v757_v33 = vld [vmem:[%s3105_s9 + $0x1d0] sm:$0xff]  ;;  %v694_v58 = vld [vmem:[%s3106_s8 + $0x1d8] sm:$0xff] }
  0xec   :  { %v1359_v14 = vpack.c.bf16 %v1291_v43, %v1290_v61  ;;  %v1275_v35 = vmul.f32 %v1211_v40, %v756_v29  ;;  %v1274_v47 = vmul.f32 %v1210_v16, %v755_v6  ;;  %v693_v6 = vld [vmem:[%s3106_s8 + $0x1d0] sm:$0xff]  ;;  %v742_v40 = vld [vmem:[%s3105_s9 + $0x158] sm:$0xff] }
  0xed   :  { %v1036_v23 = vpop.permute.xlu1 %1035  ;;  %v1031_v53 = vpop.permute.xlu0 %1030 }
  0xee   :  { %v1339_v55 = vadd.f32 %v1275_v35, %v692_v37  ;;  %v1338_v44 = vadd.f32 %v1274_v47, %v691_v56  ;;  %v1195_v45 = vmul.f32 %v2484_v27, %v1036_v23  ;;  %v1194_v42 = vmul.f32 %v2484_v27, %v1031_v53  ;;  %1488 = vmatpush3.bf16.msra.mxu0 %v1359_v14  ;;  %v741_v37 = vld [vmem:[%s3105_s9 + $0x150] sm:$0xff]  ;;  %v678_v23 = vld [vmem:[%s3106_s8 + $0x158] sm:$0xff] }
  0xf0   :  { %v1259_v20 = vmul.f32 %v1195_v45, %v740_v57  ;;  %v1258_v54 = vmul.f32 %v1194_v42, %v739_v10  ;;  %v1383_v11 = vpack.c.bf16 %v1339_v55, %v1338_v44  ;;  %v677_v10 = vld [vmem:[%s3106_s8 + $0x150] sm:$0xff]  ;;  %v728_v45 = vld [vmem:[%s3105_s9 + $0xe8] sm:$0xff] }
  0xf1   :  { %v966_v48 = vpop.permute.xlu1 %965  ;;  %v961_v63 = vpop.permute.xlu0 %960 }
  0xf2   :  { %v1323_v32 = vadd.f32 %v1259_v20, %v676_v8  ;;  %v1322_v21 = vadd.f32 %v1258_v54, %v675_v59  ;;  %v1181_v2 = vmul.f32 %v2484_v27, %v966_v48  ;;  %v1180_v49 = vmul.f32 %v2484_v27, %v961_v63  ;;  %1509 = vmatprep.subr.bf16.mxu1 %v1383_v11  ;;  %v727_v54 = vld [vmem:[%s3105_s9 + $0xe0] sm:$0xff] }
  0xf4   :  { %v1375_v39 = vpack.c.bf16 %v1323_v32, %v1322_v21  ;;  %v1245_v36 = vmul.f32 %v1181_v2, %v726_v12  ;;  %v1244_v25 = vmul.f32 %v1180_v49, %v725_v46  ;;  %v664_v12 = vld [vmem:[%s3106_s8 + $0xe8] sm:$0xff]  ;;  %v663_v32 = vld [vmem:[%s3106_s8 + $0xe0] sm:$0xff] }
  0xf5   :  { %v886_v52 = vpop.permute.xlu1 %885  ;;  %v881_v13 = vpop.permute.xlu0 %880  ;;  %v712_v2 = vld [vmem:[%s3105_s9 + $0x68] sm:$0xff] }
  0xf6   :  { %v1309_v7 = vadd.f32 %v1245_v36, %v662_v24  ;;  %v1308_v19 = vadd.f32 %v1244_v25, %v661_v51  ;;  %v1165_v15 = vmul.f32 %v2484_v27, %v886_v52  ;;  %v1164_v1 = vmul.f32 %v2484_v27, %v881_v13  ;;  %1510 = vmatpush3.bf16.msra.mxu1 %v1375_v39  ;;  %v711_v39 = vld [vmem:[%s3105_s9 + $0x60] sm:$0xff] }
  0xf7   :  { %v647_v13 = vld [vmem:[%s3106_s8 + $0x60] sm:$0xff] }
  0xf8   :  { %v1229_v26 = vmul.f32 %v1165_v15, %v710_v22  ;;  %v1228_v34 = vmul.f32 %v1164_v1, %v709_v38  ;;  %v1368_v17 = vpack.c.bf16 %v1309_v7, %v1308_v19  ;;  %v648_v22 = vld [vmem:[%s3106_s8 + $0x68] sm:$0xff] }
  0xf9   :  { %v1126_v18 = vpop.permute.xlu1 %1125  ;;  %v1121_v31 = vpop.permute.xlu0 %1120  ;;  %v760_v19 = vld [vmem:[%s3105_s9 + $0x1e8] sm:$0xff] }
  0xfa   :  { %v1293_v30 = vadd.f32 %v1229_v26, %v646_v28  ;;  %v1292_v60 = vadd.f32 %v1228_v34, %v645_v50  ;;  %v1213_v41 = vmul.f32 %v2484_v27, %v1126_v18  ;;  %v1212_v29 = vmul.f32 %v2484_v27, %v1121_v31  ;;  %1489 = vmatprep.subr.bf16.mxu0 %v1368_v17  ;;  %v759_v26 = vld [vmem:[%s3105_s9 + $0x1e0] sm:$0xff] }
  0xfb   :  { %v695_v31 = vld [vmem:[%s3106_s8 + $0x1e0] sm:$0xff] }
  0xfc   :  { %v1360_v9 = vpack.c.bf16 %v1293_v30, %v1292_v60  ;;  %v1277_v43 = vmul.f32 %v1213_v41, %v758_v62  ;;  %v1276_v61 = vmul.f32 %v1212_v29, %v757_v33  ;;  %v696_v62 = vld [vmem:[%s3106_s8 + $0x1e8] sm:$0xff] }
  0xfd   :  { %v1046_v16 = vpop.permute.xlu1 %1045  ;;  %v1041_v56 = vpop.permute.xlu0 %1040  ;;  %v744_v41 = vld [vmem:[%s3105_s9 + $0x168] sm:$0xff] }
  0xfe   :  { %v1341_v14 = vadd.f32 %v1277_v43, %v694_v58  ;;  %v1340_v35 = vadd.f32 %v1276_v61, %v693_v6  ;;  %v1197_v47 = vmul.f32 %v2484_v27, %v1046_v16  ;;  %v1196_v57 = vmul.f32 %v2484_v27, %v1041_v56  ;;  %1490 = vmatpush3.bf16.msra.mxu0 %v1360_v9  ;;  %v743_v9 = vld [vmem:[%s3105_s9 + $0x160] sm:$0xff] }
  0xff   :  { %v679_v56 = vld [vmem:[%s3106_s8 + $0x160] sm:$0xff] }
 0x100   :  { %v1261_v53 = vmul.f32 %v1197_v47, %v742_v40  ;;  %v1260_v55 = vmul.f32 %v1196_v57, %v741_v37  ;;  %v1384_v44 = vpack.c.bf16 %v1341_v14, %v1340_v35  ;;  %v680_v40 = vld [vmem:[%s3106_s8 + $0x168] sm:$0xff]  ;;  %v730_v35 = vld [vmem:[%s3105_s9 + $0xf8] sm:$0xff] }
 0x101   :  { %v976_v42 = vpop.permute.xlu1 %975 }
 0x102   :  { %v1325_v8 = vadd.f32 %v1261_v53, %v678_v23  ;;  %v1324_v59 = vadd.f32 %v1260_v55, %v677_v10  ;;  %v1183_v20 = vmul.f32 %v2484_v27, %v976_v42  ;;  %v971_v11 = vpop.permute.xlu0 %970  ;;  %1511 = vmatprep.subr.bf16.mxu1 %v1384_v44  ;;  %v729_v53 = vld [vmem:[%s3105_s9 + $0xf0] sm:$0xff] }
 0x103   :  { %v1182_v48 = vmul.f32 %v2484_v27, %v971_v11 }
 0x104   :  { %v1376_v46 = vpack.c.bf16 %v1325_v8, %v1324_v59  ;;  %v1247_v63 = vmul.f32 %v1183_v20, %v728_v45  ;;  %v666_v45 = vld [vmem:[%s3106_s8 + $0xf8] sm:$0xff]  ;;  %v665_v59 = vld [vmem:[%s3106_s8 + $0xf0] sm:$0xff] }
 0x105   :  { %v1246_v21 = vmul.f32 %v1182_v48, %v727_v54  ;;  %v896_v49 = vpop.permute.xlu1 %895 }
 0x106   :  { %v1311_v24 = vadd.f32 %v1247_v63, %v664_v12  ;;  %v1167_v51 = vmul.f32 %v2484_v27, %v896_v49  ;;  %v891_v36 = vpop.permute.xlu0 %890  ;;  %1512 = vmatpush3.bf16.msra.mxu1 %v1376_v46  ;;  %v714_v12 = vld [vmem:[%s3105_s9 + $0x78] sm:$0xff]  ;;  %v713_v49 = vld [vmem:[%s3105_s9 + $0x70] sm:$0xff] }
 0x107   :  { %v1310_v25 = vadd.f32 %v1246_v21, %v663_v32  ;;  %v1166_v52 = vmul.f32 %v2484_v27, %v891_v36  ;;  %v649_v36 = vld [vmem:[%s3106_s8 + $0x70] sm:$0xff] }
 0x108   :  { %v1231_v38 = vmul.f32 %v1167_v51, %v712_v2  ;;  %v650_v2 = vld [vmem:[%s3106_s8 + $0x78] sm:$0xff] }
 0x109   :  { %v1230_v7 = vmul.f32 %v1166_v52, %v711_v39  ;;  %v1136_v15 = vpop.permute.xlu1 %1135  ;;  %v1369_v1 = vpack.c.bf16 %v1311_v24, %v1310_v25 }
 0x10a   :  { %v1295_v28 = vadd.f32 %v1231_v38, %v648_v22  ;;  %v1215_v50 = vmul.f32 %v2484_v27, %v1136_v15  ;;  %v1131_v34 = vpop.permute.xlu0 %1130  ;;  %v762_v38 = vld [vmem:[%s3105_s9 + $0x1f8] sm:$0xff] }
 0x10b   :  { %v1294_v17 = vadd.f32 %v1230_v7, %v647_v13  ;;  %v1214_v18 = vmul.f32 %v2484_v27, %v1131_v34  ;;  %1491 = vmatprep.subr.bf16.mxu0 %v1369_v1  ;;  %v698_v15 = vld [vmem:[%s3106_s8 + $0x1f8] sm:$0xff]  ;;  %v761_v1 = vld [vmem:[%s3105_s9 + $0x1f0] sm:$0xff] }
 0x10c   :  { %v1279_v33 = vmul.f32 %v1215_v50, %v760_v19  ;;  %v697_v34 = vld [vmem:[%s3106_s8 + $0x1f0] sm:$0xff] }
 0x10d   :  { %v1361_v30 = vpack.c.bf16 %v1295_v28, %v1294_v17  ;;  %v1278_v60 = vmul.f32 %v1214_v18, %v759_v26  ;;  %v1056_v29 = vpop.permute.xlu1 %1055 }
 0x10e   :  { %v1343_v58 = vadd.f32 %v1279_v33, %v696_v62  ;;  %v1199_v6 = vmul.f32 %v2484_v27, %v1056_v29  ;;  %v1051_v43 = vpop.permute.xlu0 %1050  ;;  %v746_v33 = vld [vmem:[%s3105_s9 + $0x178] sm:$0xff] }
 0x10f   :  { %v1342_v61 = vadd.f32 %v1278_v60, %v695_v31  ;;  %v1198_v16 = vmul.f32 %v2484_v27, %v1051_v43  ;;  %1492 = vmatpush3.bf16.msra.mxu0 %v1361_v30  ;;  %v682_v60 = vld [vmem:[%s3106_s8 + $0x178] sm:$0xff] }
 0x110   :  { %v1263_v37 = vmul.f32 %v1199_v6, %v744_v41  ;;  %v745_v41 = vld [vmem:[%s3105_s9 + $0x170] sm:$0xff] }
 0x111   :  { %v1262_v14 = vmul.f32 %v1198_v16, %v743_v9  ;;  %v986_v47 = vpop.permute.xlu1 %985  ;;  %v1385_v57 = vpack.c.bf16 %v1343_v58, %v1342_v61  ;;  %v681_v9 = vld [vmem:[%s3106_s8 + $0x170] sm:$0xff] }
 0x112   :  { %v1327_v23 = vadd.f32 %v1263_v37, %v680_v40  ;;  %v1185_v10 = vmul.f32 %v2484_v27, %v986_v47  ;;  %v981_v55 = vpop.permute.xlu0 %980  ;;  %v490_v37 = vld [vmem:[%s3107_s6] sm:$0xf] }
 0x113   :  { %v1326_v44 = vadd.f32 %v1262_v14, %v679_v56  ;;  %v1184_v42 = vmul.f32 %v2484_v27, %v981_v55  ;;  %1513 = vmatprep.subr.bf16.mxu1 %v1385_v57  ;;  %v491_v56 = vld [vmem:[%s3108_s7] sm:$0xf] }
 0x114   :  { %v1249_v8 = vmul.f32 %v1185_v10, %v730_v35  ;;  %v492_v14 = vmul.f32 %v491_v56, %v490_v37  ;;  %v489_v35 = vld [vmem:[%s3109_s5] sm:$0xf] }
 0x115   :  { %v1377_v20 = vpack.c.bf16 %v1327_v23, %v1326_v44  ;;  %v1248_v54 = vmul.f32 %v1184_v42, %v729_v53  ;;  %v3115_v53 = vsub.s32 3, %v1794_v0 }
 0x116   :  { %v1313_v11 = vadd.f32 %v1249_v8, %v666_v45  ;;  %v906_v48 = vpop.permute.xlu1 %905  ;;  %v493_v47 = vadd.f32 %v492_v14, %v489_v35 }
 0x117   :  { %v1312_v46 = vadd.f32 %v1248_v54, %v665_v59  ;;  %v1169_v63 = vmul.f32 %v2484_v27, %v906_v48  ;;  %1514 = vmatpush3.bf16.msra.mxu1 %v1377_v20 }
 0x118   :  { %v532_v57 = vrot.slane %v493_v47, %v1803_v3  ;;  %v540_v23 = vrot.slane %v493_v47, %v287_v5  ;;  %v536_v10 = vrot.slane %v493_v47, %v283_v4  ;;  %v544_v55 = vrot.slane %v493_v47, %v3115_v53 }
 0x119   :  { %v1233_v32 = vmul.f32 %v1169_v63, %v714_v12  ;;  %v1370_v21 = vpack.c.bf16 %v1313_v11, %v1312_v46 }
 0x11a   :  { %v901_v24 = vpop.permute.xlu0 %900 }
 0x11b   :  { %v1168_v51 = vmul.f32 %v2484_v27, %v901_v24  ;;  %v1146_v39 = vpop.permute.xlu1 %1145  ;;  %1493 = vmatprep.subr.bf16.mxu0 %v1370_v21  ;;  %v1297_v22 = vadd.f32 %v1233_v32, %v650_v2 }
 0x11c   :  { %v1217_v25 = vmul.f32 %v2484_v27, %v1146_v39  ;;  %v1348_v39 = vld [vmem:[%s3111_s14] sm:$0x1] }
 0x11d   :  { %v1232_v52 = vmul.f32 %v1168_v51, %v713_v49  ;;  %v1347_v51 = vld [vmem:[%s3110_s13] sm:$0x1] }
 0x11e   :  { %v1281_v7 = vmul.f32 %v1217_v25, %v762_v38  ;;  %v1346_v25 = vld [vmem:[%s3112_s12] sm:$0x1] }
 0x11f   :  { %v1296_v13 = vadd.f32 %v1232_v52, %v649_v36  ;;  %v1349_v36 = vmul.f32 %v1348_v39, %v1347_v51 }
 0x120   :  { %v1345_v62 = vadd.f32 %v1281_v7, %v698_v15 }
 0x121   :  { %v1362_v19 = vpack.c.bf16 %v1297_v22, %v1296_v13  ;;  %v1141_v28 = vpop.permute.xlu0 %1140  ;;  %v1350_v22 = vadd.f32 %v1349_v36, %v1346_v25 }
 0x122   :  { %v1216_v50 = vmul.f32 %v2484_v27, %v1141_v28  ;;  %v1066_v26 = vpop.permute.xlu1 %1065 }
 0x123   :  { %v1201_v17 = vmul.f32 %v2484_v27, %v1066_v26  ;;  %1494 = vmatpush3.bf16.msra.mxu0 %v1362_v19  ;;  %v1526_v27 = vld [vmem:[%s3104_s11] ss:$0 sm:$0xff]  ;;  %v1391_v38 = vrot.slane %v1350_v22, %v1803_v3 }
 0x124   :  { %v1280_v18 = vmul.f32 %v1216_v50, %v761_v1 }
 0x125   :  { %v1265_v30 = vmul.f32 %v1201_v17, %v746_v33 }
 0x126   :  { %v1344_v31 = vadd.f32 %v1280_v18, %v697_v34 }
 0x127   :  { %v1329_v43 = vadd.f32 %v1265_v30, %v682_v60 }
 0x128   :  { %v1061_v29 = vpop.permute.xlu0 %1060  ;;  %v1386_v58 = vpack.c.bf16 %v1345_v62, %v1344_v31 }
 0x129   :  { %v1200_v6 = vmul.f32 %v1526_v27, %v1061_v29 }
 0x12a   :  { %1515 = vmatprep.subr.bf16.mxu1 %v1386_v58 }
 0x12b   :  { %v1264_v61 = vmul.f32 %v1200_v6, %v745_v41 }
 0x12d   :  { %v1328_v40 = vadd.f32 %v1264_v61, %v681_v9 }
 0x12f   :  { %v1378_v16 = vpack.c.bf16 %v1329_v43, %v1328_v40 }
 0x131   :  { %1516 = vmatpush3.bf16.msra.mxu1 %v1378_v16 }
 0x197   :  { %v583_v44 = vpop.f32.mrb[0].mxu0 }
 0x198   :  { %v584_v45 = vadd.f32 %v583_v44, %v532_v57  ;;  %v624_v42 = vpop.f32.mrb[0].mxu1  ;;  %v585_v8 = vpop.f32.mrb[1].mxu0 }
 0x199   :  { %v625_v59 = vadd.f32 %v624_v42, %v540_v23  ;;  %v586_v20 = vadd.f32 %v585_v8, %v536_v10  ;;  %v626_v54 = vpop.f32.mrb[1].mxu1  ;;  %v587_v11 = vpop.f32.mrb[2].mxu0 }
 0x19a   :  { %v631_v12 = vmax.f32 %v584_v45, 0.0  ;;  %v627_v48 = vadd.f32 %v626_v54, %v544_v55  ;;  %v628_v46 = vpop.f32.mrb[2].mxu1  ;;  %v588_v63 = vpop.f32.mrb[3].mxu0 }
 0x19b   :  { %v633_v32 = vmax.f32 %v625_v59, 0.0  ;;  %v632_v5 = vmax.f32 %v586_v20, 0.0  ;;  %v629_v21 = vpop.f32.mrb[3].mxu1 }
 0x19c   :  { %v634_v2 = vmax.f32 %v627_v48, 0.0  ;;  %v1351_v0 = vpack.c.bf16 %v631_v12, %v631_v12 }
 0x19d   :  { %v1353_v4 = vpack.c.bf16 %v633_v32, %v633_v32  ;;  %v1352_v49 = vpack.c.bf16 %v632_v5, %v632_v5 }
 0x19e   :  { %v1354_v24 = vpack.c.bf16 %v634_v2, %v634_v2 }
 0x19f   :  { %1425 = vmatprep.mubr.bf16.mxu0 %v1352_v49 }
 0x1a0   :  { %1465 = vmatprep.mubr.bf16.mxu1 %v1354_v24  ;;  %1426 = vmatmul.mubr.bf16.vlgmr.msra.gmra.mrb[4].mxu0 %v1351_v0 }
 0x1a1   :  { %1466 = vmatmul.mubr.bf16.vlgmr.msra.gmra.mrb[4].mxu1 %v1353_v4 }
 0x273   :  { %v1495_v52 = vpop.f32.mrb[4].mxu0 }
 0x274   :  { %v1517_v13 = vpop.f32.mrb[4].mxu1  ;;  %v1496_v7 = vpop.f32.mrb[5].mxu0 }
 0x275   :  { %v1497_v19 = vadd.f32 %v1496_v7, %v1495_v52  ;;  %v1518_v15 = vpop.f32.mrb[5].mxu1  ;;  %v1498_v1 = vpop.f32.mrb[6].mxu0 }
 0x276   :  { %v1519_v28 = vadd.f32 %v1518_v15, %v1517_v13  ;;  %v1520_v50 = vpop.f32.mrb[6].mxu1  ;;  %v1499_v26 = vpop.f32.mrb[7].mxu0 }
 0x277   :  { %v1428_v34 = vadd.f32 %v1497_v19, %v1391_v38  ;;  %v1521_v17 = vpop.f32.mrb[7].mxu1 }
 0x279   :  { %v1468_v62 = vadd.f32 %v1519_v28, %v1428_v34 }
 0x27b   :  { %1473 = vst [vmem:[%s3113_s15] sm:$0xff] %v1468_v62 }

</bundles_post_ra>
